<compile_context>
chip_gen: v6e
topology: v6e:2x2x1
jax: 0.10.0
libtpu: 0.0.40
codegen_flags: <defaults>
</compile_context>

<pallas_src>
import jax
import jax.numpy as jnp
from jax.experimental import pallas as pl
from jax.experimental.pallas import tpu as pltpu

# ---- model sizes (from the PyTorch module) ----------------------------------
NUM_FEATURES = 4          # dataset.num_features (small synthetic choice)
NEURON = 64               # hidden width
FC1_OUT = 10
FC2_OUT = 1

# ---- tiled / padded layout ---------------------------------------------------
LANE = 128                                            # pad channels to 1 lane tile
NODES_PER_GRAPH = 64                                  # SpectralDesign(nmax=64)
GRAPHS_PER_TILE = 4                                   # 4 graphs -> 256 node rows
NODES_PER_TILE = NODES_PER_GRAPH * GRAPHS_PER_TILE    # 256
NUM_TILES = 8                                         # grid extent per pallas_call
NUM_GRAPHS = NUM_TILES * GRAPHS_PER_TILE              # 32 graphs total

# weight-slab column offsets (each padded block is LANE wide)
_W1, _W2, _W3, _WF1, _WF2 = (i * LANE for i in range(5))
W_SLAB_COLS = 5 * LANE


def gin_kernel(eps_ref,                 # SMEM (3,)  learnable eps per GINConv
               x_ref,                   # VMEM (NODES_PER_TILE, LANE)   features, cols 0:4 real
               adj_ref,                 # VMEM (NODES_PER_TILE, NODES_PER_TILE) block-diag adjacency
               pool_ref,                # VMEM (GRAPHS_PER_TILE, NODES_PER_TILE) mean-pool matrix
               w_ref,                   # VMEM (LANE, 5*LANE) packed padded weights (resident)
               b_ref,                   # VMEM (1, 5*LANE)    packed padded biases (resident)
               out_ref):                # VMEM (GRAPHS_PER_TILE, LANE)  col 0 = fc2 output
    adj = adj_ref[...]

    def gin_layer(h, eps, off):
        # GINConv: nn((1 + eps) * x_i + sum_{j in N(i)} x_j), nn = Linear, then ReLU
        w = w_ref[:, off:off + LANE]                  # static, lane-tile-aligned slice
        b = b_ref[:, off:off + LANE]
        agg = jnp.dot(adj, h, preferred_element_type=jnp.float32)
        z = agg + (1.0 + eps) * h
        return jnp.maximum(jnp.dot(z, w, preferred_element_type=jnp.float32) + b, 0.0)

    h = gin_layer(x_ref[...], eps_ref[0], _W1)
    h = gin_layer(h,          eps_ref[1], _W2)
    h = gin_layer(h,          eps_ref[2], _W3)

    # global_mean_pool == P @ h  (rows of P sum to 1 over each graph)
    g = jnp.dot(pool_ref[...], h, preferred_element_type=jnp.float32)     # (G, LANE)
    g = jnp.maximum(
        jnp.dot(g, w_ref[:, _WF1:_WF1 + LANE], preferred_element_type=jnp.float32)
        + b_ref[:, _WF1:_WF1 + LANE], 0.0)                                # fc1 + relu
    out_ref[...] = (jnp.dot(g, w_ref[:, _WF2:_WF2 + LANE],
                            preferred_element_type=jnp.float32)
                    + b_ref[:, _WF2:_WF2 + LANE])                         # fc2 (col 0 real)


def gin_net(eps, x_tiles, adj_tiles, pool_tiles, w_slab, b_slab):
    flops_per_tile = (3 * 2 * NODES_PER_TILE * NODES_PER_TILE * LANE      # A @ h (x3)
                      + 3 * 2 * NODES_PER_TILE * LANE * LANE              # z @ w (x3)
                      + 2 * GRAPHS_PER_TILE * NODES_PER_TILE * LANE       # pool
                      + 2 * 2 * GRAPHS_PER_TILE * LANE * LANE)            # fc1, fc2
    bytes_per_tile = 4 * (NODES_PER_TILE * LANE + NODES_PER_TILE * NODES_PER_TILE
                          + GRAPHS_PER_TILE * NODES_PER_TILE + GRAPHS_PER_TILE * LANE)
    bytes_total = (NUM_TILES * bytes_per_tile
                   + 4 * (LANE * W_SLAB_COLS + W_SLAB_COLS) + 3 * 4)

    out = pl.pallas_call(
        gin_kernel,
        out_shape=jax.ShapeDtypeStruct((NUM_TILES, GRAPHS_PER_TILE, LANE), jnp.float32),
        grid_spec=pltpu.PrefetchScalarGridSpec(
            num_scalar_prefetch=0,
            grid=(NUM_TILES,),
            in_specs=[
                pl.BlockSpec(memory_space=pltpu.MemorySpace.SMEM),          # eps (whole)
                pl.BlockSpec((None, NODES_PER_TILE, LANE),
                             lambda t: (t, 0, 0)),                          # x tile
                pl.BlockSpec((None, NODES_PER_TILE, NODES_PER_TILE),
                             lambda t: (t, 0, 0)),                          # adj tile
                pl.BlockSpec((None, GRAPHS_PER_TILE, NODES_PER_TILE),
                             lambda t: (t, 0, 0)),                          # pool tile
                pl.BlockSpec((LANE, W_SLAB_COLS), lambda t: (0, 0)),        # weights (resident)
                pl.BlockSpec((1, W_SLAB_COLS), lambda t: (0, 0)),           # biases  (resident)
            ],
            out_specs=pl.BlockSpec((None, GRAPHS_PER_TILE, LANE),
                                   lambda t: (t, 0, 0)),
        ),
        compiler_params=pltpu.CompilerParams(
            dimension_semantics=("parallel",)),
        cost_estimate=pl.CostEstimate(flops=NUM_TILES * flops_per_tile,
                                      transcendentals=0,
                                      bytes_accessed=bytes_total),
    )(eps, x_tiles, adj_tiles, pool_tiles, w_slab, b_slab)

    # lane-dense kernel output -> (NUM_GRAPHS, 1) in the wrapper (free plumbing)
    return out[:, :, :FC2_OUT].reshape(NUM_GRAPHS, FC2_OUT)


def reference(eps, x_tiles, adj_tiles, pool_tiles, params):
    (w1, b1, w2, b2, w3, b3, wf1, bf1, wf2, bf2) = params
    h = x_tiles[..., :NUM_FEATURES]                        # strip feature padding
    for e, w, b in ((eps[0], w1, b1), (eps[1], w2, b2), (eps[2], w3, b3)):
        z = jnp.einsum('tnm,tmf->tnf', adj_tiles, h) + (1.0 + e) * h
        h = jax.nn.relu(jnp.einsum('tnf,fo->tno', z, w) + b)
    g = jnp.einsum('tgn,tnf->tgf', pool_tiles, h)          # global_mean_pool
    g = jax.nn.relu(g @ wf1 + bf1)
    return (g @ wf2 + bf2).reshape(NUM_GRAPHS, FC2_OUT)


if __name__ == "__main__":
    key = jax.random.PRNGKey(0)
    keys = jax.random.split(key, 16)

    # --- graphs: NUM_GRAPHS graphs of 64 nodes each -------------------------
    x_graphs = jax.random.normal(keys[0], (NUM_GRAPHS, NODES_PER_GRAPH, NUM_FEATURES),
                                 dtype=jnp.float32)
    adj_graphs = (jax.random.uniform(keys[1], (NUM_GRAPHS, NODES_PER_GRAPH,
                                               NODES_PER_GRAPH)) < 0.1).astype(jnp.float32)
    adj_graphs = adj_graphs * (1.0 - jnp.eye(NODES_PER_GRAPH, dtype=jnp.float32))  # no self loops
    # TODO(synk): if real data pads graphs below nmax, the padded node rows/cols
    # must also be zeroed in adj/pool so they do not leak into the mean pool.

    # --- pack graphs into node tiles (block-diagonal adjacency, PyG style) ---
    x_tiles = x_graphs.reshape(NUM_TILES, NODES_PER_TILE, NUM_FEATURES)
    x_tiles = jnp.pad(x_tiles, ((0, 0), (0, 0), (0, LANE - NUM_FEATURES)))   # lane-pad features

    adj_g = adj_graphs.reshape(NUM_TILES, GRAPHS_PER_TILE, NODES_PER_GRAPH, NODES_PER_GRAPH)
    adj_tiles = jnp.zeros((NUM_TILES, NODES_PER_TILE, NODES_PER_TILE), jnp.float32)
    for g in range(GRAPHS_PER_TILE):
        s = g * NODES_PER_GRAPH
        adj_tiles = adj_tiles.at[:, s:s + NODES_PER_GRAPH, s:s + NODES_PER_GRAPH].set(adj_g[:, g])

    node_graph = jnp.repeat(jnp.arange(GRAPHS_PER_TILE), NODES_PER_GRAPH)    # (256,)
    pool_one = (node_graph[None, :] == jnp.arange(GRAPHS_PER_TILE)[:, None]).astype(jnp.float32)
    pool_one = pool_one / NODES_PER_GRAPH                                    # rows sum to 1
    pool_tiles = jnp.tile(pool_one[None], (NUM_TILES, 1, 1))                 # (T, G, 256)

    # --- parameters (PyTorch-style init), then pack into lane-dense slabs ----
    eps = jax.random.uniform(keys[2], (3,), dtype=jnp.float32)               # eps1..eps3 ~ U(0,1)

    def lin(kw, kb, fan_in, fan_out):
        bound = 1.0 / jnp.sqrt(fan_in)
        w = jax.random.uniform(kw, (fan_in, fan_out), minval=-bound, maxval=bound,
                               dtype=jnp.float32)
        b = jax.random.uniform(kb, (fan_out,), minval=-bound, maxval=bound,
                               dtype=jnp.float32)
        return w, b

    w1, b1 = lin(keys[3], keys[4], NUM_FEATURES, NEURON)
    w2, b2 = lin(keys[5], keys[6], NEURON, NEURON)
    w3, b3 = lin(keys[7], keys[8], NEURON, NEURON)
    wf1, bf1 = lin(keys[9], keys[10], NEURON, FC1_OUT)
    wf2, bf2 = lin(keys[11], keys[12], FC1_OUT, FC2_OUT)
    params = (w1, b1, w2, b2, w3, b3, wf1, bf1, wf2, bf2)

    def pad_block(w, b):
        wp = jnp.zeros((LANE, LANE), jnp.float32).at[:w.shape[0], :w.shape[1]].set(w)
        bp = jnp.zeros((1, LANE), jnp.float32).at[0, :b.shape[0]].set(b)
        return wp, bp

    padded = [pad_block(w1, b1), pad_block(w2, b2), pad_block(w3, b3),
              pad_block(wf1, bf1), pad_block(wf2, bf2)]
    w_slab = jnp.concatenate([w for w, _ in padded], axis=1)                 # (128, 640)
    b_slab = jnp.concatenate([b for _, b in padded], axis=1)                 # (1, 640)

    # --- run kernel + check ---------------------------------------------------
    out = gin_net(eps, x_tiles, adj_tiles, pool_tiles, w_slab, b_slab)
    out = jax.block_until_ready(out)

    ref = reference(eps, x_tiles, adj_tiles, pool_tiles, params)
    assert out.shape == (NUM_GRAPHS, FC2_OUT)
    assert jnp.allclose(out, ref, atol=1e-4, rtol=1e-4)

    print("KERNEL_OK")
</pallas_src>

<mosaic_0001>
module attributes {stable_mosaic.version = 11 : i64} {
  func.func @gin_kernel(%arg0: i32, %arg1: memref<3xf32, #tpu.memory_space<smem>>, %arg2: memref<1x256x128xf32, #tpu.memory_space<vmem>>, %arg3: memref<1x256x256xf32, #tpu.memory_space<vmem>>, %arg4: memref<1x4x256xf32, #tpu.memory_space<vmem>>, %arg5: memref<128x640xf32, #tpu.memory_space<vmem>>, %arg6: memref<1x640xf32, #tpu.memory_space<vmem>>, %arg7: memref<1x4x128xf32, #tpu.memory_space<vmem>>) attributes {dimension_semantics = [#tpu.dimension_semantics<parallel>], iteration_bounds = array<i64: 8>, scalar_prefetch = 0 : i64, scratch_operands = 0 : i64, tpu.core_type = #tpu.core_type<tc>, window_params = [{transform_indices = @transform_0, window_bounds = array<i64: 3>}, {transform_indices = @transform_1, window_bounds = array<i64: 1, 256, 128>}, {transform_indices = @transform_2, window_bounds = array<i64: 1, 256, 256>}, {transform_indices = @transform_3, window_bounds = array<i64: 1, 4, 256>}, {pipeline_mode = #tpu.pipeline_mode<synchronous>, transform_indices = @transform_4, window_bounds = array<i64: 128, 640>}, {pipeline_mode = #tpu.pipeline_mode<synchronous>, transform_indices = @transform_5, window_bounds = array<i64: 1, 640>}, {transform_indices = @transform_6, window_bounds = array<i64: 1, 4, 128>}]} {
    %c0 = arith.constant 0 : index
    %c0_0 = arith.constant 0 : index
    %c0_1 = arith.constant 0 : index
    %0 = vector.load %arg3[%c0, %c0_0, %c0_1] : memref<1x256x256xf32, #tpu.memory_space<vmem>>, vector<1x256x256xf32>
    %1 = vector.shape_cast %0 : vector<1x256x256xf32> to vector<256x256xf32>
    %c0_2 = arith.constant 0 : index
    %c0_3 = arith.constant 0 : index
    %c0_4 = arith.constant 0 : index
    %2 = vector.load %arg2[%c0_2, %c0_3, %c0_4] : memref<1x256x128xf32, #tpu.memory_space<vmem>>, vector<1x256x128xf32>
    %3 = vector.shape_cast %2 : vector<1x256x128xf32> to vector<256x128xf32>
    %c0_5 = arith.constant 0 : index
    %4 = memref.load %arg1[%c0_5] : memref<3xf32, #tpu.memory_space<smem>>
    %c0_6 = arith.constant 0 : index
    %c0_7 = arith.constant 0 : index
    %5 = vector.load %arg5[%c0_6, %c0_7] : memref<128x640xf32, #tpu.memory_space<vmem>>, vector<128x128xf32>
    %c0_8 = arith.constant 0 : index
    %c0_9 = arith.constant 0 : index
    %6 = vector.load %arg6[%c0_8, %c0_9] : memref<1x640xf32, #tpu.memory_space<vmem>>, vector<1x128xf32>
    %cst = arith.constant dense<0.000000e+00> : vector<256x128xf32>
    %7 = tpu.matmul %1, %3, %cst {dimension_numbers = #tpu.dot_dimension_numbers<[1], [0], [0], [1], [0, 0, 1, 1], [], []>} : vector<256x256xf32>, vector<256x128xf32>, vector<256x128xf32> -> vector<256x128xf32>
    %cst_10 = arith.constant 1.000000e+00 : f32
    %8 = arith.addf %cst_10, %4 : f32
    %9 = vector.broadcast %8 : f32 to vector<256x128xf32>
    %10 = arith.mulf %9, %3 : vector<256x128xf32>
    %11 = arith.addf %7, %10 : vector<256x128xf32>
    %cst_11 = arith.constant dense<0.000000e+00> : vector<256x128xf32>
    %12 = tpu.matmul %11, %5, %cst_11 {dimension_numbers = #tpu.dot_dimension_numbers<[1], [0], [0], [1], [0, 0, 1, 1], [], []>} : vector<256x128xf32>, vector<128x128xf32>, vector<256x128xf32> -> vector<256x128xf32>
    %13 = vector.broadcast %6 : vector<1x128xf32> to vector<256x128xf32>
    %14 = arith.addf %12, %13 : vector<256x128xf32>
    %cst_12 = arith.constant 0.000000e+00 : f32
    %15 = vector.broadcast %cst_12 : f32 to vector<256x128xf32>
    %16 = arith.maximumf %14, %15 : vector<256x128xf32>
    %c1 = arith.constant 1 : index
    %17 = memref.load %arg1[%c1] : memref<3xf32, #tpu.memory_space<smem>>
    %c0_13 = arith.constant 0 : index
    %c128 = arith.constant 128 : index
    %18 = vector.load %arg5[%c0_13, %c128] : memref<128x640xf32, #tpu.memory_space<vmem>>, vector<128x128xf32>
    %c0_14 = arith.constant 0 : index
    %c128_15 = arith.constant 128 : index
    %19 = vector.load %arg6[%c0_14, %c128_15] : memref<1x640xf32, #tpu.memory_space<vmem>>, vector<1x128xf32>
    %cst_16 = arith.constant dense<0.000000e+00> : vector<256x128xf32>
    %20 = tpu.matmul %1, %16, %cst_16 {dimension_numbers = #tpu.dot_dimension_numbers<[1], [0], [0], [1], [0, 0, 1, 1], [], []>} : vector<256x256xf32>, vector<256x128xf32>, vector<256x128xf32> -> vector<256x128xf32>
    %cst_17 = arith.constant 1.000000e+00 : f32
    %21 = arith.addf %cst_17, %17 : f32
    %22 = vector.broadcast %21 : f32 to vector<256x128xf32>
    %23 = arith.mulf %22, %16 : vector<256x128xf32>
    %24 = arith.addf %20, %23 : vector<256x128xf32>
    %cst_18 = arith.constant dense<0.000000e+00> : vector<256x128xf32>
    %25 = tpu.matmul %24, %18, %cst_18 {dimension_numbers = #tpu.dot_dimension_numbers<[1], [0], [0], [1], [0, 0, 1, 1], [], []>} : vector<256x128xf32>, vector<128x128xf32>, vector<256x128xf32> -> vector<256x128xf32>
    %26 = vector.broadcast %19 : vector<1x128xf32> to vector<256x128xf32>
    %27 = arith.addf %25, %26 : vector<256x128xf32>
    %cst_19 = arith.constant 0.000000e+00 : f32
    %28 = vector.broadcast %cst_19 : f32 to vector<256x128xf32>
    %29 = arith.maximumf %27, %28 : vector<256x128xf32>
    %c2 = arith.constant 2 : index
    %30 = memref.load %arg1[%c2] : memref<3xf32, #tpu.memory_space<smem>>
    %c0_20 = arith.constant 0 : index
    %c256 = arith.constant 256 : index
    %31 = vector.load %arg5[%c0_20, %c256] : memref<128x640xf32, #tpu.memory_space<vmem>>, vector<128x128xf32>
    %c0_21 = arith.constant 0 : index
    %c256_22 = arith.constant 256 : index
    %32 = vector.load %arg6[%c0_21, %c256_22] : memref<1x640xf32, #tpu.memory_space<vmem>>, vector<1x128xf32>
    %cst_23 = arith.constant dense<0.000000e+00> : vector<256x128xf32>
    %33 = tpu.matmul %1, %29, %cst_23 {dimension_numbers = #tpu.dot_dimension_numbers<[1], [0], [0], [1], [0, 0, 1, 1], [], []>} : vector<256x256xf32>, vector<256x128xf32>, vector<256x128xf32> -> vector<256x128xf32>
    %cst_24 = arith.constant 1.000000e+00 : f32
    %34 = arith.addf %cst_24, %30 : f32
    %35 = vector.broadcast %34 : f32 to vector<256x128xf32>
    %36 = arith.mulf %35, %29 : vector<256x128xf32>
    %37 = arith.addf %33, %36 : vector<256x128xf32>
    %cst_25 = arith.constant dense<0.000000e+00> : vector<256x128xf32>
    %38 = tpu.matmul %37, %31, %cst_25 {dimension_numbers = #tpu.dot_dimension_numbers<[1], [0], [0], [1], [0, 0, 1, 1], [], []>} : vector<256x128xf32>, vector<128x128xf32>, vector<256x128xf32> -> vector<256x128xf32>
    %39 = vector.broadcast %32 : vector<1x128xf32> to vector<256x128xf32>
    %40 = arith.addf %38, %39 : vector<256x128xf32>
    %cst_26 = arith.constant 0.000000e+00 : f32
    %41 = vector.broadcast %cst_26 : f32 to vector<256x128xf32>
    %42 = arith.maximumf %40, %41 : vector<256x128xf32>
    %c0_27 = arith.constant 0 : index
    %c0_28 = arith.constant 0 : index
    %c0_29 = arith.constant 0 : index
    %43 = vector.load %arg4[%c0_27, %c0_28, %c0_29] : memref<1x4x256xf32, #tpu.memory_space<vmem>>, vector<1x4x256xf32>
    %44 = vector.shape_cast %43 : vector<1x4x256xf32> to vector<4x256xf32>
    %cst_30 = arith.constant dense<0.000000e+00> : vector<4x128xf32>
    %45 = tpu.matmul %44, %42, %cst_30 {dimension_numbers = #tpu.dot_dimension_numbers<[1], [0], [0], [1], [0, 0, 1, 1], [], []>} : vector<4x256xf32>, vector<256x128xf32>, vector<4x128xf32> -> vector<4x128xf32>
    %c0_31 = arith.constant 0 : index
    %c384 = arith.constant 384 : index
    %46 = vector.load %arg5[%c0_31, %c384] : memref<128x640xf32, #tpu.memory_space<vmem>>, vector<128x128xf32>
    %cst_32 = arith.constant dense<0.000000e+00> : vector<4x128xf32>
    %47 = tpu.matmul %45, %46, %cst_32 {dimension_numbers = #tpu.dot_dimension_numbers<[1], [0], [0], [1], [0, 0, 1, 1], [], []>} : vector<4x128xf32>, vector<128x128xf32>, vector<4x128xf32> -> vector<4x128xf32>
    %c0_33 = arith.constant 0 : index
    %c384_34 = arith.constant 384 : index
    %48 = vector.load %arg6[%c0_33, %c384_34] : memref<1x640xf32, #tpu.memory_space<vmem>>, vector<1x128xf32>
    %49 = vector.broadcast %48 : vector<1x128xf32> to vector<4x128xf32>
    %50 = arith.addf %47, %49 : vector<4x128xf32>
    %cst_35 = arith.constant 0.000000e+00 : f32
    %51 = vector.broadcast %cst_35 : f32 to vector<4x128xf32>
    %52 = arith.maximumf %50, %51 : vector<4x128xf32>
    %c0_36 = arith.constant 0 : index
    %c512 = arith.constant 512 : index
    %53 = vector.load %arg5[%c0_36, %c512] : memref<128x640xf32, #tpu.memory_space<vmem>>, vector<128x128xf32>
    %cst_37 = arith.constant dense<0.000000e+00> : vector<4x128xf32>
    %54 = tpu.matmul %52, %53, %cst_37 {dimension_numbers = #tpu.dot_dimension_numbers<[1], [0], [0], [1], [0, 0, 1, 1], [], []>} : vector<4x128xf32>, vector<128x128xf32>, vector<4x128xf32> -> vector<4x128xf32>
    %c0_38 = arith.constant 0 : index
    %c512_39 = arith.constant 512 : index
    %55 = vector.load %arg6[%c0_38, %c512_39] : memref<1x640xf32, #tpu.memory_space<vmem>>, vector<1x128xf32>
    %56 = vector.broadcast %55 : vector<1x128xf32> to vector<4x128xf32>
    %57 = arith.addf %54, %56 : vector<4x128xf32>
    %c0_40 = arith.constant 0 : index
    %c0_41 = arith.constant 0 : index
    %c0_42 = arith.constant 0 : index
    %58 = vector.load %arg7[%c0_40, %c0_41, %c0_42] : memref<1x4x128xf32, #tpu.memory_space<vmem>>, vector<1x4x128xf32>
    %59 = vector.shape_cast %58 : vector<1x4x128xf32> to vector<4x128xf32>
    %60 = vector.shape_cast %57 : vector<4x128xf32> to vector<1x4x128xf32>
    tpu.vector_store %arg7[%c0_40, %c0_41, %c0_42], %60 {strides = array<i32>} : memref<1x4x128xf32, #tpu.memory_space<vmem>>, vector<1x4x128xf32>,
    return
  }
  func.func @transform_0(%arg0: i32) -> i32 {
    %c0_i32 = arith.constant 0 : i32
    %c0_i32_0 = arith.constant 0 : i32
    return %c0_i32 : i32
  }
  func.func @transform_1(%arg0: i32) -> (i32, i32, i32) {
    %c0_i32 = arith.constant 0 : i32
    %c0_i32_0 = arith.constant 0 : i32
    %c0_i32_1 = arith.constant 0 : i32
    return %arg0, %c0_i32, %c0_i32_0 : i32, i32, i32
  }
  func.func @transform_2(%arg0: i32) -> (i32, i32, i32) {
    %c0_i32 = arith.constant 0 : i32
    %c0_i32_0 = arith.constant 0 : i32
    %c0_i32_1 = arith.constant 0 : i32
    return %arg0, %c0_i32, %c0_i32_0 : i32, i32, i32
  }
  func.func @transform_3(%arg0: i32) -> (i32, i32, i32) {
    %c0_i32 = arith.constant 0 : i32
    %c0_i32_0 = arith.constant 0 : i32
    %c0_i32_1 = arith.constant 0 : i32
    return %arg0, %c0_i32, %c0_i32_0 : i32, i32, i32
  }
  func.func @transform_4(%arg0: i32) -> (i32, i32) {
    %c0_i32 = arith.constant 0 : i32
    %c0_i32_0 = arith.constant 0 : i32
    %c0_i32_1 = arith.constant 0 : i32
    return %c0_i32, %c0_i32_0 : i32, i32
  }
  func.func @transform_5(%arg0: i32) -> (i32, i32) {
    %c0_i32 = arith.constant 0 : i32
    %c0_i32_0 = arith.constant 0 : i32
    %c0_i32_1 = arith.constant 0 : i32
    return %c0_i32, %c0_i32_0 : i32, i32
  }
  func.func @transform_6(%arg0: i32) -> (i32, i32, i32) {
    %c0_i32 = arith.constant 0 : i32
    %c0_i32_0 = arith.constant 0 : i32
    %c0_i32_1 = arith.constant 0 : i32
    return %arg0, %c0_i32, %c0_i32_0 : i32, i32, i32
  }
}

</mosaic_0001>

<bundles_post_ra>
// kernel: tpu_custom_call.1
= control target key start
LH: loop header
LB: loop body
LE: loop exit
PB: predicated region body
PF: predicated region fallthrough
CT: control target
= control target key end

     0   :  { %s5194_s0 = inlined_call_operand.hbm [shape: f32[3], index: 0, kind: input, shape index: {}]   ;;  %s5195_s1 = inlined_call_operand.hbm [shape: f32[8,256,128], index: 1, kind: input, shape index: {}]   ;;  %s5196_s2 = inlined_call_operand.hbm [shape: f32[8,256,256], index: 2, kind: input, shape index: {}]   ;;  %s5197_s3 = inlined_call_operand.hbm [shape: f32[8,4,256], index: 3, kind: input, shape index: {}]   ;;  %s5198_s4 = inlined_call_operand.hbm [shape: f32[128,640], index: 4, kind: input, shape index: {}]   ;;  %s5199_s5 = inlined_call_operand.hbm [shape: f32[1,640], index: 5, kind: input, shape index: {}]   ;;  %s5200_s6 = inlined_call_operand.hbm [shape: f32[8,4,128], index: 6, kind: output, shape index: {}]  }
   0x1   :  { %5296 = sst [smem:[#allocation68_spill]] %s5194_s0 }
   0x2   :  { %5297 = sst [smem:[#allocation69_spill]] %s5195_s1 }
   0x3   :  { %5298 = sst [smem:[#allocation70_spill]] %s5196_s2 }
   0x4   :  { %5299 = sst [smem:[#allocation71_spill]] %s5198_s4 }
   0x5   :  { %5300 = sst [smem:[#allocation72_spill]] %s5199_s5 }
   0x6   :  { %11 = vsyncpa [#allocation5], 0 }
   0x7   :  { %12 = vsyncpa [#allocation3], 0 }
   0x8   :  { %14 = vsyncpa [#allocation3 + $0x1], 0 }
   0x9   :  { %15 = vsyncpa [#allocation8], 0 }
   0xa   :  { %17 = vsyncpa [#allocation8 + $0x1], 0 }
   0xb   :  { %18 = vsyncpa [#allocation11], 0 }
   0xc   :  { %19 = vsyncpa [#allocation4], 0 }
   0xd   :  { %21 = vsyncpa [#allocation4 + $0x1], 0  ;;  %s3515_s21 = smov 0   ;;  %s3517_s22 = smov 0  }
   0xe   :  { %s3519_s23 = smov 0   ;;  %s3521_s24 = smov 0  }
   0xf LB: > { %5301 = sst [smem:[#allocation19_spill]] %s3459_s23  ;;  %s3536_s25 = sadd.s32 4294967295, %s3463_s24   ;;  %s3463_s24 = sphi %s3521_s24, %s5457_s24   ;;  %s3459_s23 = sphi %s3519_s23, %s5462_s23   ;;  %s3455_s22 = sphi %s3517_s22, %s5461_s22   ;;  %s3451_s21 = sphi %s3515_s21, %s5460_s21  }
  0x10   : > { %s2520_s26 = sadd.s32 4294967294, %s3463_s24   ;;  %s3540_s27 = sadd.s32 1, %s3463_s24  }
  0x11   : > { %5302 = sst [smem:[#allocation20_spill]] %s3540_s27  ;;  %s55_s28 = sadd.s32 1, %s3459_s23 }
  0x12   : > { %s52_s29 = ssub.s32 %s3463_s24, %s3540_s27  ;;  %p62_p0 = scmp.ne.s32.totalorder %s3459_s23, %s3455_s22 }
  0x13   : > { %p53_p1 = scmp.eq.s32.totalorder %s52_s29, 0  ;;  %p63_p2 = scmp.eq.s32.totalorder %s3463_s24, 0 }
  0x14   : > { %p68_p3 = scmp.ne.s32.totalorder %s3455_s22, %s3451_s21  ;;  %p5201_p4 = scmp.eq.s32.totalorder %s3536_s25, 0 }
  0x15   : > { %s3552_s30 = scalar_select %p53_p1, %s3459_s23, %s55_s28  }
  0x16   : > { %p3554_p5 = por %p63_p2, %p62_p0  ;;  %p3560_p6 = por %p5201_p4, %p68_p3 }
  0x17   : > { %5303 = sst [smem:[#allocation21_spill]] %s3552_s30  ;;  %p186_p7 = scmp.eq.s32.totalorder %s3536_s25, 7 }
  0x18   : > { %s5305_s8 = scalar_select %p3560_p6, 1, 0 }
  0x19   : > { %p192_p8 = scmp.eq.s32.totalorder %s2520_s26, 7  ;;  %p2521_p9 = scmp.ge.s32.totalorder %s3463_s24, 1 }
  0x1a   : > { %p199_p10 = scmp.lt.s32.totalorder %s3463_s24, 9  ;;  %p3567_p11 = por %p186_p7, %p62_p0 }
  0x1b   : > { %p3571_p12 = por %p192_p8, %p68_p3  ;;  %s3465_s12 = smov [#allocation10]  }
  0x1c   : > { %s5306_s9 = scalar_select %p3567_p11, 1, 0 }
  0x1d   : > { %s5307_s10 = scalar_select %p3571_p12, 1, 0 }
  0x1e   : > { %p3575_p13 = pnand %p2521_p9, %p199_p10  ;;  %s220_s13 = sshll.u32 %s3465_s12, 4  ;;  %s221_s13 = int_to_ptr.vmem [resolvable:$true] %s220_s13 }
  0x1f   : > { %p3127_p0 = scmp.lt.s32.totalorder %s3463_s24, 8  ;;  %s3589_s15 = sand.u32 1, %s3459_s23  }
  0x20   : > { %s5308_s11 = scalar_select %p3575_p13, 1, 0 }
  0x21   : > { %p3100_p1 = pneg %p3575_p13  ;;  %s266_s16 = sand.u32 1, %s3463_s24  }
  0x22   : > { %s3251_s17 = scalar_lea.vmem %s221_s13, 10240  ;;  %p3259_p10 = scmp.lt.s32.totalorder %s221_s13, %s221_s13 }
  0x23   : > { %p3583_p2 = pnand %p3100_p1, %p5201_p4  ;;  %p3252_p7 = scmp.ne.s32.totalorder %s221_s13, %s3251_s17 }
  0x24   : > { %p3260_p12 = scmp.lt.s32.totalorder %s3251_s17, %s3251_s17 }
  0x25   : > { %s5309_s14 = scalar_select %p3583_p2, 1, 0 }
  0x26   : > { %p5205_p3 = pneg %p3583_p2  ;;  %p3261_p1 = por %p3260_p12, %p3259_p10 }
  0x28   : > { %p3254_p8 = pnand %p3252_p7, %p5205_p3 }
  0x2a   : > { %p3255_p9 = pneg %p3254_p8 }
  0x2c   : > { %p3262_p4 = pnand %p3261_p1, %p3255_p9 }
  0x2e   : > { %3265 = shalt.err (!%p3262_p4)
}
  0x2f   : > { %s3466_s18 = smov 640   ;;  %s3467_s19 = smov 40  }
  0x30   : > { %s5310_s4 = sld [smem:[#allocation71_spill]]  ;;  %p3606_p7 = pnand %p3127_p0, %p3554_p5 }
  0x31   : > { %s2529_s29 = sshll.u32 %s3589_s15, 9  ;;  %s2555_s12 = sshll.u32 %s3463_s24, 13 }
  0x32   : > { %s5312_s2 = sld [smem:[#allocation70_spill]]  ;;  %s270_s27 = scalar_lea.vmem [#allocation7], %s2529_s29 }
  0x33   : > { %s277_s20 = sshll.u32 %s270_s27, 4  ;;  %s3619_s7 = scalar_lea.sflag [#allocation8], %s266_s16  ;;  %s3617_s20 = int_to_ptr.vmem [resolvable:$true] %s277_s20 }
  0x34   : > { %p3625_p5 = pneg %p3606_p7 }
  0x36   : > { %3106 = dma.hbm_to_vmem [thread:$0]  (!%p3583_p2), %s5310_s4, 10240, %s221_s13, [#allocation11], %s3466_s18, %s3466_s18, %s3467_s19  }
  0x38   : > { %s3615_s23 = scalar_lea.hbm %s5312_s2, %s2555_s12  ;;  %s3271_s26 = scalar_lea.hbm %s5312_s2, 65536 }
  0x39   : > { %s3266_s13 = scalar_lea.hbm %s3615_s23, 8192  ;;  %p3272_p8 = scmp.lt.s32.totalorder %s3615_s23, %s5312_s2 }
  0x3a   : > { %p3267_p4 = scmp.ne.s32.totalorder %s3615_s23, %s3266_s13  ;;  %p3273_p9 = scmp.lt.s32.totalorder %s3271_s26, %s3266_s13 }
  0x3c   : > { %p3269_p12 = pnand %p3625_p5, %p3267_p4  ;;  %p3274_p10 = por %p3273_p9, %p3272_p8 }
  0x3e   : > { %p3270_p0 = pneg %p3269_p12 }
  0x40   : > { %p3275_p1 = pnand %p3274_p10, %p3270_p0 }
  0x42   : > { %3278 = shalt.err (!%p3275_p1)
}
  0x43   : > { %s3279_s16 = scalar_lea.vmem %s3617_s20, 8192  ;;  %s3468_s12 = smov [#allocation7]  }
  0x44   : > { %p3280_p3 = scmp.ne.s32.totalorder %s3617_s20, %s3279_s16  ;;  %s3284_s17 = sshll.u32 %s3468_s12, 4  ;;  %s3285_s17 = int_to_ptr.vmem [resolvable:$false] %s3284_s17 }
  0x45   : > { %s3286_s30 = scalar_lea.vmem %s3285_s17, 16384  ;;  %p3287_p11 = scmp.lt.s32.totalorder %s3617_s20, %s3285_s17 }
  0x46   : > { %p3282_p4 = pnand %p3280_p3, %p3625_p5  ;;  %p3288_p6 = scmp.lt.s32.totalorder %s3286_s30, %s3279_s16 }
  0x48   : > { %p3283_p12 = pneg %p3282_p4  ;;  %p3289_p13 = por %p3288_p6, %p3287_p11 }
  0x4a   : > { %p3290_p2 = pnand %p3289_p13, %p3283_p12 }
  0x4c   : > { %3293 = shalt.err (!%p3290_p2)
}
  0x4d   : > { %s3469_s13 = smov 256   ;;  %s3470_s19 = smov 16  }
  0x4e   : > { %3116 = dma.hbm_to_vmem [thread:$0]  (!%p3606_p7), %s3615_s23, 8192, %s3617_s20, %s3619_s7, %s3469_s13, %s3469_s13, %s3470_s19  }
  0x4f   : > { %s3471_s26 = smov [#allocation2]   ;;  %p5314_p3 = scmp.ne.s32.totalorder %s5309_s14, 0 }
  0x50   : > { %s5315_s0 = sld [smem:[#allocation68_spill]]  ;;  %s3472_s16 = smov [#allocation12]  }
  0x51   : > { %s234_s12 = sshll.u32 %s3472_s16, 4  ;;  %s2526_s17 = sshll.u32 %s3589_s15, 8  ;;  %s235_s12 = int_to_ptr.vmem [resolvable:$true] %s234_s12 }
  0x52   : > { %s3316_s30 = scalar_lea.vmem %s235_s12, 80  ;;  %p5316_p11 = pneg %p5314_p3 }
  0x53   : > { %p3317_p6 = scmp.ne.s32.totalorder %s235_s12, %s3316_s30  ;;  %s3323_s2 = scalar_lea.vmem %s235_s12, 96 }
  0x54   : > { %p3324_p0 = scmp.lt.s32.totalorder %s235_s12, %s235_s12  ;;  %p3325_p8 = scmp.lt.s32.totalorder %s3323_s2, %s3316_s30 }
  0x55   : > { %p3319_p13 = pnand %p3317_p6, %p5316_p11 }
  0x56   : > { %3103 = dma.hbm_to_smem (!%p5314_p3), %s5315_s0, 16, %s3471_s26, [#allocation5]  }
  0x57   : > { %p3320_p2 = pneg %p3319_p13  ;;  %p3326_p9 = por %p3325_p8, %p3324_p0 }
  0x59   : > { %p3327_p10 = pnand %p3326_p9, %p3320_p2 }
  0x5b   : > { %3330 = shalt.err (!%p3327_p10)
}
  0x5c   : > { %s5317_s5 = sld [smem:[#allocation72_spill]]  ;;  %s2554_s13 = sshll.u32 %s3463_s24, 12 }
  0x5d   : > { %s249_s19 = scalar_lea.vmem [#allocation6], %s2526_s17  ;;  %s5318_s1 = sld [smem:[#allocation69_spill]] }
  0x5e   : > { %s256_s26 = sshll.u32 %s249_s19, 4  ;;  %s246_s2 = scalar_lea.sflag [#allocation3], %s3589_s15  ;;  %s3668_s26 = int_to_ptr.vmem [resolvable:$true] %s256_s26 }
  0x62   : > { %3109 = dma.hbm_to_vmem [thread:$0]  (!%p5314_p3), %s5317_s5, 80, %s235_s12, [#allocation11]  }
  0x63   : > { %s3666_s16 = scalar_lea.hbm %s5318_s1, %s2554_s13  ;;  %s3336_s17 = scalar_lea.hbm %s5318_s1, 32768 }
  0x64   : > { %s3331_s14 = scalar_lea.hbm %s3666_s16, 4096  ;;  %p3337_p3 = scmp.lt.s32.totalorder %s3666_s16, %s5318_s1 }
  0x65   : > { %p3332_p1 = scmp.ne.s32.totalorder %s3666_s16, %s3331_s14  ;;  %p3338_p6 = scmp.lt.s32.totalorder %s3336_s17, %s3331_s14 }
  0x67   : > { %p3334_p4 = pnand %p3332_p1, %p3625_p5  ;;  %p3339_p11 = por %p3338_p6, %p3337_p3 }
  0x69   : > { %p3335_p12 = pneg %p3334_p4 }
  0x6b   : > { %p3340_p13 = pnand %p3339_p11, %p3335_p12 }
  0x6d   : > { %3343 = shalt.err (!%p3340_p13)
}
  0x6e   : > { %s3344_s13 = scalar_lea.vmem %s3668_s26, 4096  ;;  %s3473_s19 = smov [#allocation6]  }
  0x6f   : > { %p3345_p2 = scmp.ne.s32.totalorder %s3668_s26, %s3344_s13  ;;  %s3349_s27 = sshll.u32 %s3473_s19, 4  ;;  %s3350_s27 = int_to_ptr.vmem [resolvable:$false] %s3349_s27 }
  0x70   : > { %s3351_s29 = scalar_lea.vmem %s3350_s27, 8192  ;;  %p3352_p9 = scmp.lt.s32.totalorder %s3668_s26, %s3350_s27 }
  0x71   : > { %p3347_p0 = pnand %p3345_p2, %p3625_p5  ;;  %p3353_p10 = scmp.lt.s32.totalorder %s3351_s29, %s3344_s13 }
  0x73   : > { %p3348_p8 = pneg %p3347_p0  ;;  %p3354_p1 = por %p3353_p10, %p3352_p9 }
  0x75   : > { %p3355_p4 = pnand %p3354_p1, %p3348_p8 }
  0x77   : > { %3358 = shalt.err (!%p3355_p4)
}
  0x78   : > { %s3474_s14 = smov 128   ;;  %s3475_s12 = smov 8  }
  0x79   : > { %3113 = dma.hbm_to_vmem [thread:$0]  (!%p3606_p7), %s3666_s16, 4096, %s3668_s26, %s246_s2, %s3474_s14, %s3474_s14, %s3475_s12  }
  0x7a   : > { %s2532_s30 = sshll.u32 %s3589_s15, 3  ;;  %s2556_s17 = sshll.u32 %s3463_s24, 7 }
  0x7b   : > { %s297_s13 = scalar_lea.hbm %s5197_s3, %s2556_s17  ;;  %s291_s19 = scalar_lea.vmem [#allocation9], %s2532_s30 }
  0x7c   : > { %s299_s27 = sshll.u32 %s291_s19, 4  ;;  %s3359_s29 = scalar_lea.hbm %s297_s13, 128  ;;  %s300_s27 = int_to_ptr.vmem [resolvable:$true] %s299_s27 }
  0x7d   : > { %p3360_p12 = scmp.ne.s32.totalorder %s297_s13, %s3359_s29  ;;  %s3364_s4 = scalar_lea.hbm %s5197_s3, 1024 }
  0x7e   : > { %p3365_p11 = scmp.lt.s32.totalorder %s297_s13, %s5197_s3  ;;  %p3366_p13 = scmp.lt.s32.totalorder %s3364_s4, %s3359_s29 }
  0x7f   : > { %p3362_p3 = pnand %p3360_p12, %p3625_p5 }
  0x80   : > { %p3367_p2 = por %p3366_p13, %p3365_p11 }
  0x81   : > { %p3363_p6 = pneg %p3362_p3 }
  0x83   : > { %p3368_p0 = pnand %p3367_p2, %p3363_p6 }
  0x85   : > { %3371 = shalt.err (!%p3368_p0)
}
  0x86   : > { %s3372_s15 = scalar_lea.vmem %s300_s27, 128  ;;  %s3476_s16 = smov [#allocation9]  }
  0x87   : > { %p3373_p8 = scmp.ne.s32.totalorder %s300_s27, %s3372_s15  ;;  %s3377_s2 = sshll.u32 %s3476_s16, 4  ;;  %s3378_s2 = int_to_ptr.vmem [resolvable:$false] %s3377_s2 }
  0x88   : > { %s3379_s14 = scalar_lea.vmem %s3378_s2, 256  ;;  %p3380_p1 = scmp.lt.s32.totalorder %s300_s27, %s3378_s2 }
  0x89   : > { %p3375_p9 = pnand %p3373_p8, %p3625_p5  ;;  %p3381_p4 = scmp.lt.s32.totalorder %s3379_s14, %s3372_s15 }
  0x8b   : > { %p3376_p10 = pneg %p3375_p9  ;;  %p3382_p12 = por %p3381_p4, %p3380_p1 }
  0x8d   : > { %p3383_p3 = pnand %p3382_p12, %p3376_p10 }
  0x8f   : > { %3386 = shalt.err (!%p3383_p3)
}
  0x90   : > { %3119 = dma.hbm_to_vmem [thread:$0]  (!%p3606_p7), %s297_s13, 128, %s300_s27, %s3619_s7  }
  0x91   : > { %p5319_p6 = scmp.ne.s32.totalorder %s5308_s11, 0 }
  0x93   : > { %308 = sbr.rel (%p5319_p6) target bundleno = 2477 (0x9ad), region = 44 }
  0x98   : > { %p5320_p11 = scmp.eq.s32.totalorder %s3536_s25, 0 }
  0x9a   : > { %3430 = dma.done.wait (%p5320_p11), [#allocation5], 16   ;;  %p5321_p5 = pmov %p5320_p11 }
  0x9b   : > { %s3718_s0 = sand.u32 1, %s3455_s22   ;;  %p5322_p7 = scmp.ne.s32.totalorder %s5305_s8, 0 }
  0x9c   : > { %3432 = vsyncadd (%p5321_p5), [#allocation5], 4294967280  ;;  %s2537_s1 = sshll.u32 %s3718_s0, 8  ;;  %s315_s4 = scalar_lea.sflag [#allocation3], %s3718_s0 }
  0x9d   : > { %s3722_s5 = scalar_lea.vmem [#allocation6], %s2537_s1 }
  0x9e   : > { %3434 = dma.done.wait (%p5322_p7), %s315_s4, 4096  }
  0x9f   : > { %3436 = vsyncadd (%p5322_p7), %s315_s4, 4294963200  ;;  %s323_s11 = sand.u32 1, %s3536_s25   ;;  %s2538_s28 = sshll.u32 %s3718_s0, 9 }
  0xa0   : > { %s324_s7 = scalar_lea.sflag [#allocation8], %s323_s11  ;;  %s3730_s18 = scalar_lea.vmem [#allocation7], %s2538_s28 }
  0xa1   : > { %3438 = dma.done.wait (%p5322_p7), %s324_s7, 8320  }
  0xa2   : > { %3440 = vsyncadd (%p5322_p7), %s324_s7, 4294958976  ;;  %s2539_s12 = sshll.u32 %s3718_s0, 3  ;;  %p5323_p13 = pmov %p5321_p5 }
  0xa3   : > { %s3737_s30 = scalar_lea.vmem [#allocation9], %s2539_s12 }
  0xa4   : > { %3442 = dma.done.wait (%p5323_p13), [#allocation11], 10320   ;;  %p5324_p2 = pmov %p5321_p5 }
  0xa6   : > { %3444 = vsyncadd (%p5324_p2), [#allocation11], 4294956976 }
  0xa7   : > { %349 = sfence }
  0xa8   : > { %v3744_v0 = vld [vmem:[%s3722_s5 + $0x78] sm:$0xff]  ;;  %v5211_v1 = vmov 0.0   ;;  %v3748_v2 = vld [vmem:[%s3722_s5 + $0x70] sm:$0xff]  ;;  %v3753_v3 = vld [vmem:[%s3722_s5 + $0x68] sm:$0xff]  ;;  %s480_s8 = sld [smem:[#allocation2]]  ;;  %vm3478_vm0 = vmmov 0  }
  0xa9   : > { %532 = vmatprep.subr.mxu0 %v5211_v1  ;;  %v3758_v4 = vld [vmem:[%s3722_s5 + $0x60] sm:$0xff]  ;;  %v3763_v5 = vld [vmem:[%s3722_s5 + $0x58] sm:$0xff]  ;;  %v3768_v6 = vld [vmem:[%s3722_s5 + $0x50] sm:$0xff]  ;;  %s2544_s23 = sld [smem:[#allocation2 + $0x1]]  ;;  %s2542_s27 = sshll.u32 %s3718_s0, 2 }
  0xaa   : > { %533 = vmatpush1.msra.mxu0 %v3744_v0  ;;  %v3772_v7 = vld [vmem:[%s3730_s18 + $0x8] sm:$0xff]  ;;  %v3782_v9 = vld [vmem:[%s3722_s5 + $0x40] sm:$0xff]  ;;  %v3787_v10 = vld [vmem:[%s3722_s5 + $0x38] sm:$0xff]  ;;  %s2546_s13 = sld [smem:[#allocation2 + $0x2]]  ;;  %s2551_s29 = sshll.u32 %s3536_s25, 6 }
  0xab   : > { %534 = vmatprep.subr.mxu0 %v5211_v1  ;;  %v3776_v8 = vld [vmem:[%s3722_s5 + $0x48] sm:$0xff]  ;;  %596 = vmatprep.mubr.f32.mxu0 %v3772_v7  ;;  %v3792_v11 = vld [vmem:[%s3722_s5 + $0x30] sm:$0xff]  ;;  %v3802_v13 = vld [vmem:[%s3722_s5 + $0x20] sm:$0xff]  ;;  %s383_s26 = scalar_lea.vmem [#allocation13], %s2542_s27  ;;  %s5158_s14 = scalar_lea.hbm %s5200_s6, %s2551_s29 }
  0xac   : > { %535 = vmatpush1.msra.mxu0 %v3748_v2  ;;  %v3797_v12 = vld [vmem:[%s3722_s5 + $0x28] sm:$0xff]  ;;  %v3807_v14 = vld [vmem:[%s3722_s5 + $0x18] sm:$0xff]  ;;  %v3812_v15 = vld [vmem:[%s3722_s5 + $0x10] sm:$0xff]  ;;  %s2376_s15 = sshll.u32 %s383_s26, 4  ;;  %s2363_s1 = scalar_lea.sflag [#allocation4], %s3718_s0  ;;  %s2377_s15 = int_to_ptr.vmem [resolvable:$true] %s2376_s15 }
  0xad   : > { %536 = vmatprep.subr.mxu0 %v5211_v1  ;;  %v3817_v16 = vld [vmem:[%s3722_s5 + $0x8] sm:$0xff]  ;;  %v3822_v17 = vld [vmem:[%s3722_s5] sm:$0xff]  ;;  %v3827_v18 = vld [vmem:[%s3722_s5 + $0xf8] sm:$0xff]  ;;  %s3387_s4 = scalar_lea.vmem %s2377_s15, 64  ;;  %p5455_p8 = scmp.ne.s32.totalorder %s5306_s9, 0 }
  0xae   : > { %537 = vmatpush1.msra.mxu0 %v3753_v3  ;;  %v3832_v19 = vld [vmem:[%s3722_s5 + $0xf0] sm:$0xff]  ;;  %v3837_v20 = vld [vmem:[%s3722_s5 + $0xe8] sm:$0xff]  ;;  %v3842_v21 = vld [vmem:[%s3722_s5 + $0xe0] sm:$0xff]  ;;  %s498_s17 = sadd.f32 1.0, %s480_s8  ;;  %p3388_p0 = scmp.ne.s32.totalorder %s2377_s15, %s3387_s4 }
  0xaf   : > { %538 = vmatprep.subr.mxu0 %v5211_v1  ;;  %v3847_v22 = vld [vmem:[%s3722_s5 + $0xd8] sm:$0xff]  ;;  %v3852_v23 = vld [vmem:[%s3722_s5 + $0xd0] sm:$0xff]  ;;  %v3857_v24 = vld [vmem:[%s3722_s5 + $0xc8] sm:$0xff]  ;;  %s1038_s20 = sadd.f32 1.0, %s2544_s23 }
  0xb0   : > { %539 = vmatpush1.msra.mxu0 %v3758_v4  ;;  %v3862_v25 = vld [vmem:[%s3722_s5 + $0xc0] sm:$0xff]  ;;  %v3867_v26 = vld [vmem:[%s3722_s5 + $0xb8] sm:$0xff]  ;;  %v3872_v27 = vld [vmem:[%s3722_s5 + $0xb0] sm:$0xff]  ;;  %s1578_s19 = sadd.f32 1.0, %s2546_s13  ;;  %p3389_p9 = pnand %p3388_p0, %p5455_p8 }
  0xb1   : > { %540 = vmatprep.subr.mxu0 %v5211_v1  ;;  %v3877_v28 = vld [vmem:[%s3722_s5 + $0xa8] sm:$0xff]  ;;  %v3882_v29 = vld [vmem:[%s3722_s5 + $0xa0] sm:$0xff]  ;;  %v3887_v30 = vld [vmem:[%s3722_s5 + $0x98] sm:$0xff] }
  0xb2   : > { %541 = vmatpush1.msra.mxu0 %v3763_v5  ;;  %v3892_v31 = vld [vmem:[%s3722_s5 + $0x90] sm:$0xff]  ;;  %v3897_v32 = vld [vmem:[%s3722_s5 + $0x88] sm:$0xff]  ;;  %v3902_v33 = vld [vmem:[%s3722_s5 + $0x80] sm:$0xff]  ;;  %p3390_p10 = pneg %p3389_p9  ;;  %s3479_s5 = smov [#allocation13]  }
  0xb3   : > { %542 = vmatprep.subr.mxu0 %v5211_v1  ;;  %v496_v34 = vld [vmem:[#allocation10 + $0x258] sm:$0xff]  ;;  %v495_v35 = vld [vmem:[#allocation10 + $0x230] sm:$0xff]  ;;  %v3910_v37 = vld [vmem:[%s3730_s18 + $0x18] sm:$0xff]  ;;  %s3391_s25 = sshll.u32 %s3479_s5, 4  ;;  %s3392_s25 = int_to_ptr.vmem [resolvable:$false] %s3391_s25 }
  0xb4   : > { %543 = vmatpush1.msra.mxu0 %v3768_v6  ;;  %v3906_v36 = vld [vmem:[%s3730_s18] sm:$0xff]  ;;  %2770 = vmatprep.subr.mxu1 %v496_v34  ;;  %v494_v38 = vld [vmem:[#allocation10 + $0x208] sm:$0xff]  ;;  %v493_v39 = vld [vmem:[#allocation10 + $0x1e0] sm:$0xff]  ;;  %s3393_s11 = scalar_lea.vmem %s3392_s25, 128  ;;  %p3394_p1 = scmp.lt.s32.totalorder %s2377_s15, %s3392_s25 }
  0xb5   : > { %544 = vmatprep.subr.mxu0 %v5211_v1  ;;  %2771 = vmatpush3.msra.mxu1 %v496_v34  ;;  %v3916_v40 = vld [vmem:[%s3730_s18 + $0x10] sm:$0xff]  ;;  %v3919_v41 = vld [vmem:[%s3730_s18 + $0x28] sm:$0xff]  ;;  %v491_v43 = vld [vmem:[#allocation10 + $0x190] sm:$0xff]  ;;  %p3395_p4 = scmp.lt.s32.totalorder %s3393_s11, %s3387_s4 }
  0xb6   : > { %545 = vmatpush1.msra.mxu0 %v3776_v8  ;;  %2772 = vmatprep.subr.mxu1 %v495_v35  ;;  %v492_v42 = vld [vmem:[#allocation10 + $0x1b8] sm:$0xff]  ;;  %v3924_v44 = vld [vmem:[%s3730_s18 + $0x20] sm:$0xff]  ;;  %v3927_v45 = vld [vmem:[%s3730_s18 + $0x38] sm:$0xff] }
  0xb7   : > { %546 = vmatprep.subr.mxu0 %v5211_v1  ;;  %2773 = vmatpush3.msra.mxu1 %v495_v35  ;;  %v490_v46 = vld [vmem:[#allocation10 + $0x168] sm:$0xff]  ;;  %v489_v47 = vld [vmem:[#allocation10 + $0x140] sm:$0xff]  ;;  %v3935_v49 = vld [vmem:[%s3730_s18 + $0x48] sm:$0xff]  ;;  %p3396_p12 = por %p3395_p4, %p3394_p1 }
  0xb8   : > { %547 = vmatpush1.msra.mxu0 %v3782_v9  ;;  %2774 = vmatprep.subr.mxu1 %v494_v38  ;;  %v3932_v48 = vld [vmem:[%s3730_s18 + $0x30] sm:$0xff]  ;;  %v488_v50 = vld [vmem:[#allocation10 + $0x118] sm:$0xff]  ;;  %v487_v51 = vld [vmem:[#allocation10 + $0xf0] sm:$0xff] }
  0xb9   : > { %548 = vmatprep.subr.mxu0 %v5211_v1  ;;  %2775 = vmatpush3.msra.mxu1 %v494_v38  ;;  %v3940_v52 = vld [vmem:[%s3730_s18 + $0x40] sm:$0xff]  ;;  %v3943_v53 = vld [vmem:[%s3730_s18 + $0x58] sm:$0xff]  ;;  %v485_v55 = vld [vmem:[#allocation10 + $0xa0] sm:$0xff]  ;;  %p3397_p3 = pnand %p3396_p12, %p3390_p10 }
  0xba   : > { %549 = vmatpush1.msra.mxu0 %v3787_v10  ;;  %2776 = vmatprep.subr.mxu1 %v493_v39  ;;  %v486_v54 = vld [vmem:[#allocation10 + $0xc8] sm:$0xff]  ;;  %v3948_v56 = vld [vmem:[%s3730_s18 + $0x50] sm:$0xff]  ;;  %v3951_v57 = vld [vmem:[%s3730_s18 + $0x68] sm:$0xff] }
  0xbb   : > { %550 = vmatprep.subr.mxu0 %v5211_v1  ;;  %2777 = vmatpush3.msra.mxu1 %v493_v39  ;;  %v484_v58 = vld [vmem:[#allocation10 + $0x78] sm:$0xff]  ;;  %v3956_v59 = vld [vmem:[%s3730_s18 + $0x60] sm:$0xff]  ;;  %v3959_v60 = vld [vmem:[%s3730_s18 + $0x78] sm:$0xff] }
  0xbc   : > { %551 = vmatpush1.msra.mxu0 %v3792_v11  ;;  %2778 = vmatprep.subr.mxu1 %v492_v42  ;;  %v3964_v61 = vld [vmem:[%s3730_s18 + $0x70] sm:$0xff]  ;;  %v3967_v62 = vld [vmem:[%s3730_s18 + $0x88] sm:$0xff]  ;;  %v3972_v63 = vld [vmem:[%s3730_s18 + $0x80] sm:$0xff] }
  0xbd   : > { %552 = vmatprep.subr.mxu0 %v5211_v1  ;;  %2779 = vmatpush3.msra.mxu1 %v492_v42  ;;  %v3975_v34 = vld [vmem:[%s3730_s18 + $0x98] sm:$0xff]  ;;  %v3980_v35 = vld [vmem:[%s3730_s18 + $0x90] sm:$0xff]  ;;  %v3983_v38 = vld [vmem:[%s3730_s18 + $0xa8] sm:$0xff] }
  0xbe   : > { %553 = vmatpush1.msra.mxu0 %v3797_v12  ;;  %2780 = vmatprep.subr.mxu1 %v491_v43  ;;  %5325 = vst [vmem:[#allocation22_spill] sm:$0xff] %v3975_v34  ;;  %5326 = vst [vmem:[#allocation23_spill] sm:$0xff] %v3980_v35  ;;  %v3988_v39 = vld [vmem:[%s3730_s18 + $0xa0] sm:$0xff]  ;;  %v3991_v42 = vld [vmem:[%s3730_s18 + $0xb8] sm:$0xff] }
  0xbf   : > { %554 = vmatprep.subr.mxu0 %v5211_v1  ;;  %2781 = vmatpush3.msra.mxu1 %v491_v43  ;;  %5327 = vst [vmem:[#allocation24_spill] sm:$0xff] %v3983_v38  ;;  %5328 = vst [vmem:[#allocation25_spill] sm:$0xff] %v3988_v39  ;;  %v3996_v43 = vld [vmem:[%s3730_s18 + $0xb0] sm:$0xff] }
  0xc0   : > { %555 = vmatpush1.msra.mxu0 %v3802_v13  ;;  %2782 = vmatprep.subr.mxu1 %v490_v46  ;;  %5329 = vst [vmem:[#allocation26_spill] sm:$0xff] %v3991_v42  ;;  %5330 = vst [vmem:[#allocation27_spill] sm:$0xff] %v3996_v43 }
  0xc1   : > { %556 = vmatprep.subr.mxu0 %v5211_v1  ;;  %2783 = vmatpush3.msra.mxu1 %v490_v46  ;;  %v3999_v46 = vld [vmem:[%s3730_s18 + $0xc8] sm:$0xff] }
  0xc2   : > { %557 = vmatpush1.msra.mxu0 %v3807_v14  ;;  %2784 = vmatprep.subr.mxu1 %v489_v47  ;;  %5331 = vst [vmem:[#allocation28_spill] sm:$0xff] %v3999_v46 }
  0xc3   : > { %558 = vmatprep.subr.mxu0 %v5211_v1  ;;  %2785 = vmatpush3.msra.mxu1 %v489_v47  ;;  %v4004_v47 = vld [vmem:[%s3730_s18 + $0xc0] sm:$0xff] }
  0xc4   : > { %559 = vmatpush1.msra.mxu0 %v3812_v15  ;;  %2786 = vmatprep.subr.mxu1 %v488_v50  ;;  %5332 = vst [vmem:[#allocation29_spill] sm:$0xff] %v4004_v47 }
  0xc5   : > { %560 = vmatprep.subr.mxu0 %v5211_v1  ;;  %2787 = vmatpush3.msra.mxu1 %v488_v50  ;;  %v4007_v50 = vld [vmem:[%s3730_s18 + $0xd8] sm:$0xff] }
  0xc6   : > { %561 = vmatpush1.msra.mxu0 %v3817_v16  ;;  %2788 = vmatprep.subr.mxu1 %v487_v51  ;;  %5333 = vst [vmem:[#allocation30_spill] sm:$0xff] %v4007_v50 }
  0xc7   : > { %562 = vmatprep.subr.mxu0 %v5211_v1  ;;  %2789 = vmatpush3.msra.mxu1 %v487_v51  ;;  %v4012_v51 = vld [vmem:[%s3730_s18 + $0xd0] sm:$0xff] }
  0xc8   : > { %563 = vmatpush1.msra.mxu0 %v3822_v17  ;;  %2790 = vmatprep.subr.mxu1 %v486_v54  ;;  %5334 = vst [vmem:[#allocation31_spill] sm:$0xff] %v4012_v51 }
  0xc9   : > { %564 = vmatprep.subr.mxu0 %v5211_v1  ;;  %2791 = vmatpush3.msra.mxu1 %v486_v54  ;;  %v4015_v54 = vld [vmem:[%s3730_s18 + $0xe8] sm:$0xff] }
  0xca   : > { %565 = vmatpush2.msra.mxu0 %v3827_v18  ;;  %2792 = vmatprep.subr.mxu1 %v485_v55  ;;  %5335 = vst [vmem:[#allocation32_spill] sm:$0xff] %v4015_v54 }
  0xcb   : > { %566 = vmatprep.subr.mxu0 %v5211_v1  ;;  %2793 = vmatpush3.msra.mxu1 %v485_v55  ;;  %v4020_v55 = vld [vmem:[%s3730_s18 + $0xe0] sm:$0xff] }
  0xcc   : > { %567 = vmatpush2.msra.mxu0 %v3832_v19  ;;  %2794 = vmatprep.subr.mxu1 %v484_v58  ;;  %5336 = vst [vmem:[#allocation33_spill] sm:$0xff] %v4020_v55 }
  0xcd   : > { %568 = vmatprep.subr.mxu0 %v5211_v1  ;;  %2795 = vmatpush3.msra.mxu1 %v484_v58  ;;  %v4023_v58 = vld [vmem:[%s3730_s18 + $0xf8] sm:$0xff] }
  0xce   : > { %569 = vmatpush2.msra.mxu0 %v3837_v20  ;;  %5337 = vst [vmem:[#allocation34_spill] sm:$0xff] %v4023_v58 }
  0xcf   : > { %570 = vmatprep.subr.mxu0 %v5211_v1 }
  0xd0   : > { %571 = vmatpush2.msra.mxu0 %v3842_v21 }
  0xd1   : > { %572 = vmatprep.subr.mxu0 %v5211_v1 }
  0xd2   : > { %573 = vmatpush2.msra.mxu0 %v3847_v22 }
  0xd3   : > { %574 = vmatprep.subr.mxu0 %v5211_v1 }
  0xd4   : > { %575 = vmatpush2.msra.mxu0 %v3852_v23 }
  0xd5   : > { %576 = vmatprep.subr.mxu0 %v5211_v1 }
  0xd6   : > { %577 = vmatpush2.msra.mxu0 %v3857_v24 }
  0xd7   : > { %578 = vmatprep.subr.mxu0 %v5211_v1 }
  0xd8   : > { %579 = vmatpush2.msra.mxu0 %v3862_v25 }
  0xd9   : > { %580 = vmatprep.subr.mxu0 %v5211_v1 }
  0xda   : > { %581 = vmatpush2.msra.mxu0 %v3867_v26 }
  0xdb   : > { %582 = vmatprep.subr.mxu0 %v5211_v1 }
  0xdc   : > { %583 = vmatpush2.msra.mxu0 %v3872_v27 }
  0xdd   : > { %584 = vmatprep.subr.mxu0 %v5211_v1 }
  0xde   : > { %585 = vmatpush2.msra.mxu0 %v3877_v28 }
  0xdf   : > { %586 = vmatprep.subr.mxu0 %v5211_v1 }
  0xe0   : > { %587 = vmatpush2.msra.mxu0 %v3882_v29 }
  0xe1   : > { %588 = vmatprep.subr.mxu0 %v5211_v1 }
  0xe2   : > { %589 = vmatpush2.msra.mxu0 %v3887_v30 }
  0xe3   : > { %590 = vmatprep.subr.mxu0 %v5211_v1 }
  0xe4   : > { %591 = vmatpush2.msra.mxu0 %v3892_v31 }
  0xe5   : > { %592 = vmatprep.subr.mxu0 %v5211_v1 }
  0xe6   : > { %593 = vmatpush2.msra.mxu0 %v3897_v32 }
  0xe7   : > { %594 = vmatprep.subr.mxu0 %v5211_v1  ;;  %v4028_v1 = vld [vmem:[%s3730_s18 + $0xf0] sm:$0xff] }
  0xe8   : > { %595 = vmatpush2.msra.mxu0 %v3902_v33  ;;  %5338 = vst [vmem:[#allocation35_spill] sm:$0xff] %v4028_v1 }
  0xe9   : > { %597 = vmatmul.mubr.f32.vlgmr.msra.gmra.mxu0 %v3906_v36 }
  0xea   : > { %601 = vmatprep.mubr.f32.mxu0 %v3910_v37 }
  0xed   : > { %602 = vmatmul.mubr.f32.gmra.mxu0 %v3916_v40 }
  0xee   : > { %606 = vmatprep.mubr.f32.mxu0 %v3919_v41 }
  0xf1   : > { %607 = vmatmul.mubr.f32.gmra.mxu0 %v3924_v44 }
  0xf2   : > { %611 = vmatprep.mubr.f32.mxu0 %v3927_v45 }
  0xf5   : > { %612 = vmatmul.mubr.f32.gmra.mxu0 %v3932_v48 }
  0xf6   : > { %616 = vmatprep.mubr.f32.mxu0 %v3935_v49 }
  0xf9   : > { %617 = vmatmul.mubr.f32.gmra.mxu0 %v3940_v52 }
  0xfa   : > { %621 = vmatprep.mubr.f32.mxu0 %v3943_v53 }
  0xfd   : > { %622 = vmatmul.mubr.f32.gmra.mxu0 %v3948_v56 }
  0xfe   : > { %626 = vmatprep.mubr.f32.mxu0 %v3951_v57 }
 0x101   : > { %627 = vmatmul.mubr.f32.gmra.mxu0 %v3956_v59 }
 0x102   : > { %631 = vmatprep.mubr.f32.mxu0 %v3959_v60 }
 0x105   : > { %632 = vmatmul.mubr.f32.gmra.mxu0 %v3964_v61 }
 0x106   : > { %636 = vmatprep.mubr.f32.mxu0 %v3967_v62 }
 0x109   : > { %637 = vmatmul.mubr.f32.gmra.mxu0 %v3972_v63 }
 0x10a   : > { %641 = vmatprep.mubr.f32.mxu0 %v3975_v34 }
 0x10d   : > { %642 = vmatmul.mubr.f32.gmra.mxu0 %v3980_v35 }
 0x10e   : > { %646 = vmatprep.mubr.f32.mxu0 %v3983_v38 }
 0x111   : > { %647 = vmatmul.mubr.f32.gmra.mxu0 %v3988_v39 }
 0x112   : > { %651 = vmatprep.mubr.f32.mxu0 %v3991_v42 }
 0x115   : > { %652 = vmatmul.mubr.f32.gmra.mxu0 %v3996_v43 }
 0x116   : > { %656 = vmatprep.mubr.f32.mxu0 %v3999_v46  ;;  %v5346_v46 = vmov 0.0  }
 0x119   : > { %657 = vmatmul.mubr.f32.gmra.mxu0 %v4004_v47  ;;  %v483_v47 = vld [vmem:[#allocation10 + $0x50] sm:$0xff] }
 0x11a   : > { %661 = vmatprep.mubr.f32.mxu0 %v4007_v50  ;;  %v4031_v50 = vld [vmem:[%s3730_s18 + $0x108] sm:$0xff]  ;;  %2796 = vmatprep.subr.mxu1 %v483_v47 }
 0x11b   : > { %5339 = vst [vmem:[#allocation36_spill] sm:$0xff] %v4031_v50  ;;  %2797 = vmatpush3.msra.mxu1 %v483_v47  ;;  %v4061_v47 = vld [vmem:[%s3730_s18 + $0x130] sm:$0xff] }
 0x11c   : > { %5347 = vst [vmem:[#allocation43_spill] sm:$0xff] %v4061_v47 }
 0x11d   : > { %662 = vmatmul.mubr.f32.gmra.mxu0 %v4012_v51  ;;  %v4036_v51 = vld [vmem:[%s3730_s18 + $0x100] sm:$0xff] }
 0x11e   : > { %666 = vmatprep.mubr.f32.mxu0 %v4015_v54  ;;  %5340 = vst [vmem:[#allocation37_spill] sm:$0xff] %v4036_v51  ;;  %v4039_v54 = vld [vmem:[%s3730_s18 + $0x118] sm:$0xff] }
 0x11f   : > { %5341 = vst [vmem:[#allocation38_spill] sm:$0xff] %v4039_v54 }
 0x121   : > { %667 = vmatmul.mubr.f32.gmra.mxu0 %v4020_v55  ;;  %v4047_v55 = vld [vmem:[%s3730_s18 + $0x128] sm:$0xff] }
 0x122   : > { %671 = vmatprep.mubr.f32.mxu0 %v4023_v58  ;;  %v4044_v58 = vld [vmem:[%s3730_s18 + $0x110] sm:$0xff]  ;;  %5343 = vst [vmem:[#allocation40_spill] sm:$0xff] %v4047_v55 }
 0x123   : > { %5342 = vst [vmem:[#allocation39_spill] sm:$0xff] %v4044_v58 }
 0x125   : > { %672 = vmatmul.mubr.f32.gmra.mxu0 %v4028_v1  ;;  %v481_v1 = vld [vmem:[#allocation10] sm:$0xff] }
 0x126   : > { %676 = vmatprep.mubr.f32.mxu0 %v4031_v50  ;;  %v482_v50 = vld [vmem:[#allocation10 + $0x28] sm:$0xff] }
 0x127   : > { %2798 = vmatprep.subr.mxu1 %v482_v50 }
 0x128   : > { %2799 = vmatpush3.msra.mxu1 %v482_v50  ;;  %v4064_v50 = vld [vmem:[%s3730_s18 + $0x148] sm:$0xff] }
 0x129   : > { %677 = vmatmul.mubr.f32.gmra.mxu0 %v4036_v51  ;;  %2800 = vmatprep.subr.mxu1 %v481_v1  ;;  %v4055_v51 = vld [vmem:[%s3730_s18 + $0x138] sm:$0xff]  ;;  %5348 = vst [vmem:[#allocation44_spill] sm:$0xff] %v4064_v50 }
 0x12a   : > { %681 = vmatprep.mubr.f32.mxu0 %v4039_v54  ;;  %v4052_v54 = vld [vmem:[%s3730_s18 + $0x120] sm:$0xff]  ;;  %5345 = vst [vmem:[#allocation42_spill] sm:$0xff] %v4055_v51  ;;  %2801 = vmatpush3.msra.mxu1 %v481_v1  ;;  %v4072_v1 = vld [vmem:[%s3730_s18 + $0x158] sm:$0xff] }
 0x12b   : > { %5344 = vst [vmem:[#allocation41_spill] sm:$0xff] %v4052_v54  ;;  %1072 = vmatprep.subr.mxu1 %v5346_v46  ;;  %5350 = vst [vmem:[#allocation46_spill] sm:$0xff] %v4072_v1 }
 0x12d   : > { %682 = vmatmul.mubr.f32.gmra.mxu0 %v4044_v58  ;;  %v4149_v58 = vld [vmem:[%s3730_s18 + $0x1e0] sm:$0xff] }
 0x12e   : > { %686 = vmatprep.mubr.f32.mxu0 %v4047_v55  ;;  %v4069_v55 = vld [vmem:[%s3730_s18 + $0x140] sm:$0xff]  ;;  %5369 = vst [vmem:[#allocation65_spill] sm:$0xff] %v4149_v58 }
 0x12f   : > { %5349 = vst [vmem:[#allocation45_spill] sm:$0xff] %v4069_v55 }
 0x131   : > { %687 = vmatmul.mubr.f32.gmra.mxu0 %v4052_v54  ;;  %v4080_v54 = vld [vmem:[%s3730_s18 + $0x168] sm:$0xff] }
 0x132   : > { %691 = vmatprep.mubr.f32.mxu0 %v4055_v51  ;;  %v4077_v51 = vld [vmem:[%s3730_s18 + $0x150] sm:$0xff]  ;;  %5352 = vst [vmem:[#allocation48_spill] sm:$0xff] %v4080_v54 }
 0x133   : > { %5351 = vst [vmem:[#allocation47_spill] sm:$0xff] %v4077_v51 }
 0x135   : > { %692 = vmatmul.mubr.f32.gmra.mxu0 %v4061_v47  ;;  %v4088_v47 = vld [vmem:[%s3730_s18 + $0x178] sm:$0xff] }
 0x136   : > { %696 = vmatprep.mubr.f32.mxu0 %v4064_v50  ;;  %v4085_v50 = vld [vmem:[%s3730_s18 + $0x160] sm:$0xff]  ;;  %5354 = vst [vmem:[#allocation50_spill] sm:$0xff] %v4088_v47 }
 0x137   : > { %5353 = vst [vmem:[#allocation49_spill] sm:$0xff] %v4085_v50 }
 0x139   : > { %697 = vmatmul.mubr.f32.gmra.mxu0 %v4069_v55  ;;  %v4096_v55 = vld [vmem:[%s3730_s18 + $0x188] sm:$0xff] }
 0x13a   : > { %701 = vmatprep.mubr.f32.mxu0 %v4072_v1  ;;  %v4093_v1 = vld [vmem:[%s3730_s18 + $0x170] sm:$0xff]  ;;  %5356 = vst [vmem:[#allocation52_spill] sm:$0xff] %v4096_v55 }
 0x13b   : > { %5355 = vst [vmem:[#allocation51_spill] sm:$0xff] %v4093_v1 }
 0x13d   : > { %702 = vmatmul.mubr.f32.gmra.mxu0 %v4077_v51  ;;  %v4104_v51 = vld [vmem:[%s3730_s18 + $0x198] sm:$0xff] }
 0x13e   : > { %706 = vmatprep.mubr.f32.mxu0 %v4080_v54  ;;  %v4101_v54 = vld [vmem:[%s3730_s18 + $0x180] sm:$0xff]  ;;  %5358 = vst [vmem:[#allocation54_spill] sm:$0xff] %v4104_v51 }
 0x13f   : > { %5357 = vst [vmem:[#allocation53_spill] sm:$0xff] %v4101_v54 }
 0x141   : > { %707 = vmatmul.mubr.f32.gmra.mxu0 %v4085_v50  ;;  %v4112_v50 = vld [vmem:[%s3730_s18 + $0x1a8] sm:$0xff] }
 0x142   : > { %711 = vmatprep.mubr.f32.mxu0 %v4088_v47  ;;  %v4109_v47 = vld [vmem:[%s3730_s18 + $0x190] sm:$0xff]  ;;  %5360 = vst [vmem:[#allocation56_spill] sm:$0xff] %v4112_v50 }
 0x143   : > { %5359 = vst [vmem:[#allocation55_spill] sm:$0xff] %v4109_v47 }
 0x145   : > { %712 = vmatmul.mubr.f32.gmra.mxu0 %v4093_v1  ;;  %v4120_v1 = vld [vmem:[%s3730_s18 + $0x1b8] sm:$0xff] }
 0x146   : > { %716 = vmatprep.mubr.f32.mxu0 %v4096_v55  ;;  %v4117_v55 = vld [vmem:[%s3730_s18 + $0x1a0] sm:$0xff]  ;;  %5362 = vst [vmem:[#allocation58_spill] sm:$0xff] %v4120_v1 }
 0x147   : > { %5361 = vst [vmem:[#allocation57_spill] sm:$0xff] %v4117_v55 }
 0x149   : > { %717 = vmatmul.mubr.f32.gmra.mxu0 %v4101_v54  ;;  %v4128_v54 = vld [vmem:[%s3730_s18 + $0x1c8] sm:$0xff] }
 0x14a   : > { %721 = vmatprep.mubr.f32.mxu0 %v4104_v51  ;;  %v4125_v51 = vld [vmem:[%s3730_s18 + $0x1b0] sm:$0xff]  ;;  %5364 = vst [vmem:[#allocation60_spill] sm:$0xff] %v4128_v54 }
 0x14b   : > { %5363 = vst [vmem:[#allocation59_spill] sm:$0xff] %v4125_v51 }
 0x14d   : > { %722 = vmatmul.mubr.f32.gmra.mxu0 %v4109_v47  ;;  %v4136_v47 = vld [vmem:[%s3730_s18 + $0x1d8] sm:$0xff] }
 0x14e   : > { %726 = vmatprep.mubr.f32.mxu0 %v4112_v50  ;;  %v4133_v50 = vld [vmem:[%s3730_s18 + $0x1c0] sm:$0xff]  ;;  %5366 = vst [vmem:[#allocation62_spill] sm:$0xff] %v4136_v47 }
 0x14f   : > { %5365 = vst [vmem:[#allocation61_spill] sm:$0xff] %v4133_v50 }
 0x151   : > { %727 = vmatmul.mubr.f32.gmra.mxu0 %v4117_v55  ;;  %v4141_v55 = vld [vmem:[%s3730_s18 + $0x1d0] sm:$0xff] }
 0x152   : > { %731 = vmatprep.mubr.f32.mxu0 %v4120_v1  ;;  %5367 = vst [vmem:[#allocation63_spill] sm:$0xff] %v4141_v55  ;;  %v4144_v1 = vld [vmem:[%s3730_s18 + $0x1e8] sm:$0xff] }
 0x153   : > { %5368 = vst [vmem:[#allocation64_spill] sm:$0xff] %v4144_v1 }
 0x155   : > { %732 = vmatmul.mubr.f32.gmra.mxu0 %v4125_v51  ;;  %v4152_v51 = vld [vmem:[%s3730_s18 + $0x1f8] sm:$0xff] }
 0x156   : > { %736 = vmatprep.mubr.f32.mxu0 %v4128_v54  ;;  %5370 = vst [vmem:[#allocation66_spill] sm:$0xff] %v4152_v51  ;;  %v4157_v54 = vld [vmem:[%s3730_s18 + $0x1f0] sm:$0xff] }
 0x157   : > { %5371 = vst [vmem:[#allocation67_spill] sm:$0xff] %v4157_v54 }
 0x159   : > { %737 = vmatmul.mubr.f32.gmra.mxu0 %v4133_v50 }
 0x15a   : > { %741 = vmatprep.mubr.f32.mxu0 %v4136_v47  ;;  %v4160_v47 = vstv %s498_s17 }
 0x15b   : > { %v501_v43 = vmul.f32 %v4160_v47, %v3817_v16  ;;  %v502_v39 = vmul.f32 %v4160_v47, %v3812_v15  ;;  %v503_v34 = vmul.f32 %v4160_v47, %v3807_v14  ;;  %v504_v16 = vmul.f32 %v4160_v47, %v3802_v13 }
 0x15c   : > { %v505_v15 = vmul.f32 %v4160_v47, %v3797_v12  ;;  %v506_v14 = vmul.f32 %v4160_v47, %v3792_v11  ;;  %v507_v13 = vmul.f32 %v4160_v47, %v3787_v10  ;;  %v508_v12 = vmul.f32 %v4160_v47, %v3782_v9 }
 0x15d   : > { %742 = vmatmul.mubr.f32.gmra.mxu0 %v4141_v55  ;;  %v500_v55 = vmul.f32 %v4160_v47, %v3822_v17  ;;  %v509_v11 = vmul.f32 %v4160_v47, %v3776_v8  ;;  %v510_v10 = vmul.f32 %v4160_v47, %v3768_v6  ;;  %v511_v9 = vmul.f32 %v4160_v47, %v3763_v5 }
 0x15e   : > { %746 = vmatprep.mubr.f32.mxu0 %v4144_v1  ;;  %v512_v8 = vmul.f32 %v4160_v47, %v3758_v4  ;;  %v513_v6 = vmul.f32 %v4160_v47, %v3753_v3  ;;  %v514_v5 = vmul.f32 %v4160_v47, %v3748_v2  ;;  %v515_v4 = vmul.f32 %v4160_v47, %v3744_v0 }
 0x15f   : > { %v516_v3 = vmul.f32 %v4160_v47, %v3902_v33  ;;  %v517_v2 = vmul.f32 %v4160_v47, %v3897_v32  ;;  %v518_v0 = vmul.f32 %v4160_v47, %v3892_v31  ;;  %v519_v33 = vmul.f32 %v4160_v47, %v3887_v30 }
 0x160   : > { %v520_v32 = vmul.f32 %v4160_v47, %v3882_v29  ;;  %v521_v31 = vmul.f32 %v4160_v47, %v3877_v28  ;;  %v522_v30 = vmul.f32 %v4160_v47, %v3872_v27  ;;  %v523_v29 = vmul.f32 %v4160_v47, %v3867_v26 }
 0x161   : > { %747 = vmatmul.mubr.f32.gmra.mxu0 %v4149_v58  ;;  %v524_v28 = vmul.f32 %v4160_v47, %v3862_v25  ;;  %v525_v27 = vmul.f32 %v4160_v47, %v3857_v24  ;;  %v526_v26 = vmul.f32 %v4160_v47, %v3852_v23  ;;  %v527_v25 = vmul.f32 %v4160_v47, %v3847_v22 }
 0x162   : > { %751 = vmatprep.mubr.f32.mxu0 %v4152_v51  ;;  %v528_v24 = vmul.f32 %v4160_v47, %v3842_v21  ;;  %v529_v23 = vmul.f32 %v4160_v47, %v3837_v20  ;;  %v530_v22 = vmul.f32 %v4160_v47, %v3832_v19  ;;  %v531_v21 = vmul.f32 %v4160_v47, %v3827_v18 }
 0x165   : > { %752 = vmatmul.mubr.f32.gmra.mxu0 %v4157_v54 }
 0x1a9   : > { %v598_v1 = vpop.f32.mrf.mxu0 }
 0x1aa   : > { %v599_v50 = vadd.f32 %v598_v1, %v500_v55 }
 0x1ab   : > { %v600_v42 = vpop.f32.mrf.mxu0 }
 0x1ac   : > { %2802 = vmatprep.mubr.f32.mxu1 %v599_v50 }
 0x1ad   : > { %v603_v58 = vpop.f32.mrf.mxu0 }
 0x1ae   : > { %v604_v51 = vadd.f32 %v603_v58, %v501_v43 }
 0x1af   : > { %v605_v54 = vpop.f32.mrf.mxu0 }
 0x1b0   : > { %2803 = vmatmul.mubr.f32.vlgmr.msra.gmra.mxu1 %v604_v51 }
 0x1b1   : > { %v608_v38 = vpop.f32.mrf.mxu0 }
 0x1b2   : > { %v609_v35 = vadd.f32 %v608_v38, %v502_v39 }
 0x1b3   : > { %v610_v17 = vpop.f32.mrf.mxu0 }
 0x1b4   : > { %2805 = vmatprep.mubr.f32.mxu1 %v609_v35 }
 0x1b5   : > { %v613_v55 = vpop.f32.mrf.mxu0 }
 0x1b6   : > { %v614_v1 = vadd.f32 %v613_v55, %v503_v34 }
 0x1b7   : > { %v615_v42 = vpop.f32.mrf.mxu0 }
 0x1b8   : > { %2806 = vmatmul.mubr.f32.gmra.mxu1 %v614_v1 }
 0x1b9   : > { %v618_v43 = vpop.f32.mrf.mxu0 }
 0x1ba   : > { %v619_v58 = vadd.f32 %v618_v43, %v504_v16 }
 0x1bb   : > { %v620_v51 = vpop.f32.mrf.mxu0 }
 0x1bc   : > { %2808 = vmatprep.mubr.f32.mxu1 %v619_v58 }
 0x1bd   : > { %v623_v38 = vpop.f32.mrf.mxu0 }
 0x1be   : > { %v624_v39 = vadd.f32 %v623_v38, %v505_v15 }
 0x1bf   : > { %v625_v35 = vpop.f32.mrf.mxu0 }
 0x1c0   : > { %2809 = vmatmul.mubr.f32.gmra.mxu1 %v624_v39 }
 0x1c1   : > { %v628_v34 = vpop.f32.mrf.mxu0 }
 0x1c2   : > { %v629_v54 = vadd.f32 %v628_v34, %v506_v14 }
 0x1c3   : > { %v630_v50 = vpop.f32.mrf.mxu0 }
 0x1c4   : > { %2811 = vmatprep.mubr.f32.mxu1 %v629_v54 }
 0x1c5   : > { %v633_v17 = vpop.f32.mrf.mxu0 }
 0x1c6   : > { %v634_v55 = vadd.f32 %v633_v17, %v507_v13 }
 0x1c7   : > { %v635_v1 = vpop.f32.mrf.mxu0 }
 0x1c8   : > { %2812 = vmatmul.mubr.f32.gmra.mxu1 %v634_v55 }
 0x1c9   : > { %v638_v16 = vpop.f32.mrf.mxu0 }
 0x1ca   : > { %v639_v42 = vadd.f32 %v638_v16, %v508_v12 }
 0x1cb   : > { %v640_v43 = vpop.f32.mrf.mxu0 }
 0x1cc   : > { %2814 = vmatprep.mubr.f32.mxu1 %v639_v42 }
 0x1cd   : > { %v643_v58 = vpop.f32.mrf.mxu0 }
 0x1ce   : > { %v644_v15 = vadd.f32 %v643_v58, %v509_v11 }
 0x1cf   : > { %v645_v51 = vpop.f32.mrf.mxu0 }
 0x1d0   : > { %2815 = vmatmul.mubr.f32.gmra.mxu1 %v644_v15 }
 0x1d1   : > { %v648_v38 = vpop.f32.mrf.mxu0 }
 0x1d2   : > { %v649_v39 = vadd.f32 %v648_v38, %v510_v10 }
 0x1d3   : > { %v650_v14 = vpop.f32.mrf.mxu0 }
 0x1d4   : > { %2817 = vmatprep.mubr.f32.mxu1 %v649_v39 }
 0x1d5   : > { %v653_v35 = vpop.f32.mrf.mxu0 }
 0x1d6   : > { %v654_v34 = vadd.f32 %v653_v35, %v511_v9 }
 0x1d7   : > { %v655_v54 = vpop.f32.mrf.mxu0 }
 0x1d8   : > { %2818 = vmatmul.mubr.f32.gmra.mxu1 %v654_v34 }
 0x1d9   : > { %v658_v13 = vpop.f32.mrf.mxu0 }
 0x1da   : > { %v659_v50 = vadd.f32 %v658_v13, %v512_v8 }
 0x1db   : > { %v660_v17 = vpop.f32.mrf.mxu0 }
 0x1dc   : > { %2820 = vmatprep.mubr.f32.mxu1 %v659_v50 }
 0x1dd   : > { %v663_v55 = vpop.f32.mrf.mxu0 }
 0x1de   : > { %v664_v12 = vadd.f32 %v663_v55, %v513_v6 }
 0x1df   : > { %v665_v1 = vpop.f32.mrf.mxu0 }
 0x1e0   : > { %2821 = vmatmul.mubr.f32.gmra.mxu1 %v664_v12 }
 0x1e1   : > { %v668_v16 = vpop.f32.mrf.mxu0 }
 0x1e2   : > { %v669_v42 = vadd.f32 %v668_v16, %v514_v5 }
 0x1e3   : > { %v670_v11 = vpop.f32.mrf.mxu0 }
 0x1e4   : > { %2823 = vmatprep.mubr.f32.mxu1 %v669_v42 }
 0x1e5   : > { %v673_v43 = vpop.f32.mrf.mxu0 }
 0x1e6   : > { %v674_v58 = vadd.f32 %v673_v43, %v515_v4 }
 0x1e7   : > { %v675_v15 = vpop.f32.mrf.mxu0 }
 0x1e8   : > { %2824 = vmatmul.mubr.f32.gmra.mxu1 %v674_v58 }
 0x1e9   : > { %v678_v10 = vpop.f32.mrf.mxu0 }
 0x1ea   : > { %v679_v51 = vadd.f32 %v678_v10, %v516_v3 }
 0x1eb   : > { %v680_v38 = vpop.f32.mrf.mxu0 }
 0x1ec   : > { %2826 = vmatprep.mubr.f32.mxu1 %v679_v51 }
 0x1ed   : > { %v683_v39 = vpop.f32.mrf.mxu0 }
 0x1ee   : > { %v684_v9 = vadd.f32 %v683_v39, %v517_v2 }
 0x1ef   : > { %v685_v14 = vpop.f32.mrf.mxu0 }
 0x1f0   : > { %2827 = vmatmul.mubr.f32.gmra.mxu1 %v684_v9 }
 0x1f1   : > { %v688_v35 = vpop.f32.mrf.mxu0 }
 0x1f2   : > { %v689_v34 = vadd.f32 %v688_v35, %v518_v0 }
 0x1f3   : > { %v690_v8 = vpop.f32.mrf.mxu0 }
 0x1f4   : > { %2829 = vmatprep.mubr.f32.mxu1 %v689_v34 }
 0x1f5   : > { %v693_v54 = vpop.f32.mrf.mxu0 }
 0x1f6   : > { %v694_v13 = vadd.f32 %v693_v54, %v519_v33 }
 0x1f7   : > { %v695_v50 = vpop.f32.mrf.mxu0 }
 0x1f8   : > { %2830 = vmatmul.mubr.f32.gmra.mxu1 %v694_v13 }
 0x1f9   : > { %v698_v6 = vpop.f32.mrf.mxu0 }
 0x1fa   : > { %v699_v17 = vadd.f32 %v698_v6, %v520_v32 }
 0x1fb   : > { %v700_v55 = vpop.f32.mrf.mxu0 }
 0x1fc   : > { %2832 = vmatprep.mubr.f32.mxu1 %v699_v17 }
 0x1fd   : > { %v703_v12 = vpop.f32.mrf.mxu0 }
 0x1fe   : > { %v704_v5 = vadd.f32 %v703_v12, %v521_v31 }
 0x1ff   : > { %v705_v1 = vpop.f32.mrf.mxu0 }
 0x200   : > { %2833 = vmatmul.mubr.f32.gmra.mxu1 %v704_v5 }
 0x201   : > { %v708_v16 = vpop.f32.mrf.mxu0 }
 0x202   : > { %v709_v4 = vadd.f32 %v708_v16, %v522_v30 }
 0x203   : > { %v710_v42 = vpop.f32.mrf.mxu0 }
 0x204   : > { %2835 = vmatprep.mubr.f32.mxu1 %v709_v4 }
 0x205   : > { %v713_v11 = vpop.f32.mrf.mxu0 }
 0x206   : > { %v714_v43 = vadd.f32 %v713_v11, %v523_v29 }
 0x207   : > { %v715_v58 = vpop.f32.mrf.mxu0 }
 0x208   : > { %2836 = vmatmul.mubr.f32.gmra.mxu1 %v714_v43 }
 0x209   : > { %v718_v3 = vpop.f32.mrf.mxu0 }
 0x20a   : > { %v719_v15 = vadd.f32 %v718_v3, %v524_v28  ;;  %v4231_v3 = vld [vmem:[#allocation12] ss:$0 sm:$0xff] }
 0x20b   : > { %v720_v10 = vpop.f32.mrf.mxu0 }
 0x20c   : > { %2838 = vmatprep.mubr.f32.mxu1 %v719_v15 }
 0x20d   : > { %v723_v51 = vpop.f32.mrf.mxu0 }
 0x20e   : > { %v724_v2 = vadd.f32 %v723_v51, %v525_v27 }
 0x20f   : > { %v725_v38 = vpop.f32.mrf.mxu0 }
 0x210   : > { %2839 = vmatmul.mubr.f32.gmra.mxu1 %v724_v2 }
 0x211   : > { %v728_v39 = vpop.f32.mrf.mxu0 }
 0x212   : > { %v729_v9 = vadd.f32 %v728_v39, %v526_v26 }
 0x213   : > { %v730_v0 = vpop.f32.mrf.mxu0 }
 0x214   : > { %2841 = vmatprep.mubr.f32.mxu1 %v729_v9 }
 0x215   : > { %v733_v14 = vpop.f32.mrf.mxu0 }
 0x216   : > { %v734_v35 = vadd.f32 %v733_v14, %v527_v25 }
 0x217   : > { %v735_v34 = vpop.f32.mrf.mxu0 }
 0x218   : > { %2842 = vmatmul.mubr.f32.gmra.mxu1 %v734_v35 }
 0x219   : > { %v738_v33 = vpop.f32.mrf.mxu0 }
 0x21a   : > { %v739_v8 = vadd.f32 %v738_v33, %v528_v24 }
 0x21b   : > { %v740_v54 = vpop.f32.mrf.mxu0 }
 0x21c   : > { %2844 = vmatprep.mubr.f32.mxu1 %v739_v8 }
 0x21d   : > { %v743_v13 = vpop.f32.mrf.mxu0 }
 0x21e   : > { %v744_v32 = vadd.f32 %v743_v13, %v529_v23 }
 0x21f   : > { %v745_v50 = vpop.f32.mrf.mxu0 }
 0x220   : > { %2845 = vmatmul.mubr.f32.gmra.mxu1 %v744_v32 }
 0x221   : > { %v748_v6 = vpop.f32.mrf.mxu0 }
 0x222   : > { %v749_v17 = vadd.f32 %v748_v6, %v530_v22 }
 0x223   : > { %v750_v31 = vpop.f32.mrf.mxu0 }
 0x224   : > { %2847 = vmatprep.mubr.f32.mxu1 %v749_v17 }
 0x225   : > { %v753_v55 = vpop.f32.mrf.mxu0 }
 0x226   : > { %v754_v12 = vadd.f32 %v753_v55, %v531_v21 }
 0x227   : > { %v755_v5 = vpop.f32.mrf.mxu0 }
 0x228   : > { %2848 = vmatmul.mubr.f32.gmra.mxu1 %v754_v12 }
 0x229   : > { %1136 = vmatprep.mubr.f32.mxu1 %v3772_v7 }
 0x270   : > { %v4227_v20 = vpop.f32.mrf.mxu1 }
 0x271   : > { %v4326_v5 = vadd.f32 %v4227_v20, %v4231_v3 }
 0x272   : > { %v4229_v30 = vpop.f32.mrf.mxu1 }
 0x273   : > { %v989_v20 = vmax.f32 %v4326_v5, 0.0 }
 0x278   : > { %v2807_v19 = vpop.f32.mrf.mxu1 }
 0x279   : > { %v4309_v17 = vadd.f32 %v2807_v19, %v4231_v3 }
 0x27a   : > { %v839_v1 = vpop.f32.mrf.mxu1 }
 0x27b   : > { %v4316_v31 = vadd.f32 %v4231_v3, %v839_v1  ;;  %v991_v19 = vmax.f32 %v4309_v17, 0.0 }
 0x280   : > { %v2810_v16 = vpop.f32.mrf.mxu1 }
 0x281   : > { %v4293_v13 = vadd.f32 %v2810_v16, %v4231_v3  ;;  %v4336_v16 = vadd.f32 %v4231_v3, %v4229_v30 }
 0x282   : > { %v849_v4 = vpop.f32.mrf.mxu1 }
 0x283   : > { %v4300_v22 = vadd.f32 %v4231_v3, %v849_v4  ;;  %v993_v21 = vmax.f32 %v4293_v13, 0.0  ;;  %v990_v4 = vmax.f32 %v4316_v31, 0.0 }
 0x285   : > { %v992_v55 = vmax.f32 %v4300_v22, 0.0 }
 0x288   : > { %v2813_v29 = vpop.f32.mrf.mxu1 }
 0x289   : > { %v4279_v33 = vadd.f32 %v2813_v29, %v4231_v3 }
 0x28a   : > { %v859_v42 = vpop.f32.mrf.mxu1 }
 0x28b   : > { %v4286_v23 = vadd.f32 %v4231_v3, %v859_v42  ;;  %v5267_v32 = vmax.f32 %v4279_v33, 0.0  ;;  %v988_v42 = vmax.f32 %v4336_v16, 0.0 }
 0x28d   : > { %v5280_v50 = vmax.f32 %v4286_v23, 0.0 }
 0x290   : > { %v2816_v11 = vpop.f32.mrf.mxu1 }
 0x291   : > { %v4265_v14 = vadd.f32 %v2816_v11, %v4231_v3 }
 0x292   : > { %v869_v18 = vpop.f32.mrf.mxu1 }
 0x293   : > { %v4272_v24 = vadd.f32 %v4231_v3, %v869_v18  ;;  %v5265_v8 = vmax.f32 %v4265_v14, 0.0 }
 0x295   : > { %v5266_v54 = vmax.f32 %v4272_v24, 0.0 }
 0x298   : > { %v2819_v47 = vpop.f32.mrf.mxu1 }
 0x299   : > { %v4251_v39 = vadd.f32 %v2819_v47, %v4231_v3 }
 0x29a   : > { %v879_v43 = vpop.f32.mrf.mxu1 }
 0x29b   : > { %v4258_v25 = vadd.f32 %v4231_v3, %v879_v43  ;;  %v5263_v35 = vmax.f32 %v4251_v39, 0.0 }
 0x29d   : > { %v5264_v34 = vmax.f32 %v4258_v25, 0.0 }
 0x2a0   : > { %v2822_v28 = vpop.f32.mrf.mxu1 }
 0x2a1   : > { %v4237_v10 = vadd.f32 %v2822_v28, %v4231_v3 }
 0x2a2   : > { %v889_v58 = vpop.f32.mrf.mxu1 }
 0x2a3   : > { %v4244_v26 = vadd.f32 %v4231_v3, %v889_v58  ;;  %v5261_v9 = vmax.f32 %v4237_v10, 0.0 }
 0x2a5   : > { %v5262_v0 = vmax.f32 %v4244_v26, 0.0 }
 0x2a8   : > { %v2825_v15 = vpop.f32.mrf.mxu1 }
 0x2a9   : > { %v4234_v7 = vadd.f32 %v2825_v15, %v4231_v3 }
 0x2aa   : > { %v899_v27 = vpop.f32.mrf.mxu1 }
 0x2ab   : > { %v5259_v51 = vmax.f32 %v4234_v7, 0.0  ;;  %v4241_v2 = vadd.f32 %v4231_v3, %v899_v27 }
 0x2ad   : > { %v5260_v38 = vmax.f32 %v4241_v2, 0.0  ;;  %1073 = vmatpush1.msra.mxu1 %v5259_v51 }
 0x2ae   : > { %1074 = vmatprep.subr.mxu1 %v5346_v46 }
 0x2af   : > { %1075 = vmatpush1.msra.mxu1 %v5260_v38 }
 0x2b0   : > { %1076 = vmatprep.subr.mxu1 %v5346_v46  ;;  %v4305_v6 = vpop.f32.mrf.mxu1 }
 0x2b1   : > { %1077 = vmatpush1.msra.mxu1 %v5261_v9 }
 0x2b2   : > { %1078 = vmatprep.subr.mxu1 %v5346_v46  ;;  %v4321_v12 = vpop.f32.mrf.mxu1 }
 0x2b3   : > { %1079 = vmatpush1.msra.mxu1 %v5262_v0 }
 0x2b4   : > { %1080 = vmatprep.subr.mxu1 %v5346_v46 }
 0x2b5   : > { %1081 = vmatpush1.msra.mxu1 %v5263_v35 }
 0x2b6   : > { %1082 = vmatprep.subr.mxu1 %v5346_v46 }
 0x2b7   : > { %1083 = vmatpush1.msra.mxu1 %v5264_v34 }
 0x2b8   : > { %1084 = vmatprep.subr.mxu1 %v5346_v46  ;;  %v4331_v1 = vpop.f32.mrf.mxu1 }
 0x2b9   : > { %1085 = vmatpush1.msra.mxu1 %v5265_v8 }
 0x2ba   : > { %1086 = vmatprep.subr.mxu1 %v5346_v46  ;;  %v4345_v29 = vpop.f32.mrf.mxu1 }
 0x2bb   : > { %1087 = vmatpush1.msra.mxu1 %v5266_v54 }
 0x2bc   : > { %1088 = vmatprep.subr.mxu1 %v5346_v46 }
 0x2bd   : > { %1089 = vmatpush1.msra.mxu1 %v5267_v32 }
 0x2be   : > { %1090 = vmatprep.subr.mxu1 %v5346_v46 }
 0x2bf   : > { %1091 = vmatpush1.msra.mxu1 %v5280_v50 }
 0x2c0   : > { %1092 = vmatprep.subr.mxu1 %v5346_v46  ;;  %v2834_v30 = vpop.f32.mrf.mxu1 }
 0x2c1   : > { %1093 = vmatpush1.msra.mxu1 %v993_v21 }
 0x2c2   : > { %1094 = vmatprep.subr.mxu1 %v5346_v46  ;;  %v929_v11 = vpop.f32.mrf.mxu1 }
 0x2c3   : > { %1095 = vmatpush1.msra.mxu1 %v992_v55 }
 0x2c4   : > { %1096 = vmatprep.subr.mxu1 %v5346_v46 }
 0x2c5   : > { %1097 = vmatpush1.msra.mxu1 %v991_v19 }
 0x2c6   : > { %1098 = vmatprep.subr.mxu1 %v5346_v46 }
 0x2c7   : > { %1099 = vmatpush1.msra.mxu1 %v990_v4 }
 0x2c8   : > { %1100 = vmatprep.subr.mxu1 %v5346_v46  ;;  %v2837_v18 = vpop.f32.mrf.mxu1 }
 0x2c9   : > { %1101 = vmatpush1.msra.mxu1 %v989_v20 }
 0x2ca   : > { %1102 = vmatprep.subr.mxu1 %v5346_v46  ;;  %v939_v47 = vpop.f32.mrf.mxu1 }
 0x2cb   : > { %1103 = vmatpush1.msra.mxu1 %v988_v42 }
 0x2cc   : > { %1104 = vmatprep.subr.mxu1 %v5346_v46 }
 0x2d0   : > { %v2840_v43 = vpop.f32.mrf.mxu1 }
 0x2d2   : > { %v949_v28 = vpop.f32.mrf.mxu1 }
 0x2d8   : > { %v2843_v58 = vpop.f32.mrf.mxu1 }
 0x2da   : > { %v959_v15 = vpop.f32.mrf.mxu1 }
 0x2e0   : > { %v2846_v27 = vpop.f32.mrf.mxu1 }
 0x2e1   : > { %v4359_v35 = vadd.f32 %v2846_v27, %v4231_v3 }
 0x2e2   : > { %v969_v51 = vpop.f32.mrf.mxu1 }
 0x2e3   : > { %v4366_v54 = vadd.f32 %v4231_v3, %v969_v51  ;;  %v5270_v27 = vmax.f32 %v4359_v35, 0.0  ;;  %v4380_v51 = vadd.f32 %v4231_v3, %v959_v15  ;;  %v4394_v15 = vadd.f32 %v4231_v3, %v949_v28 }
 0x2e4   : > { %v4408_v28 = vadd.f32 %v4231_v3, %v939_v47  ;;  %v4422_v47 = vadd.f32 %v4231_v3, %v929_v11  ;;  %v4438_v11 = vadd.f32 %v4231_v3, %v4345_v29  ;;  %v4454_v29 = vadd.f32 %v4231_v3, %v4321_v12  ;;  %v1033_v12 = vld [vmem:[#allocation10 + $0x1e8] sm:$0xff] }
 0x2e6   : > { %v1004_v50 = vmax.f32 %v4454_v29, 0.0 }
 0x2e8   : > { %v2849_v38 = vpop.f32.mrf.mxu1 }
 0x2e9   : > { %v4356_v9 = vadd.f32 %v2849_v38, %v4231_v3  ;;  %v4373_v38 = vadd.f32 %v2843_v58, %v4231_v3  ;;  %v4387_v58 = vadd.f32 %v2840_v43, %v4231_v3  ;;  %v4401_v43 = vadd.f32 %v2837_v18, %v4231_v3 }
 0x2ea   : > { %v979_v0 = vpop.f32.mrf.mxu1  ;;  %v4415_v18 = vadd.f32 %v2834_v30, %v4231_v3  ;;  %v4430_v30 = vadd.f32 %v4331_v1, %v4231_v3  ;;  %v4446_v1 = vadd.f32 %v4305_v6, %v4231_v3 }
 0x2eb   : > { %v5268_v34 = vmax.f32 %v4356_v9, 0.0  ;;  %v4363_v8 = vadd.f32 %v4231_v3, %v979_v0  ;;  %v5271_v0 = vmax.f32 %v4366_v54, 0.0  ;;  %v1034_v3 = vld [vmem:[#allocation10 + $0x210] sm:$0xff] }
 0x2ec   : > { %v1005_v6 = vmax.f32 %v4446_v1, 0.0 }
 0x2ed   : > { %v5269_v32 = vmax.f32 %v4363_v8, 0.0  ;;  %1105 = vmatpush2.msra.mxu1 %v5268_v34  ;;  %v5272_v34 = vmax.f32 %v4373_v38, 0.0 }
 0x2ee   : > { %1106 = vmatprep.subr.mxu1 %v5346_v46 }
 0x2ef   : > { %1107 = vmatpush2.msra.mxu1 %v5269_v32  ;;  %v5273_v32 = vmax.f32 %v4380_v51, 0.0 }
 0x2f0   : > { %1108 = vmatprep.subr.mxu1 %v5346_v46 }
 0x2f1   : > { %1109 = vmatpush2.msra.mxu1 %v5270_v27  ;;  %v5274_v27 = vmax.f32 %v4387_v58, 0.0 }
 0x2f2   : > { %1110 = vmatprep.subr.mxu1 %v5346_v46 }
 0x2f3   : > { %1111 = vmatpush2.msra.mxu1 %v5271_v0  ;;  %v5275_v0 = vmax.f32 %v4394_v15, 0.0 }
 0x2f4   : > { %1112 = vmatprep.subr.mxu1 %v5346_v46 }
 0x2f5   : > { %1113 = vmatpush2.msra.mxu1 %v5272_v34  ;;  %v5276_v34 = vmax.f32 %v4401_v43, 0.0 }
 0x2f6   : > { %1114 = vmatprep.subr.mxu1 %v5346_v46 }
 0x2f7   : > { %1115 = vmatpush2.msra.mxu1 %v5273_v32  ;;  %v5277_v32 = vmax.f32 %v4408_v28, 0.0 }
 0x2f8   : > { %1116 = vmatprep.subr.mxu1 %v5346_v46 }
 0x2f9   : > { %1117 = vmatpush2.msra.mxu1 %v5274_v27  ;;  %v5278_v27 = vmax.f32 %v4415_v18, 0.0 }
 0x2fa   : > { %1118 = vmatprep.subr.mxu1 %v5346_v46 }
 0x2fb   : > { %1119 = vmatpush2.msra.mxu1 %v5275_v0  ;;  %v5279_v0 = vmax.f32 %v4422_v47, 0.0 }
 0x2fc   : > { %1120 = vmatprep.subr.mxu1 %v5346_v46 }
 0x2fd   : > { %1121 = vmatpush2.msra.mxu1 %v5276_v34  ;;  %v5281_v34 = vmax.f32 %v4430_v30, 0.0 }
 0x2fe   : > { %1122 = vmatprep.subr.mxu1 %v5346_v46 }
 0x2ff   : > { %1123 = vmatpush2.msra.mxu1 %v5277_v32  ;;  %v5282_v32 = vmax.f32 %v4438_v11, 0.0 }
 0x300   : > { %1124 = vmatprep.subr.mxu1 %v5346_v46 }
 0x301   : > { %1125 = vmatpush2.msra.mxu1 %v5278_v27  ;;  %v1036_v27 = vld [vmem:[#allocation10 + $0x260] sm:$0xff] }
 0x302   : > { %1126 = vmatprep.subr.mxu1 %v5346_v46  ;;  %2850 = vmatprep.subr.mxu0 %v1036_v27 }
 0x303   : > { %1127 = vmatpush2.msra.mxu1 %v5279_v0  ;;  %v1035_v0 = vld [vmem:[#allocation10 + $0x238] sm:$0xff]  ;;  %2851 = vmatpush3.msra.mxu0 %v1036_v27 }
 0x304   : > { %1128 = vmatprep.subr.mxu1 %v5346_v46  ;;  %2852 = vmatprep.subr.mxu0 %v1035_v0  ;;  %v1031_v27 = vld [vmem:[#allocation10 + $0x198] sm:$0xff] }
 0x305   : > { %1129 = vmatpush2.msra.mxu1 %v5281_v34  ;;  %2853 = vmatpush3.msra.mxu0 %v1035_v0  ;;  %v1032_v34 = vld [vmem:[#allocation10 + $0x1c0] sm:$0xff]  ;;  %v5385_v0 = vld [vmem:[#allocation35_spill] sm:$0xff] }
 0x306   : > { %1130 = vmatprep.subr.mxu1 %v5346_v46  ;;  %2854 = vmatprep.subr.mxu0 %v1034_v3 }
 0x307   : > { %1131 = vmatpush2.msra.mxu1 %v5282_v32  ;;  %2855 = vmatpush3.msra.mxu0 %v1034_v3  ;;  %v1030_v32 = vld [vmem:[#allocation10 + $0x170] sm:$0xff]  ;;  %v5386_v3 = vld [vmem:[#allocation36_spill] sm:$0xff] }
 0x308   : > { %1132 = vmatprep.subr.mxu1 %v5346_v46  ;;  %2856 = vmatprep.subr.mxu0 %v1033_v12 }
 0x309   : > { %1133 = vmatpush2.msra.mxu1 %v1005_v6  ;;  %2857 = vmatpush3.msra.mxu0 %v1033_v12  ;;  %v5387_v12 = vld [vmem:[#allocation37_spill] sm:$0xff] }
 0x30a   : > { %1134 = vmatprep.subr.mxu1 %v5346_v46  ;;  %2858 = vmatprep.subr.mxu0 %v1032_v34 }
 0x30b   : > { %1135 = vmatpush2.msra.mxu1 %v1004_v50  ;;  %2859 = vmatpush3.msra.mxu0 %v1032_v34  ;;  %v5383_v34 = vld [vmem:[#allocation33_spill] sm:$0xff] }
 0x30c   : > { %1137 = vmatmul.mubr.f32.vlgmr.msra.gmra.mxu1 %v3906_v36  ;;  %1612 = vmatprep.subr.mxu1 %v5346_v46  ;;  %v1029_v36 = vld [vmem:[#allocation10 + $0x148] sm:$0xff] }
 0x30d   : > { %1141 = vmatprep.mubr.f32.mxu1 %v3910_v37  ;;  %2860 = vmatprep.subr.mxu0 %v1031_v27  ;;  %v1028_v37 = vld [vmem:[#allocation10 + $0x120] sm:$0xff] }
 0x30e   : > { %2861 = vmatpush3.msra.mxu0 %v1031_v27  ;;  %v1023_v27 = vld [vmem:[#allocation10 + $0x58] sm:$0xff] }
 0x30f   : > { %2862 = vmatprep.subr.mxu0 %v1030_v32 }
 0x310   : > { %1142 = vmatmul.mubr.f32.gmra.mxu1 %v3916_v40  ;;  %2863 = vmatpush3.msra.mxu0 %v1030_v32  ;;  %v1027_v40 = vld [vmem:[#allocation10 + $0xf8] sm:$0xff]  ;;  %v5384_v32 = vld [vmem:[#allocation34_spill] sm:$0xff] }
 0x311   : > { %1146 = vmatprep.mubr.f32.mxu1 %v3919_v41  ;;  %2864 = vmatprep.subr.mxu0 %v1029_v36  ;;  %v1026_v41 = vld [vmem:[#allocation10 + $0xd0] sm:$0xff] }
 0x312   : > { %2865 = vmatpush3.msra.mxu0 %v1029_v36  ;;  %v5388_v36 = vld [vmem:[#allocation38_spill] sm:$0xff] }
 0x313   : > { %2866 = vmatprep.subr.mxu0 %v1028_v37 }
 0x314   : > { %1147 = vmatmul.mubr.f32.gmra.mxu1 %v3924_v44  ;;  %2867 = vmatpush3.msra.mxu0 %v1028_v37  ;;  %v1025_v44 = vld [vmem:[#allocation10 + $0xa8] sm:$0xff]  ;;  %v1022_v37 = vld [vmem:[#allocation10 + $0x30] sm:$0xff] }
 0x315   : > { %1151 = vmatprep.mubr.f32.mxu1 %v3927_v45  ;;  %2868 = vmatprep.subr.mxu0 %v1027_v40  ;;  %v1024_v45 = vld [vmem:[#allocation10 + $0x80] sm:$0xff] }
 0x316   : > { %2869 = vmatpush3.msra.mxu0 %v1027_v40  ;;  %v5389_v40 = vld [vmem:[#allocation39_spill] sm:$0xff] }
 0x317   : > { %2870 = vmatprep.subr.mxu0 %v1026_v41 }
 0x318   : > { %1152 = vmatmul.mubr.f32.gmra.mxu1 %v3932_v48  ;;  %2871 = vmatpush3.msra.mxu0 %v1026_v41  ;;  %v5372_v48 = vld [vmem:[#allocation22_spill] sm:$0xff] }
 0x319   : > { %1156 = vmatprep.mubr.f32.mxu1 %v3935_v49  ;;  %2872 = vmatprep.subr.mxu0 %v1025_v44  ;;  %v5373_v49 = vld [vmem:[#allocation23_spill] sm:$0xff]  ;;  %v1021_v41 = vld [vmem:[#allocation10 + $0x8] sm:$0xff] }
 0x31a   : > { %2873 = vmatpush3.msra.mxu0 %v1025_v44  ;;  %v5390_v44 = vld [vmem:[#allocation40_spill] sm:$0xff] }
 0x31b   : > { %2874 = vmatprep.subr.mxu0 %v1024_v45 }
 0x31c   : > { %1157 = vmatmul.mubr.f32.gmra.mxu1 %v3940_v52  ;;  %2875 = vmatpush3.msra.mxu0 %v1024_v45  ;;  %v5374_v52 = vld [vmem:[#allocation24_spill] sm:$0xff]  ;;  %v5391_v45 = vld [vmem:[#allocation41_spill] sm:$0xff] }
 0x31d   : > { %1161 = vmatprep.mubr.f32.mxu1 %v3943_v53  ;;  %v5375_v53 = vld [vmem:[#allocation25_spill] sm:$0xff]  ;;  %2876 = vmatprep.subr.mxu0 %v1023_v27 }
 0x31e   : > { %2877 = vmatpush3.msra.mxu0 %v1023_v27  ;;  %v5408_v27 = vld [vmem:[#allocation58_spill] sm:$0xff] }
 0x31f   : > { %2878 = vmatprep.subr.mxu0 %v1022_v37 }
 0x320   : > { %1162 = vmatmul.mubr.f32.gmra.mxu1 %v3948_v56  ;;  %v5376_v56 = vld [vmem:[#allocation26_spill] sm:$0xff]  ;;  %2879 = vmatpush3.msra.mxu0 %v1022_v37  ;;  %v5410_v37 = vld [vmem:[#allocation60_spill] sm:$0xff] }
 0x321   : > { %1166 = vmatprep.mubr.f32.mxu1 %v3951_v57  ;;  %v5377_v57 = vld [vmem:[#allocation27_spill] sm:$0xff]  ;;  %2880 = vmatprep.subr.mxu0 %v1021_v41 }
 0x322   : > { %2881 = vmatpush3.msra.mxu0 %v1021_v41  ;;  %v5412_v41 = vld [vmem:[#allocation62_spill] sm:$0xff] }
 0x324   : > { %1167 = vmatmul.mubr.f32.gmra.mxu1 %v3956_v59  ;;  %v5378_v59 = vld [vmem:[#allocation28_spill] sm:$0xff] }
 0x325   : > { %1171 = vmatprep.mubr.f32.mxu1 %v3959_v60  ;;  %v5379_v60 = vld [vmem:[#allocation29_spill] sm:$0xff] }
 0x328   : > { %1172 = vmatmul.mubr.f32.gmra.mxu1 %v3964_v61  ;;  %v5380_v61 = vld [vmem:[#allocation30_spill] sm:$0xff] }
 0x329   : > { %1176 = vmatprep.mubr.f32.mxu1 %v3967_v62  ;;  %v5381_v62 = vld [vmem:[#allocation31_spill] sm:$0xff] }
 0x32c   : > { %1177 = vmatmul.mubr.f32.gmra.mxu1 %v3972_v63  ;;  %v5382_v63 = vld [vmem:[#allocation32_spill] sm:$0xff] }
 0x32d   : > { %1181 = vmatprep.mubr.f32.mxu1 %v5372_v48  ;;  %v5392_v48 = vld [vmem:[#allocation42_spill] sm:$0xff] }
 0x330   : > { %1182 = vmatmul.mubr.f32.gmra.mxu1 %v5373_v49  ;;  %v5393_v49 = vld [vmem:[#allocation43_spill] sm:$0xff] }
 0x331   : > { %1186 = vmatprep.mubr.f32.mxu1 %v5374_v52  ;;  %v5394_v52 = vld [vmem:[#allocation44_spill] sm:$0xff] }
 0x334   : > { %1187 = vmatmul.mubr.f32.gmra.mxu1 %v5375_v53  ;;  %v5395_v53 = vld [vmem:[#allocation45_spill] sm:$0xff] }
 0x335   : > { %1191 = vmatprep.mubr.f32.mxu1 %v5376_v56  ;;  %v5396_v56 = vld [vmem:[#allocation46_spill] sm:$0xff] }
 0x338   : > { %1192 = vmatmul.mubr.f32.gmra.mxu1 %v5377_v57  ;;  %v5397_v57 = vld [vmem:[#allocation47_spill] sm:$0xff] }
 0x339   : > { %1196 = vmatprep.mubr.f32.mxu1 %v5378_v59  ;;  %v5398_v59 = vld [vmem:[#allocation48_spill] sm:$0xff] }
 0x33c   : > { %1197 = vmatmul.mubr.f32.gmra.mxu1 %v5379_v60  ;;  %v5399_v60 = vld [vmem:[#allocation49_spill] sm:$0xff] }
 0x33d   : > { %1201 = vmatprep.mubr.f32.mxu1 %v5380_v61  ;;  %v5400_v61 = vld [vmem:[#allocation50_spill] sm:$0xff] }
 0x340   : > { %1202 = vmatmul.mubr.f32.gmra.mxu1 %v5381_v62  ;;  %v5401_v62 = vld [vmem:[#allocation51_spill] sm:$0xff] }
 0x341   : > { %1206 = vmatprep.mubr.f32.mxu1 %v5382_v63  ;;  %v5402_v63 = vld [vmem:[#allocation52_spill] sm:$0xff] }
 0x344   : > { %1207 = vmatmul.mubr.f32.gmra.mxu1 %v5383_v34  ;;  %v5403_v34 = vld [vmem:[#allocation53_spill] sm:$0xff] }
 0x345   : > { %1211 = vmatprep.mubr.f32.mxu1 %v5384_v32  ;;  %v5404_v32 = vld [vmem:[#allocation54_spill] sm:$0xff] }
 0x348   : > { %1212 = vmatmul.mubr.f32.gmra.mxu1 %v5385_v0  ;;  %v5405_v0 = vld [vmem:[#allocation55_spill] sm:$0xff] }
 0x349   : > { %1216 = vmatprep.mubr.f32.mxu1 %v5386_v3  ;;  %v5406_v3 = vld [vmem:[#allocation56_spill] sm:$0xff] }
 0x34c   : > { %1217 = vmatmul.mubr.f32.gmra.mxu1 %v5387_v12  ;;  %v5407_v12 = vld [vmem:[#allocation57_spill] sm:$0xff] }
 0x34d   : > { %1221 = vmatprep.mubr.f32.mxu1 %v5388_v36  ;;  %v5409_v36 = vld [vmem:[#allocation59_spill] sm:$0xff] }
 0x350   : > { %1222 = vmatmul.mubr.f32.gmra.mxu1 %v5389_v40  ;;  %v5411_v40 = vld [vmem:[#allocation61_spill] sm:$0xff] }
 0x351   : > { %1226 = vmatprep.mubr.f32.mxu1 %v5390_v44  ;;  %v5413_v44 = vld [vmem:[#allocation63_spill] sm:$0xff] }
 0x354   : > { %1227 = vmatmul.mubr.f32.gmra.mxu1 %v5391_v45  ;;  %v5414_v45 = vld [vmem:[#allocation64_spill] sm:$0xff] }
 0x355   : > { %1231 = vmatprep.mubr.f32.mxu1 %v5392_v48  ;;  %v5415_v48 = vld [vmem:[#allocation65_spill] sm:$0xff] }
 0x358   : > { %1232 = vmatmul.mubr.f32.gmra.mxu1 %v5393_v49  ;;  %v5416_v49 = vld [vmem:[#allocation66_spill] sm:$0xff] }
 0x359   : > { %1236 = vmatprep.mubr.f32.mxu1 %v5394_v52  ;;  %v5417_v52 = vld [vmem:[#allocation67_spill] sm:$0xff] }
 0x35c   : > { %1237 = vmatmul.mubr.f32.gmra.mxu1 %v5395_v53  ;;  %v3176_v53 = vld [vmem:[%s3730_s18 + $0x8] sm:$0xff] }
 0x35d   : > { %1241 = vmatprep.mubr.f32.mxu1 %v5396_v56  ;;  %v4535_v56 = vstv %s1038_s20 }
 0x360   : > { %1242 = vmatmul.mubr.f32.gmra.mxu1 %v5397_v57  ;;  %v1040_v57 = vmul.f32 %v4535_v56, %v988_v42  ;;  %v1043_v42 = vmul.f32 %v4535_v56, %v991_v19  ;;  %v5418_v19 = vmax.f32 %v4286_v23, 0.0 }
 0x361   : > { %1246 = vmatprep.mubr.f32.mxu1 %v5398_v59 }
 0x364   : > { %1247 = vmatmul.mubr.f32.gmra.mxu1 %v5399_v60 }
 0x365   : > { %1251 = vmatprep.mubr.f32.mxu1 %v5400_v61 }
 0x368   : > { %1252 = vmatmul.mubr.f32.gmra.mxu1 %v5401_v62  ;;  %v1041_v62 = vmul.f32 %v4535_v56, %v989_v20  ;;  %v1044_v20 = vmul.f32 %v4535_v56, %v992_v55  ;;  %v5419_v55 = vmax.f32 %v4279_v33, 0.0 }
 0x369   : > { %1256 = vmatprep.mubr.f32.mxu1 %v5402_v63 }
 0x36c   : > { %1257 = vmatmul.mubr.f32.gmra.mxu1 %v5403_v34 }
 0x36d   : > { %1261 = vmatprep.mubr.f32.mxu1 %v5404_v32 }
 0x370   : > { %1262 = vmatmul.mubr.f32.gmra.mxu1 %v5405_v0  ;;  %v1042_v0 = vmul.f32 %v4535_v56, %v990_v4  ;;  %v1045_v4 = vmul.f32 %v4535_v56, %v993_v21  ;;  %v5420_v21 = vmax.f32 %v4272_v24, 0.0 }
 0x371   : > { %1266 = vmatprep.mubr.f32.mxu1 %v5406_v3 }
 0x374   : > { %1267 = vmatmul.mubr.f32.gmra.mxu1 %v5407_v12 }
 0x375   : > { %1271 = vmatprep.mubr.f32.mxu1 %v5408_v27 }
 0x378   : > { %1272 = vmatmul.mubr.f32.gmra.mxu1 %v5409_v36 }
 0x379   : > { %1276 = vmatprep.mubr.f32.mxu1 %v5410_v37 }
 0x37c   : > { %1277 = vmatmul.mubr.f32.gmra.mxu1 %v5411_v40 }
 0x37d   : > { %1281 = vmatprep.mubr.f32.mxu1 %v5412_v41 }
 0x380   : > { %1282 = vmatmul.mubr.f32.gmra.mxu1 %v5413_v44 }
 0x381   : > { %1286 = vmatprep.mubr.f32.mxu1 %v5414_v45  ;;  %v1046_v45 = vmul.f32 %v4535_v56, %v5418_v19  ;;  %v5426_v19 = vmax.f32 %v4241_v2, 0.0 }
 0x384   : > { %1287 = vmatmul.mubr.f32.gmra.mxu1 %v5415_v48 }
 0x385   : > { %1291 = vmatprep.mubr.f32.mxu1 %v5416_v49 }
 0x388   : > { %1292 = vmatmul.mubr.f32.gmra.mxu1 %v5417_v52  ;;  %v1047_v52 = vmul.f32 %v4535_v56, %v5419_v55 }
 0x389   : > { %1676 = vmatprep.mubr.f32.mxu1 %v3176_v53 }
 0x3cc   : > { %v1138_v59 = vpop.f32.mrf.mxu1 }
 0x3cd   : > { %v1139_v60 = vadd.f32 %v1138_v59, %v1040_v57  ;;  %v1048_v59 = vmul.f32 %v4535_v56, %v5420_v21 }
 0x3ce   : > { %v1140_v61 = vpop.f32.mrf.mxu1 }
 0x3cf   : > { %2882 = vmatprep.mubr.f32.mxu0 %v1139_v60 }
 0x3d0   : > { %v1143_v63 = vpop.f32.mrf.mxu1 }
 0x3d1   : > { %v1144_v34 = vadd.f32 %v1143_v63, %v1041_v62  ;;  %v5421_v62 = vmax.f32 %v4265_v14, 0.0 }
 0x3d2   : > { %v1145_v32 = vpop.f32.mrf.mxu1 }
 0x3d3   : > { %2883 = vmatmul.mubr.f32.vlgmr.msra.gmra.mxu0 %v1144_v34  ;;  %v1049_v63 = vmul.f32 %v4535_v56, %v5421_v62 }
 0x3d4   : > { %v1148_v3 = vpop.f32.mrf.mxu1 }
 0x3d5   : > { %v1149_v16 = vadd.f32 %v1148_v3, %v1042_v0  ;;  %v5422_v0 = vmax.f32 %v4258_v25, 0.0 }
 0x3d6   : > { %v1150_v12 = vpop.f32.mrf.mxu1 }
 0x3d7   : > { %2885 = vmatprep.mubr.f32.mxu0 %v1149_v16  ;;  %v1050_v3 = vmul.f32 %v4535_v56, %v5422_v0 }
 0x3d8   : > { %v1153_v27 = vpop.f32.mrf.mxu1 }
 0x3d9   : > { %v1154_v5 = vadd.f32 %v1153_v27, %v1043_v42  ;;  %v5423_v42 = vmax.f32 %v4251_v39, 0.0 }
 0x3da   : > { %v1155_v36 = vpop.f32.mrf.mxu1 }
 0x3db   : > { %2886 = vmatmul.mubr.f32.gmra.mxu0 %v1154_v5  ;;  %v1051_v27 = vmul.f32 %v4535_v56, %v5423_v42 }
 0x3dc   : > { %v1158_v37 = vpop.f32.mrf.mxu1 }
 0x3dd   : > { %v1159_v31 = vadd.f32 %v1158_v37, %v1044_v20  ;;  %v5424_v20 = vmax.f32 %v4244_v26, 0.0 }
 0x3de   : > { %v1160_v40 = vpop.f32.mrf.mxu1 }
 0x3df   : > { %2888 = vmatprep.mubr.f32.mxu0 %v1159_v31  ;;  %v1052_v37 = vmul.f32 %v4535_v56, %v5424_v20 }
 0x3e0   : > { %v1163_v41 = vpop.f32.mrf.mxu1 }
 0x3e1   : > { %v1164_v17 = vadd.f32 %v1163_v41, %v1045_v4  ;;  %v5425_v4 = vmax.f32 %v4237_v10, 0.0 }
 0x3e2   : > { %v1165_v44 = vpop.f32.mrf.mxu1 }
 0x3e3   : > { %2889 = vmatmul.mubr.f32.gmra.mxu0 %v1164_v17  ;;  %v1053_v41 = vmul.f32 %v4535_v56, %v5425_v4 }
 0x3e4   : > { %v1168_v48 = vpop.f32.mrf.mxu1 }
 0x3e5   : > { %v1169_v22 = vadd.f32 %v1168_v48, %v1046_v45  ;;  %v1054_v45 = vmul.f32 %v4535_v56, %v5426_v19  ;;  %v5435_v19 = vmax.f32 %v4387_v58, 0.0 }
 0x3e6   : > { %v1170_v49 = vpop.f32.mrf.mxu1 }
 0x3e7   : > { %2891 = vmatprep.mubr.f32.mxu0 %v1169_v22  ;;  %v5427_v49 = vmax.f32 %v4234_v7, 0.0 }
 0x3e8   : > { %v1173_v53 = vpop.f32.mrf.mxu1 }
 0x3e9   : > { %v1174_v13 = vadd.f32 %v1173_v53, %v1047_v52  ;;  %v1055_v55 = vmul.f32 %v4535_v56, %v5427_v49 }
 0x3ea   : > { %v1175_v57 = vpop.f32.mrf.mxu1 }
 0x3eb   : > { %2892 = vmatmul.mubr.f32.gmra.mxu0 %v1174_v13  ;;  %v1056_v13 = vmul.f32 %v4535_v56, %v1004_v50  ;;  %v5429_v50 = vmax.f32 %v4430_v30, 0.0 }
 0x3ec   : > { %v1178_v60 = vpop.f32.mrf.mxu1 }
 0x3ed   : > { %v1179_v23 = vadd.f32 %v1178_v60, %v1048_v59  ;;  %v1057_v59 = vmul.f32 %v4535_v56, %v1005_v6  ;;  %v5430_v6 = vmax.f32 %v4422_v47, 0.0 }
 0x3ee   : > { %v1180_v61 = vpop.f32.mrf.mxu1 }
 0x3ef   : > { %2894 = vmatprep.mubr.f32.mxu0 %v1179_v23  ;;  %v5428_v61 = vmax.f32 %v4438_v11, 0.0 }
 0x3f0   : > { %v1183_v34 = vpop.f32.mrf.mxu1 }
 0x3f1   : > { %v1184_v33 = vadd.f32 %v1183_v34, %v1049_v63  ;;  %v1058_v62 = vmul.f32 %v4535_v56, %v5428_v61 }
 0x3f2   : > { %v1185_v32 = vpop.f32.mrf.mxu1 }
 0x3f3   : > { %2895 = vmatmul.mubr.f32.gmra.mxu0 %v1184_v33  ;;  %v1059_v33 = vmul.f32 %v4535_v56, %v5429_v50 }
 0x3f4   : > { %v1188_v16 = vpop.f32.mrf.mxu1 }
 0x3f5   : > { %v1189_v24 = vadd.f32 %v1188_v16, %v1050_v3  ;;  %v1060_v3 = vmul.f32 %v4535_v56, %v5430_v6 }
 0x3f6   : > { %v1190_v12 = vpop.f32.mrf.mxu1 }
 0x3f7   : > { %2897 = vmatprep.mubr.f32.mxu0 %v1189_v24  ;;  %v5431_v12 = vmax.f32 %v4415_v18, 0.0 }
 0x3f8   : > { %v1193_v5 = vpop.f32.mrf.mxu1 }
 0x3f9   : > { %v1194_v14 = vadd.f32 %v1193_v5, %v1051_v27  ;;  %v1061_v42 = vmul.f32 %v4535_v56, %v5431_v12 }
 0x3fa   : > { %v1195_v36 = vpop.f32.mrf.mxu1 }
 0x3fb   : > { %2898 = vmatmul.mubr.f32.gmra.mxu0 %v1194_v14  ;;  %v5432_v14 = vmax.f32 %v4408_v28, 0.0 }
 0x3fc   : > { %v1198_v31 = vpop.f32.mrf.mxu1 }
 0x3fd   : > { %v1199_v25 = vadd.f32 %v1198_v31, %v1052_v37  ;;  %v1062_v36 = vmul.f32 %v4535_v56, %v5432_v14  ;;  %v5433_v31 = vmax.f32 %v4401_v43, 0.0 }
 0x3fe   : > { %v1200_v40 = vpop.f32.mrf.mxu1 }
 0x3ff   : > { %2900 = vmatprep.mubr.f32.mxu0 %v1199_v25  ;;  %v1063_v25 = vmul.f32 %v4535_v56, %v5433_v31 }
 0x400   : > { %v1203_v17 = vpop.f32.mrf.mxu1 }
 0x401   : > { %v1204_v39 = vadd.f32 %v1203_v17, %v1053_v41  ;;  %v5434_v41 = vmax.f32 %v4394_v15, 0.0 }
 0x402   : > { %v1205_v44 = vpop.f32.mrf.mxu1 }
 0x403   : > { %2901 = vmatmul.mubr.f32.gmra.mxu0 %v1204_v39  ;;  %v1064_v17 = vmul.f32 %v4535_v56, %v5434_v41 }
 0x404   : > { %v1208_v48 = vpop.f32.mrf.mxu1 }
 0x405   : > { %v1209_v26 = vadd.f32 %v1208_v48, %v1054_v45  ;;  %v1065_v45 = vmul.f32 %v4535_v56, %v5435_v19 }
 0x406   : > { %v1210_v22 = vpop.f32.mrf.mxu1 }
 0x407   : > { %2903 = vmatprep.mubr.f32.mxu0 %v1209_v26  ;;  %v5436_v22 = vmax.f32 %v4380_v51, 0.0 }
 0x408   : > { %v1213_v52 = vpop.f32.mrf.mxu1 }
 0x409   : > { %v1214_v10 = vadd.f32 %v1213_v52, %v1055_v55  ;;  %v1066_v49 = vmul.f32 %v4535_v56, %v5436_v22 }
 0x40a   : > { %v1215_v53 = vpop.f32.mrf.mxu1 }
 0x40b   : > { %2904 = vmatmul.mubr.f32.gmra.mxu0 %v1214_v10  ;;  %v5437_v10 = vmax.f32 %v4373_v38, 0.0 }
 0x40c   : > { %v1218_v57 = vpop.f32.mrf.mxu1 }
 0x40d   : > { %v1219_v2 = vadd.f32 %v1218_v57, %v1056_v13  ;;  %v1067_v53 = vmul.f32 %v4535_v56, %v5437_v10 }
 0x40e   : > { %v1220_v21 = vpop.f32.mrf.mxu1 }
 0x40f   : > { %2906 = vmatprep.mubr.f32.mxu0 %v1219_v2  ;;  %v5438_v2 = vmax.f32 %v4366_v54, 0.0 }
 0x410   : > { %v1223_v60 = vpop.f32.mrf.mxu1 }
 0x411   : > { %v1224_v7 = vadd.f32 %v1223_v60, %v1057_v59  ;;  %v1068_v21 = vmul.f32 %v4535_v56, %v5438_v2 }
 0x412   : > { %v1225_v23 = vpop.f32.mrf.mxu1 }
 0x413   : > { %2907 = vmatmul.mubr.f32.gmra.mxu0 %v1224_v7  ;;  %v5439_v7 = vmax.f32 %v4359_v35, 0.0 }
 0x414   : > { %v1228_v63 = vpop.f32.mrf.mxu1 }
 0x415   : > { %v1229_v29 = vadd.f32 %v1228_v63, %v1058_v62  ;;  %v1069_v23 = vmul.f32 %v4535_v56, %v5439_v7  ;;  %v5440_v63 = vmax.f32 %v4363_v8, 0.0 }
 0x416   : > { %v1230_v34 = vpop.f32.mrf.mxu1 }
 0x417   : > { %2909 = vmatprep.mubr.f32.mxu0 %v1229_v29  ;;  %v1070_v29 = vmul.f32 %v4535_v56, %v5440_v63 }
 0x418   : > { %v1233_v32 = vpop.f32.mrf.mxu1 }
 0x419   : > { %v1234_v1 = vadd.f32 %v1233_v32, %v1059_v33  ;;  %v5441_v33 = vmax.f32 %v4356_v9, 0.0 }
 0x41a   : > { %v1235_v0 = vpop.f32.mrf.mxu1 }
 0x41b   : > { %2910 = vmatmul.mubr.f32.gmra.mxu0 %v1234_v1  ;;  %v1071_v32 = vmul.f32 %v4535_v56, %v5441_v33 }
 0x41c   : > { %v1238_v16 = vpop.f32.mrf.mxu1 }
 0x41d   : > { %v1239_v11 = vadd.f32 %v1238_v16, %v1060_v3 }
 0x41e   : > { %v1240_v24 = vpop.f32.mrf.mxu1 }
 0x41f   : > { %2912 = vmatprep.mubr.f32.mxu0 %v1239_v11 }
 0x420   : > { %v1243_v27 = vpop.f32.mrf.mxu1 }
 0x421   : > { %v1244_v30 = vadd.f32 %v1243_v27, %v1061_v42 }
 0x422   : > { %v1245_v5 = vpop.f32.mrf.mxu1 }
 0x423   : > { %2913 = vmatmul.mubr.f32.gmra.mxu0 %v1244_v30 }
 0x424   : > { %v1248_v20 = vpop.f32.mrf.mxu1 }
 0x425   : > { %v1249_v47 = vadd.f32 %v1248_v20, %v1062_v36  ;;  %v4637_v36 = vld [vmem:[#allocation12 + $0x1] ss:$0 sm:$0xff] }
 0x426   : > { %v1250_v37 = vpop.f32.mrf.mxu1 }
 0x427   : > { %2915 = vmatprep.mubr.f32.mxu0 %v1249_v47 }
 0x428   : > { %v1253_v40 = vpop.f32.mrf.mxu1 }
 0x429   : > { %v1254_v18 = vadd.f32 %v1253_v40, %v1063_v25 }
 0x42a   : > { %v1255_v4 = vpop.f32.mrf.mxu1 }
 0x42b   : > { %2916 = vmatmul.mubr.f32.gmra.mxu0 %v1254_v18 }
 0x42c   : > { %v1258_v39 = vpop.f32.mrf.mxu1 }
 0x42d   : > { %v1259_v28 = vadd.f32 %v1258_v39, %v1064_v17 }
 0x42e   : > { %v1260_v44 = vpop.f32.mrf.mxu1 }
 0x42f   : > { %2918 = vmatprep.mubr.f32.mxu0 %v1259_v28 }
 0x430   : > { %v1263_v48 = vpop.f32.mrf.mxu1 }
 0x431   : > { %v1264_v43 = vadd.f32 %v1263_v48, %v1065_v45 }
 0x432   : > { %v1265_v26 = vpop.f32.mrf.mxu1 }
 0x433   : > { %2919 = vmatmul.mubr.f32.gmra.mxu0 %v1264_v43 }
 0x434   : > { %v1268_v55 = vpop.f32.mrf.mxu1 }
 0x435   : > { %v1269_v15 = vadd.f32 %v1268_v55, %v1066_v49 }
 0x436   : > { %v1270_v52 = vpop.f32.mrf.mxu1 }
 0x437   : > { %2921 = vmatprep.mubr.f32.mxu0 %v1269_v15 }
 0x438   : > { %v1273_v13 = vpop.f32.mrf.mxu1 }
 0x439   : > { %v1274_v58 = vadd.f32 %v1273_v13, %v1067_v53 }
 0x43a   : > { %v1275_v57 = vpop.f32.mrf.mxu1 }
 0x43b   : > { %2922 = vmatmul.mubr.f32.gmra.mxu0 %v1274_v58 }
 0x43c   : > { %v1278_v59 = vpop.f32.mrf.mxu1 }
 0x43d   : > { %v1279_v51 = vadd.f32 %v1278_v59, %v1068_v21 }
 0x43e   : > { %v1280_v60 = vpop.f32.mrf.mxu1 }
 0x43f   : > { %2924 = vmatprep.mubr.f32.mxu0 %v1279_v51 }
 0x440   : > { %v1283_v61 = vpop.f32.mrf.mxu1 }
 0x441   : > { %v1284_v38 = vadd.f32 %v1283_v61, %v1069_v23 }
 0x442   : > { %v1285_v62 = vpop.f32.mrf.mxu1 }
 0x443   : > { %2925 = vmatmul.mubr.f32.gmra.mxu0 %v1284_v38 }
 0x444   : > { %v1288_v34 = vpop.f32.mrf.mxu1 }
 0x445   : > { %v1289_v54 = vadd.f32 %v1288_v34, %v1070_v29 }
 0x446   : > { %v1290_v50 = vpop.f32.mrf.mxu1 }
 0x447   : > { %2927 = vmatprep.mubr.f32.mxu0 %v1289_v54 }
 0x448   : > { %v1293_v1 = vpop.f32.mrf.mxu1 }
 0x449   : > { %v1294_v35 = vadd.f32 %v1293_v1, %v1071_v32 }
 0x44a   : > { %v1295_v0 = vpop.f32.mrf.mxu1 }
 0x44b   : > { %2928 = vmatmul.mubr.f32.gmra.mxu0 %v1294_v35 }
 0x493   : > { %v4633_v6 = vpop.f32.mrf.mxu0 }
 0x494   : > { %v4732_v59 = vadd.f32 %v4633_v6, %v4637_v36 }
 0x495   : > { %v4635_v3 = vpop.f32.mrf.mxu0 }
 0x496   : > { %v4742_v7 = vadd.f32 %v4637_v36, %v4635_v3  ;;  %v1529_v61 = vmax.f32 %v4732_v59, 0.0 }
 0x498   : > { %v1528_v62 = vmax.f32 %v4742_v7, 0.0 }
 0x49b   : > { %v2887_v16 = vpop.f32.mrf.mxu0 }
 0x49c   : > { %v4715_v13 = vadd.f32 %v2887_v16, %v4637_v36 }
 0x49d   : > { %v1379_v8 = vpop.f32.mrf.mxu0 }
 0x49e   : > { %v4722_v57 = vadd.f32 %v4637_v36, %v1379_v8  ;;  %v1531_v51 = vmax.f32 %v4715_v13, 0.0 }
 0x4a0   : > { %v1530_v23 = vmax.f32 %v4722_v57, 0.0 }
 0x4a3   : > { %v2890_v11 = vpop.f32.mrf.mxu0 }
 0x4a4   : > { %v4699_v55 = vadd.f32 %v2890_v11, %v4637_v36 }
 0x4a5   : > { %v1389_v24 = vpop.f32.mrf.mxu0 }
 0x4a6   : > { %v4706_v52 = vadd.f32 %v4637_v36, %v1389_v24  ;;  %v1533_v58 = vmax.f32 %v4699_v55, 0.0 }
 0x4a8   : > { %v1532_v2 = vmax.f32 %v4706_v52, 0.0 }
 0x4ab   : > { %v2893_v12 = vpop.f32.mrf.mxu0 }
 0x4ac   : > { %v4685_v43 = vadd.f32 %v2893_v12, %v4637_v36 }
 0x4ad   : > { %v1399_v42 = vpop.f32.mrf.mxu0 }
 0x4ae   : > { %v4692_v22 = vadd.f32 %v4637_v36, %v1399_v42  ;;  %v1535_v15 = vmax.f32 %v4685_v43, 0.0 }
 0x4b0   : > { %v1534_v10 = vmax.f32 %v4692_v22, 0.0 }
 0x4b3   : > { %v2896_v27 = vpop.f32.mrf.mxu0 }
 0x4b4   : > { %v4671_v44 = vadd.f32 %v2896_v27, %v4637_v36 }
 0x4b5   : > { %v1409_v30 = vpop.f32.mrf.mxu0 }
 0x4b6   : > { %v4678_v45 = vadd.f32 %v4637_v36, %v1409_v30  ;;  %v1537_v26 = vmax.f32 %v4671_v44, 0.0 }
 0x4b8   : > { %v1536_v49 = vmax.f32 %v4678_v45, 0.0 }
 0x4bb   : > { %v2899_v5 = vpop.f32.mrf.mxu0 }
 0x4bc   : > { %v4657_v41 = vadd.f32 %v2899_v5, %v4637_v36 }
 0x4bd   : > { %v1419_v9 = vpop.f32.mrf.mxu0 }
 0x4be   : > { %v4664_v39 = vadd.f32 %v4637_v36, %v1419_v9  ;;  %v1539_v19 = vmax.f32 %v4657_v41, 0.0 }
 0x4c0   : > { %v1538_v48 = vmax.f32 %v4664_v39, 0.0 }
 0x4c3   : > { %v2902_v14 = vpop.f32.mrf.mxu0 }
 0x4c4   : > { %v4643_v31 = vadd.f32 %v2902_v14, %v4637_v36 }
 0x4c5   : > { %v1429_v56 = vpop.f32.mrf.mxu0 }
 0x4c6   : > { %v4650_v18 = vadd.f32 %v4637_v36, %v1429_v56  ;;  %v1541_v17 = vmax.f32 %v4643_v31, 0.0 }
 0x4c8   : > { %v1540_v28 = vmax.f32 %v4650_v18, 0.0 }
 0x4cb   : > { %v2905_v20 = vpop.f32.mrf.mxu0 }
 0x4cc   : > { %v4640_v47 = vadd.f32 %v2905_v20, %v4637_v36 }
 0x4cd   : > { %v1439_v37 = vpop.f32.mrf.mxu0 }
 0x4ce   : > { %v1543_v25 = vmax.f32 %v4640_v47, 0.0  ;;  %v4647_v40 = vadd.f32 %v4637_v36, %v1439_v37 }
 0x4d0   : > { %v1542_v4 = vmax.f32 %v4647_v40, 0.0  ;;  %1613 = vmatpush1.msra.mxu1 %v1543_v25 }
 0x4d1   : > { %1614 = vmatprep.subr.mxu1 %v5346_v46 }
 0x4d2   : > { %1615 = vmatpush1.msra.mxu1 %v1542_v4 }
 0x4d3   : > { %1616 = vmatprep.subr.mxu1 %v5346_v46  ;;  %v4711_v53 = vpop.f32.mrf.mxu0 }
 0x4d4   : > { %1617 = vmatpush1.msra.mxu1 %v1541_v17 }
 0x4d5   : > { %1618 = vmatprep.subr.mxu1 %v5346_v46  ;;  %v4727_v21 = vpop.f32.mrf.mxu0 }
 0x4d6   : > { %1619 = vmatpush1.msra.mxu1 %v1540_v28 }
 0x4d7   : > { %1620 = vmatprep.subr.mxu1 %v5346_v46 }
 0x4d8   : > { %1621 = vmatpush1.msra.mxu1 %v1539_v19 }
 0x4d9   : > { %1622 = vmatprep.subr.mxu1 %v5346_v46 }
 0x4da   : > { %1623 = vmatpush1.msra.mxu1 %v1538_v48 }
 0x4db   : > { %1624 = vmatprep.subr.mxu1 %v5346_v46  ;;  %v4737_v60 = vpop.f32.mrf.mxu0 }
 0x4dc   : > { %1625 = vmatpush1.msra.mxu1 %v1537_v26 }
 0x4dd   : > { %1626 = vmatprep.subr.mxu1 %v5346_v46  ;;  %v4751_v38 = vpop.f32.mrf.mxu0 }
 0x4de   : > { %1627 = vmatpush1.msra.mxu1 %v1536_v49 }
 0x4df   : > { %1628 = vmatprep.subr.mxu1 %v5346_v46 }
 0x4e0   : > { %1629 = vmatpush1.msra.mxu1 %v1535_v15 }
 0x4e1   : > { %1630 = vmatprep.subr.mxu1 %v5346_v46 }
 0x4e2   : > { %1631 = vmatpush1.msra.mxu1 %v1534_v10 }
 0x4e3   : > { %1632 = vmatprep.subr.mxu1 %v5346_v46  ;;  %v2914_v63 = vpop.f32.mrf.mxu0 }
 0x4e4   : > { %1633 = vmatpush1.msra.mxu1 %v1533_v58 }
 0x4e5   : > { %1634 = vmatprep.subr.mxu1 %v5346_v46  ;;  %v1469_v29 = vpop.f32.mrf.mxu0 }
 0x4e6   : > { %1635 = vmatpush1.msra.mxu1 %v1532_v2 }
 0x4e7   : > { %1636 = vmatprep.subr.mxu1 %v5346_v46 }
 0x4e8   : > { %1637 = vmatpush1.msra.mxu1 %v1531_v51 }
 0x4e9   : > { %1638 = vmatprep.subr.mxu1 %v5346_v46 }
 0x4ea   : > { %1639 = vmatpush1.msra.mxu1 %v1530_v23 }
 0x4eb   : > { %1640 = vmatprep.subr.mxu1 %v5346_v46  ;;  %v2917_v34 = vpop.f32.mrf.mxu0 }
 0x4ec   : > { %1641 = vmatpush1.msra.mxu1 %v1529_v61 }
 0x4ed   : > { %1642 = vmatprep.subr.mxu1 %v5346_v46  ;;  %v1479_v54 = vpop.f32.mrf.mxu0 }
 0x4ee   : > { %1643 = vmatpush1.msra.mxu1 %v1528_v62 }
 0x4ef   : > { %1644 = vmatprep.subr.mxu1 %v5346_v46 }
 0x4f3   : > { %v2920_v50 = vpop.f32.mrf.mxu0 }
 0x4f4   : > { %v4793_v14 = vadd.f32 %v2920_v50, %v4637_v36  ;;  %v4807_v50 = vadd.f32 %v2917_v34, %v4637_v36  ;;  %v4821_v34 = vadd.f32 %v2914_v63, %v4637_v36  ;;  %v4836_v63 = vadd.f32 %v4737_v60, %v4637_v36 }
 0x4f5   : > { %v1489_v33 = vpop.f32.mrf.mxu0  ;;  %v4852_v60 = vadd.f32 %v4711_v53, %v4637_v36 }
 0x4f6   : > { %v4800_v20 = vadd.f32 %v4637_v36, %v1489_v33  ;;  %v4814_v33 = vadd.f32 %v4637_v36, %v1479_v54  ;;  %v4828_v54 = vadd.f32 %v4637_v36, %v1469_v29  ;;  %v4844_v29 = vadd.f32 %v4637_v36, %v4751_v38 }
 0x4f7   : > { %v4860_v38 = vadd.f32 %v4637_v36, %v4727_v21  ;;  %v1545_v53 = vmax.f32 %v4852_v60, 0.0  ;;  %v1574_v21 = vld [vmem:[#allocation10 + $0x218] sm:$0xff] }
 0x4fb   : > { %v2923_v32 = vpop.f32.mrf.mxu0 }
 0x4fc   : > { %v4779_v27 = vadd.f32 %v2923_v32, %v4637_v36  ;;  %v5289_v32 = vmax.f32 %v4793_v14, 0.0 }
 0x4fd   : > { %v1499_v1 = vpop.f32.mrf.mxu0 }
 0x4fe   : > { %v4786_v5 = vadd.f32 %v4637_v36, %v1499_v1  ;;  %v5287_v56 = vmax.f32 %v4779_v27, 0.0  ;;  %v5290_v1 = vmax.f32 %v4800_v20, 0.0 }
 0x500   : > { %v5288_v37 = vmax.f32 %v4786_v5, 0.0 }
 0x503   : > { %v2926_v35 = vpop.f32.mrf.mxu0 }
 0x504   : > { %v4765_v8 = vadd.f32 %v2926_v35, %v4637_v36  ;;  %v5291_v35 = vmax.f32 %v4807_v50, 0.0 }
 0x505   : > { %v1509_v0 = vpop.f32.mrf.mxu0 }
 0x506   : > { %v4772_v12 = vadd.f32 %v4637_v36, %v1509_v0  ;;  %v5285_v30 = vmax.f32 %v4765_v8, 0.0  ;;  %v5292_v0 = vmax.f32 %v4814_v33, 0.0 }
 0x508   : > { %v5286_v9 = vmax.f32 %v4772_v12, 0.0 }
 0x50b   : > { %v2929_v6 = vpop.f32.mrf.mxu0 }
 0x50c   : > { %v4762_v3 = vadd.f32 %v2929_v6, %v4637_v36  ;;  %v5293_v6 = vmax.f32 %v4821_v34, 0.0 }
 0x50d   : > { %v1519_v16 = vpop.f32.mrf.mxu0 }
 0x50e   : > { %v5283_v11 = vmax.f32 %v4762_v3, 0.0  ;;  %v4769_v24 = vadd.f32 %v4637_v36, %v1519_v16  ;;  %v5294_v16 = vmax.f32 %v4828_v54, 0.0  ;;  %v1544_v36 = vmax.f32 %v4860_v38, 0.0 }
 0x510   : > { %v5284_v42 = vmax.f32 %v4769_v24, 0.0  ;;  %1645 = vmatpush2.msra.mxu1 %v5283_v11  ;;  %v5295_v11 = vmax.f32 %v4836_v63, 0.0 }
 0x511   : > { %1646 = vmatprep.subr.mxu1 %v5346_v46 }
 0x512   : > { %1647 = vmatpush2.msra.mxu1 %v5284_v42  ;;  %v1546_v42 = vmax.f32 %v4844_v29, 0.0 }
 0x513   : > { %1648 = vmatprep.subr.mxu1 %v5346_v46 }
 0x514   : > { %1649 = vmatpush2.msra.mxu1 %v5285_v30  ;;  %v1576_v30 = vld [vmem:[#allocation10 + $0x268] sm:$0xff] }
 0x515   : > { %1650 = vmatprep.subr.mxu1 %v5346_v46  ;;  %2930 = vmatprep.subr.mxu0 %v1576_v30 }
 0x516   : > { %1651 = vmatpush2.msra.mxu1 %v5286_v9  ;;  %v1575_v9 = vld [vmem:[#allocation10 + $0x240] sm:$0xff]  ;;  %2931 = vmatpush3.msra.mxu0 %v1576_v30 }
 0x517   : > { %1652 = vmatprep.subr.mxu1 %v5346_v46  ;;  %2932 = vmatprep.subr.mxu0 %v1575_v9  ;;  %v3179_v30 = vld [vmem:[%s3730_s18 + $0x10] sm:$0xff] }
 0x518   : > { %1653 = vmatpush2.msra.mxu1 %v5287_v56  ;;  %v3177_v56 = vld [vmem:[%s3730_s18] sm:$0xff]  ;;  %2933 = vmatpush3.msra.mxu0 %v1575_v9  ;;  %v1570_v9 = vld [vmem:[#allocation10 + $0x178] sm:$0xff] }
 0x519   : > { %1654 = vmatprep.subr.mxu1 %v5346_v46  ;;  %2934 = vmatprep.subr.mxu0 %v1574_v21 }
 0x51a   : > { %1655 = vmatpush2.msra.mxu1 %v5288_v37  ;;  %v1573_v37 = vld [vmem:[#allocation10 + $0x1f0] sm:$0xff]  ;;  %2935 = vmatpush3.msra.mxu0 %v1574_v21  ;;  %v3182_v21 = vld [vmem:[%s3730_s18 + $0x38] sm:$0xff] }
 0x51b   : > { %1656 = vmatprep.subr.mxu1 %v5346_v46  ;;  %2936 = vmatprep.subr.mxu0 %v1573_v37 }
 0x51c   : > { %1657 = vmatpush2.msra.mxu1 %v5289_v32  ;;  %v3178_v32 = vld [vmem:[%s3730_s18 + $0x18] sm:$0xff]  ;;  %2937 = vmatpush3.msra.mxu0 %v1573_v37  ;;  %v3183_v37 = vld [vmem:[%s3730_s18 + $0x30] sm:$0xff] }
 0x51d   : > { %1658 = vmatprep.subr.mxu1 %v5346_v46 }
 0x51e   : > { %1659 = vmatpush2.msra.mxu1 %v5290_v1  ;;  %v1572_v1 = vld [vmem:[#allocation10 + $0x1c8] sm:$0xff] }
 0x51f   : > { %1660 = vmatprep.subr.mxu1 %v5346_v46  ;;  %2938 = vmatprep.subr.mxu0 %v1572_v1 }
 0x520   : > { %1661 = vmatpush2.msra.mxu1 %v5291_v35  ;;  %v1571_v35 = vld [vmem:[#allocation10 + $0x1a0] sm:$0xff]  ;;  %2939 = vmatpush3.msra.mxu0 %v1572_v1  ;;  %v3184_v1 = vld [vmem:[%s3730_s18 + $0x48] sm:$0xff] }
 0x521   : > { %1662 = vmatprep.subr.mxu1 %v5346_v46  ;;  %2940 = vmatprep.subr.mxu0 %v1571_v35 }
 0x522   : > { %1663 = vmatpush2.msra.mxu1 %v5292_v0  ;;  %v3180_v0 = vld [vmem:[%s3730_s18 + $0x28] sm:$0xff]  ;;  %2941 = vmatpush3.msra.mxu0 %v1571_v35 }
 0x523   : > { %1664 = vmatprep.subr.mxu1 %v5346_v46  ;;  %2942 = vmatprep.subr.mxu0 %v1570_v9  ;;  %v1566_v35 = vld [vmem:[#allocation10 + $0xd8] sm:$0xff] }
 0x524   : > { %1665 = vmatpush2.msra.mxu1 %v5293_v6  ;;  %2943 = vmatpush3.msra.mxu0 %v1570_v9  ;;  %v1565_v9 = vld [vmem:[#allocation10 + $0xb0] sm:$0xff]  ;;  %v3238_v6 = vld [vmem:[%s3730_s18 + $0x1f8] sm:$0xff] }
 0x525   : > { %1666 = vmatprep.subr.mxu1 %v5346_v46 }
 0x526   : > { %1667 = vmatpush2.msra.mxu1 %v5294_v16 }
 0x527   : > { %1668 = vmatprep.subr.mxu1 %v5346_v46 }
 0x528   : > { %1669 = vmatpush2.msra.mxu1 %v5295_v11 }
 0x529   : > { %1670 = vmatprep.subr.mxu1 %v5346_v46 }
 0x52a   : > { %1671 = vmatpush2.msra.mxu1 %v1546_v42 }
 0x52b   : > { %1672 = vmatprep.subr.mxu1 %v5346_v46 }
 0x52c   : > { %1673 = vmatpush2.msra.mxu1 %v1545_v53 }
 0x52d   : > { %1674 = vmatprep.subr.mxu1 %v5346_v46 }
 0x52e   : > { %1675 = vmatpush2.msra.mxu1 %v1544_v36 }
 0x52f   : > { %1677 = vmatmul.mubr.f32.vlgmr.msra.gmra.mxu1 %v3177_v56  ;;  %3045 = vmatprep.subr.mxu1 %v5346_v46  ;;  %v3181_v56 = vld [vmem:[%s3730_s18 + $0x20] sm:$0xff] }
 0x530   : > { %1681 = vmatprep.mubr.f32.mxu1 %v3178_v32  ;;  %v1569_v32 = vld [vmem:[#allocation10 + $0x150] sm:$0xff] }
 0x531   : > { %2944 = vmatprep.subr.mxu0 %v1569_v32 }
 0x532   : > { %2945 = vmatpush3.msra.mxu0 %v1569_v32  ;;  %v1564_v32 = vld [vmem:[#allocation10 + $0x88] sm:$0xff] }
 0x533   : > { %1682 = vmatmul.mubr.f32.gmra.mxu1 %v3179_v30  ;;  %v1568_v30 = vld [vmem:[#allocation10 + $0x128] sm:$0xff] }
 0x534   : > { %1686 = vmatprep.mubr.f32.mxu1 %v3180_v0  ;;  %v1567_v0 = vld [vmem:[#allocation10 + $0x100] sm:$0xff]  ;;  %2946 = vmatprep.subr.mxu0 %v1568_v30 }
 0x535   : > { %2947 = vmatpush3.msra.mxu0 %v1568_v30  ;;  %v3188_v30 = vld [vmem:[%s3730_s18 + $0x68] sm:$0xff] }
 0x536   : > { %2948 = vmatprep.subr.mxu0 %v1567_v0 }
 0x537   : > { %1687 = vmatmul.mubr.f32.gmra.mxu1 %v3181_v56  ;;  %v3185_v56 = vld [vmem:[%s3730_s18 + $0x40] sm:$0xff]  ;;  %2949 = vmatpush3.msra.mxu0 %v1567_v0 }
 0x538   : > { %1691 = vmatprep.mubr.f32.mxu1 %v3182_v21  ;;  %v3186_v21 = vld [vmem:[%s3730_s18 + $0x58] sm:$0xff]  ;;  %2950 = vmatprep.subr.mxu0 %v1566_v35  ;;  %v3189_v0 = vld [vmem:[%s3730_s18 + $0x60] sm:$0xff] }
 0x539   : > { %2951 = vmatpush3.msra.mxu0 %v1566_v35  ;;  %v3191_v35 = vld [vmem:[%s3730_s18 + $0x70] sm:$0xff] }
 0x53a   : > { %2952 = vmatprep.subr.mxu0 %v1565_v9 }
 0x53b   : > { %1692 = vmatmul.mubr.f32.gmra.mxu1 %v3183_v37  ;;  %v3187_v37 = vld [vmem:[%s3730_s18 + $0x50] sm:$0xff]  ;;  %2953 = vmatpush3.msra.mxu0 %v1565_v9  ;;  %v3194_v9 = vld [vmem:[%s3730_s18 + $0x98] sm:$0xff] }
 0x53c   : > { %1696 = vmatprep.mubr.f32.mxu1 %v3184_v1  ;;  %2954 = vmatprep.subr.mxu0 %v1564_v32  ;;  %v3190_v1 = vld [vmem:[%s3730_s18 + $0x78] sm:$0xff] }
 0x53d   : > { %2955 = vmatpush3.msra.mxu0 %v1564_v32  ;;  %v3196_v32 = vld [vmem:[%s3730_s18 + $0xa8] sm:$0xff] }
 0x53f   : > { %1697 = vmatmul.mubr.f32.gmra.mxu1 %v3185_v56  ;;  %v3192_v56 = vld [vmem:[%s3730_s18 + $0x88] sm:$0xff] }
 0x540   : > { %1701 = vmatprep.mubr.f32.mxu1 %v3186_v21  ;;  %v3193_v21 = vld [vmem:[%s3730_s18 + $0x80] sm:$0xff] }
 0x543   : > { %1702 = vmatmul.mubr.f32.gmra.mxu1 %v3187_v37  ;;  %v3195_v37 = vld [vmem:[%s3730_s18 + $0x90] sm:$0xff] }
 0x544   : > { %1706 = vmatprep.mubr.f32.mxu1 %v3188_v30  ;;  %v3197_v30 = vld [vmem:[%s3730_s18 + $0xa0] sm:$0xff] }
 0x547   : > { %1707 = vmatmul.mubr.f32.gmra.mxu1 %v3189_v0  ;;  %v3198_v0 = vld [vmem:[%s3730_s18 + $0xb8] sm:$0xff] }
 0x548   : > { %1711 = vmatprep.mubr.f32.mxu1 %v3190_v1  ;;  %v3199_v1 = vld [vmem:[%s3730_s18 + $0xb0] sm:$0xff] }
 0x54b   : > { %1712 = vmatmul.mubr.f32.gmra.mxu1 %v3191_v35  ;;  %v3200_v35 = vld [vmem:[%s3730_s18 + $0xc8] sm:$0xff] }
 0x54c   : > { %1716 = vmatprep.mubr.f32.mxu1 %v3192_v56  ;;  %v3201_v56 = vld [vmem:[%s3730_s18 + $0xc0] sm:$0xff] }
 0x54f   : > { %1717 = vmatmul.mubr.f32.gmra.mxu1 %v3193_v21  ;;  %v3202_v21 = vld [vmem:[%s3730_s18 + $0xd8] sm:$0xff] }
 0x550   : > { %1721 = vmatprep.mubr.f32.mxu1 %v3194_v9  ;;  %v3203_v9 = vld [vmem:[%s3730_s18 + $0xd0] sm:$0xff] }
 0x553   : > { %1722 = vmatmul.mubr.f32.gmra.mxu1 %v3195_v37  ;;  %v3204_v37 = vld [vmem:[%s3730_s18 + $0xe8] sm:$0xff] }
 0x554   : > { %1726 = vmatprep.mubr.f32.mxu1 %v3196_v32  ;;  %v3205_v32 = vld [vmem:[%s3730_s18 + $0xe0] sm:$0xff] }
 0x557   : > { %1727 = vmatmul.mubr.f32.gmra.mxu1 %v3197_v30  ;;  %v3206_v30 = vld [vmem:[%s3730_s18 + $0xf8] sm:$0xff] }
 0x558   : > { %1731 = vmatprep.mubr.f32.mxu1 %v3198_v0  ;;  %v3207_v0 = vld [vmem:[%s3730_s18 + $0xf0] sm:$0xff] }
 0x55b   : > { %1732 = vmatmul.mubr.f32.gmra.mxu1 %v3199_v1  ;;  %v3208_v1 = vld [vmem:[%s3730_s18 + $0x108] sm:$0xff] }
 0x55c   : > { %1736 = vmatprep.mubr.f32.mxu1 %v3200_v35  ;;  %v3209_v35 = vld [vmem:[%s3730_s18 + $0x100] sm:$0xff] }
 0x55f   : > { %1737 = vmatmul.mubr.f32.gmra.mxu1 %v3201_v56  ;;  %v1563_v56 = vld [vmem:[#allocation10 + $0x60] sm:$0xff] }
 0x560   : > { %1741 = vmatprep.mubr.f32.mxu1 %v3202_v21  ;;  %v3210_v21 = vld [vmem:[%s3730_s18 + $0x118] sm:$0xff]  ;;  %2956 = vmatprep.subr.mxu0 %v1563_v56 }
 0x561   : > { %2957 = vmatpush3.msra.mxu0 %v1563_v56  ;;  %v3216_v56 = vld [vmem:[%s3730_s18 + $0x148] sm:$0xff] }
 0x563   : > { %1742 = vmatmul.mubr.f32.gmra.mxu1 %v3203_v9  ;;  %v1562_v9 = vld [vmem:[#allocation10 + $0x38] sm:$0xff] }
 0x564   : > { %1746 = vmatprep.mubr.f32.mxu1 %v3204_v37  ;;  %2958 = vmatprep.subr.mxu0 %v1562_v9  ;;  %v3211_v37 = vld [vmem:[%s3730_s18 + $0x110] sm:$0xff] }
 0x565   : > { %2959 = vmatpush3.msra.mxu0 %v1562_v9  ;;  %v3218_v9 = vld [vmem:[%s3730_s18 + $0x158] sm:$0xff] }
 0x567   : > { %1747 = vmatmul.mubr.f32.gmra.mxu1 %v3205_v32  ;;  %v1561_v32 = vld [vmem:[#allocation10 + $0x10] sm:$0xff] }
 0x568   : > { %1751 = vmatprep.mubr.f32.mxu1 %v3206_v30  ;;  %v3212_v30 = vld [vmem:[%s3730_s18 + $0x128] sm:$0xff]  ;;  %2960 = vmatprep.subr.mxu0 %v1561_v32 }
 0x569   : > { %2961 = vmatpush3.msra.mxu0 %v1561_v32  ;;  %v3220_v32 = vld [vmem:[%s3730_s18 + $0x168] sm:$0xff] }
 0x56b   : > { %1752 = vmatmul.mubr.f32.gmra.mxu1 %v3207_v0  ;;  %v3213_v0 = vld [vmem:[%s3730_s18 + $0x120] sm:$0xff] }
 0x56c   : > { %1756 = vmatprep.mubr.f32.mxu1 %v3208_v1  ;;  %v3214_v1 = vld [vmem:[%s3730_s18 + $0x138] sm:$0xff] }
 0x56f   : > { %1757 = vmatmul.mubr.f32.gmra.mxu1 %v3209_v35  ;;  %v3215_v35 = vld [vmem:[%s3730_s18 + $0x130] sm:$0xff] }
 0x570   : > { %1761 = vmatprep.mubr.f32.mxu1 %v3210_v21  ;;  %v3217_v21 = vld [vmem:[%s3730_s18 + $0x140] sm:$0xff] }
 0x573   : > { %1762 = vmatmul.mubr.f32.gmra.mxu1 %v3211_v37  ;;  %v3219_v37 = vld [vmem:[%s3730_s18 + $0x150] sm:$0xff] }
 0x574   : > { %1766 = vmatprep.mubr.f32.mxu1 %v3212_v30  ;;  %v3221_v30 = vld [vmem:[%s3730_s18 + $0x160] sm:$0xff] }
 0x577   : > { %1767 = vmatmul.mubr.f32.gmra.mxu1 %v3213_v0  ;;  %v3222_v0 = vld [vmem:[%s3730_s18 + $0x178] sm:$0xff] }
 0x578   : > { %1771 = vmatprep.mubr.f32.mxu1 %v3214_v1  ;;  %v3223_v1 = vld [vmem:[%s3730_s18 + $0x170] sm:$0xff] }
 0x57b   : > { %1772 = vmatmul.mubr.f32.gmra.mxu1 %v3215_v35  ;;  %v3224_v35 = vld [vmem:[%s3730_s18 + $0x188] sm:$0xff] }
 0x57c   : > { %1776 = vmatprep.mubr.f32.mxu1 %v3216_v56  ;;  %v3225_v56 = vld [vmem:[%s3730_s18 + $0x180] sm:$0xff] }
 0x57f   : > { %1777 = vmatmul.mubr.f32.gmra.mxu1 %v3217_v21  ;;  %v3226_v21 = vld [vmem:[%s3730_s18 + $0x198] sm:$0xff] }
 0x580   : > { %1781 = vmatprep.mubr.f32.mxu1 %v3218_v9  ;;  %v3227_v9 = vld [vmem:[%s3730_s18 + $0x190] sm:$0xff] }
 0x583   : > { %1782 = vmatmul.mubr.f32.gmra.mxu1 %v3219_v37  ;;  %v3228_v37 = vld [vmem:[%s3730_s18 + $0x1a8] sm:$0xff] }
 0x584   : > { %1786 = vmatprep.mubr.f32.mxu1 %v3220_v32  ;;  %v3229_v32 = vld [vmem:[%s3730_s18 + $0x1a0] sm:$0xff] }
 0x587   : > { %1787 = vmatmul.mubr.f32.gmra.mxu1 %v3221_v30  ;;  %v3230_v30 = vld [vmem:[%s3730_s18 + $0x1b8] sm:$0xff] }
 0x588   : > { %1791 = vmatprep.mubr.f32.mxu1 %v3222_v0  ;;  %v3231_v0 = vld [vmem:[%s3730_s18 + $0x1b0] sm:$0xff] }
 0x58b   : > { %1792 = vmatmul.mubr.f32.gmra.mxu1 %v3223_v1  ;;  %v3232_v1 = vld [vmem:[%s3730_s18 + $0x1c8] sm:$0xff] }
 0x58c   : > { %1796 = vmatprep.mubr.f32.mxu1 %v3224_v35  ;;  %v3233_v35 = vld [vmem:[%s3730_s18 + $0x1c0] sm:$0xff] }
 0x58f   : > { %1797 = vmatmul.mubr.f32.gmra.mxu1 %v3225_v56  ;;  %v3234_v56 = vld [vmem:[%s3730_s18 + $0x1d8] sm:$0xff] }
 0x590   : > { %1801 = vmatprep.mubr.f32.mxu1 %v3226_v21  ;;  %v3235_v21 = vld [vmem:[%s3730_s18 + $0x1d0] sm:$0xff] }
 0x593   : > { %1802 = vmatmul.mubr.f32.gmra.mxu1 %v3227_v9  ;;  %v3236_v9 = vld [vmem:[%s3730_s18 + $0x1e8] sm:$0xff] }
 0x594   : > { %1806 = vmatprep.mubr.f32.mxu1 %v3228_v37  ;;  %v3237_v37 = vld [vmem:[%s3730_s18 + $0x1e0] sm:$0xff] }
 0x597   : > { %1807 = vmatmul.mubr.f32.gmra.mxu1 %v3229_v32  ;;  %v3239_v32 = vld [vmem:[%s3730_s18 + $0x1f0] sm:$0xff] }
 0x598   : > { %1811 = vmatprep.mubr.f32.mxu1 %v3230_v30  ;;  %v4940_v30 = vstv %s1578_s19 }
 0x59b   : > { %1812 = vmatmul.mubr.f32.gmra.mxu1 %v3231_v0  ;;  %v1580_v0 = vmul.f32 %v4940_v30, %v1528_v62  ;;  %v1583_v62 = vmul.f32 %v4940_v30, %v1531_v51  ;;  %v1586_v51 = vmul.f32 %v4940_v30, %v1534_v10  ;;  %v1589_v10 = vmul.f32 %v4940_v30, %v1537_v26 }
 0x59c   : > { %1816 = vmatprep.mubr.f32.mxu1 %v3232_v1  ;;  %v1592_v26 = vmul.f32 %v4940_v30, %v1540_v28  ;;  %v1595_v28 = vmul.f32 %v4940_v30, %v1543_v25  ;;  %v1598_v25 = vmul.f32 %v4940_v30, %v1546_v42  ;;  %v5444_v42 = vmax.f32 %v4821_v34, 0.0 }
 0x59f   : > { %1817 = vmatmul.mubr.f32.gmra.mxu1 %v3233_v35 }
 0x5a0   : > { %1821 = vmatprep.mubr.f32.mxu1 %v3234_v56 }
 0x5a3   : > { %1822 = vmatmul.mubr.f32.gmra.mxu1 %v3235_v21  ;;  %v1581_v21 = vmul.f32 %v4940_v30, %v1529_v61  ;;  %v1584_v61 = vmul.f32 %v4940_v30, %v1532_v2  ;;  %v1587_v2 = vmul.f32 %v4940_v30, %v1535_v15  ;;  %v1590_v15 = vmul.f32 %v4940_v30, %v1538_v48 }
 0x5a4   : > { %1826 = vmatprep.mubr.f32.mxu1 %v3236_v9  ;;  %v1593_v48 = vmul.f32 %v4940_v30, %v1541_v17  ;;  %v1596_v17 = vmul.f32 %v4940_v30, %v1544_v36  ;;  %v5442_v36 = vmax.f32 %v4836_v63, 0.0 }
 0x5a7   : > { %1827 = vmatmul.mubr.f32.gmra.mxu1 %v3237_v37 }
 0x5a8   : > { %1831 = vmatprep.mubr.f32.mxu1 %v3238_v6 }
 0x5ab   : > { %1832 = vmatmul.mubr.f32.gmra.mxu1 %v3239_v32  ;;  %v1582_v32 = vmul.f32 %v4940_v30, %v1530_v23  ;;  %v1585_v23 = vmul.f32 %v4940_v30, %v1533_v58  ;;  %v1588_v58 = vmul.f32 %v4940_v30, %v1536_v49  ;;  %v1591_v49 = vmul.f32 %v4940_v30, %v1539_v19 }
 0x5ac   : > { %v1594_v19 = vmul.f32 %v4940_v30, %v1542_v4  ;;  %v1597_v4 = vmul.f32 %v4940_v30, %v1545_v53  ;;  %v5443_v53 = vmax.f32 %v4828_v54, 0.0  ;;  %3077 = vmatprep.mubr.msk.f32.mxu1 %vm3478_vm0, %v5346_v46 }
 0x5ef   : > { %v1678_v1 = vpop.f32.mrf.mxu1 }
 0x5f0   : > { %v1679_v35 = vadd.f32 %v1678_v1, %v1580_v0 }
 0x5f1   : > { %v1680_v56 = vpop.f32.mrf.mxu1 }
 0x5f2   : > { %2962 = vmatprep.mubr.f32.mxu0 %v1679_v35 }
 0x5f3   : > { %v1683_v9 = vpop.f32.mrf.mxu1 }
 0x5f4   : > { %v1684_v6 = vadd.f32 %v1683_v9, %v1581_v21 }
 0x5f5   : > { %v1685_v37 = vpop.f32.mrf.mxu1 }
 0x5f6   : > { %2963 = vmatmul.mubr.f32.vlgmr.msra.gmra.mxu0 %v1684_v6 }
 0x5f7   : > { %v1688_v16 = vpop.f32.mrf.mxu1 }
 0x5f8   : > { %v1689_v7 = vadd.f32 %v1688_v16, %v1582_v32 }
 0x5f9   : > { %v1690_v11 = vpop.f32.mrf.mxu1 }
 0x5fa   : > { %2965 = vmatprep.mubr.f32.mxu0 %v1689_v7 }
 0x5fb   : > { %v1693_v0 = vpop.f32.mrf.mxu1 }
 0x5fc   : > { %v1694_v59 = vadd.f32 %v1693_v0, %v1583_v62 }
 0x5fd   : > { %v1695_v1 = vpop.f32.mrf.mxu1 }
 0x5fe   : > { %2966 = vmatmul.mubr.f32.gmra.mxu0 %v1694_v59 }
 0x5ff   : > { %v1698_v35 = vpop.f32.mrf.mxu1 }
 0x600   : > { %v1699_v57 = vadd.f32 %v1698_v35, %v1584_v61 }
 0x601   : > { %v1700_v56 = vpop.f32.mrf.mxu1 }
 0x602   : > { %2968 = vmatprep.mubr.f32.mxu0 %v1699_v57 }
 0x603   : > { %v1703_v11 = vpop.f32.mrf.mxu1 }
 0x604   : > { %v1704_v13 = vadd.f32 %v1703_v11, %v1585_v23 }
 0x605   : > { %v1705_v16 = vpop.f32.mrf.mxu1 }
 0x606   : > { %2969 = vmatmul.mubr.f32.gmra.mxu0 %v1704_v13 }
 0x607   : > { %v1708_v21 = vpop.f32.mrf.mxu1 }
 0x608   : > { %v1709_v52 = vadd.f32 %v1708_v21, %v1586_v51 }
 0x609   : > { %v1710_v9 = vpop.f32.mrf.mxu1 }
 0x60a   : > { %2971 = vmatprep.mubr.f32.mxu0 %v1709_v52 }
 0x60b   : > { %v1713_v6 = vpop.f32.mrf.mxu1 }
 0x60c   : > { %v1714_v55 = vadd.f32 %v1713_v6, %v1587_v2 }
 0x60d   : > { %v1715_v37 = vpop.f32.mrf.mxu1 }
 0x60e   : > { %2972 = vmatmul.mubr.f32.gmra.mxu0 %v1714_v55 }
 0x60f   : > { %v1718_v32 = vpop.f32.mrf.mxu1 }
 0x610   : > { %v1719_v22 = vadd.f32 %v1718_v32, %v1588_v58  ;;  %v1599_v58 = vmul.f32 %v4940_v30, %v5442_v36 }
 0x611   : > { %v1720_v7 = vpop.f32.mrf.mxu1 }
 0x612   : > { %2974 = vmatprep.mubr.f32.mxu0 %v1719_v22  ;;  %v1600_v7 = vmul.f32 %v4940_v30, %v5443_v53  ;;  %v5039_v53 = vld [vmem:[%s3737_s30] sm:$0xff] }
 0x613   : > { %v1723_v62 = vpop.f32.mrf.mxu1 }
 0x614   : > { %v1724_v43 = vadd.f32 %v1723_v62, %v1589_v10 }
 0x615   : > { %v1725_v0 = vpop.f32.mrf.mxu1 }
 0x616   : > { %2975 = vmatmul.mubr.f32.gmra.mxu0 %v1724_v43  ;;  %v1601_v43 = vmul.f32 %v4940_v30, %v5444_v42 }
 0x617   : > { %v1728_v59 = vpop.f32.mrf.mxu1 }
 0x618   : > { %v1729_v45 = vadd.f32 %v1728_v59, %v1590_v15  ;;  %v5445_v59 = vmax.f32 %v4814_v33, 0.0 }
 0x619   : > { %v1730_v1 = vpop.f32.mrf.mxu1 }
 0x61a   : > { %2977 = vmatprep.mubr.f32.mxu0 %v1729_v45  ;;  %v1602_v45 = vmul.f32 %v4940_v30, %v5445_v59 }
 0x61b   : > { %v1733_v61 = vpop.f32.mrf.mxu1 }
 0x61c   : > { %v1734_v44 = vadd.f32 %v1733_v61, %v1591_v49  ;;  %v5446_v61 = vmax.f32 %v4807_v50, 0.0 }
 0x61d   : > { %v1735_v35 = vpop.f32.mrf.mxu1 }
 0x61e   : > { %2978 = vmatmul.mubr.f32.gmra.mxu0 %v1734_v44  ;;  %v1603_v44 = vmul.f32 %v4940_v30, %v5446_v61 }
 0x61f   : > { %v1738_v57 = vpop.f32.mrf.mxu1 }
 0x620   : > { %v1739_v39 = vadd.f32 %v1738_v57, %v1592_v26  ;;  %v5447_v57 = vmax.f32 %v4800_v20, 0.0 }
 0x621   : > { %v1740_v56 = vpop.f32.mrf.mxu1 }
 0x622   : > { %2980 = vmatprep.mubr.f32.mxu0 %v1739_v39  ;;  %v1604_v39 = vmul.f32 %v4940_v30, %v5447_v57 }
 0x623   : > { %v1743_v23 = vpop.f32.mrf.mxu1 }
 0x624   : > { %v1744_v41 = vadd.f32 %v1743_v23, %v1593_v48  ;;  %v5448_v23 = vmax.f32 %v4793_v14, 0.0 }
 0x625   : > { %v1745_v11 = vpop.f32.mrf.mxu1 }
 0x626   : > { %2981 = vmatmul.mubr.f32.gmra.mxu0 %v1744_v41  ;;  %v1605_v41 = vmul.f32 %v4940_v30, %v5448_v23 }
 0x627   : > { %v1748_v13 = vpop.f32.mrf.mxu1 }
 0x628   : > { %v1749_v18 = vadd.f32 %v1748_v13, %v1594_v19  ;;  %v5449_v13 = vmax.f32 %v4786_v5, 0.0 }
 0x629   : > { %v1750_v16 = vpop.f32.mrf.mxu1 }
 0x62a   : > { %2983 = vmatprep.mubr.f32.mxu0 %v1749_v18  ;;  %v1606_v18 = vmul.f32 %v4940_v30, %v5449_v13 }
 0x62b   : > { %v1753_v51 = vpop.f32.mrf.mxu1 }
 0x62c   : > { %v1754_v31 = vadd.f32 %v1753_v51, %v1595_v28  ;;  %v5450_v51 = vmax.f32 %v4779_v27, 0.0 }
 0x62d   : > { %v1755_v21 = vpop.f32.mrf.mxu1 }
 0x62e   : > { %2984 = vmatmul.mubr.f32.gmra.mxu0 %v1754_v31  ;;  %v1607_v31 = vmul.f32 %v4940_v30, %v5450_v51 }
 0x62f   : > { %v1758_v52 = vpop.f32.mrf.mxu1 }
 0x630   : > { %v1759_v40 = vadd.f32 %v1758_v52, %v1596_v17  ;;  %v5451_v52 = vmax.f32 %v4772_v12, 0.0 }
 0x631   : > { %v1760_v9 = vpop.f32.mrf.mxu1 }
 0x632   : > { %2986 = vmatprep.mubr.f32.mxu0 %v1759_v40  ;;  %v1608_v40 = vmul.f32 %v4940_v30, %v5451_v52 }
 0x633   : > { %v1763_v2 = vpop.f32.mrf.mxu1 }
 0x634   : > { %v1764_v47 = vadd.f32 %v1763_v2, %v1597_v4  ;;  %v5452_v2 = vmax.f32 %v4765_v8, 0.0 }
 0x635   : > { %v1765_v6 = vpop.f32.mrf.mxu1 }
 0x636   : > { %2987 = vmatmul.mubr.f32.gmra.mxu0 %v1764_v47  ;;  %v1609_v47 = vmul.f32 %v4940_v30, %v5452_v2 }
 0x637   : > { %v1768_v55 = vpop.f32.mrf.mxu1 }
 0x638   : > { %v1769_v38 = vadd.f32 %v1768_v55, %v1598_v25  ;;  %v5453_v55 = vmax.f32 %v4769_v24, 0.0 }
 0x639   : > { %v1770_v37 = vpop.f32.mrf.mxu1 }
 0x63a   : > { %2989 = vmatprep.mubr.f32.mxu0 %v1769_v38  ;;  %v1610_v38 = vmul.f32 %v4940_v30, %v5453_v55 }
 0x63b   : > { %v1773_v32 = vpop.f32.mrf.mxu1 }
 0x63c   : > { %v1774_v60 = vadd.f32 %v1773_v32, %v1599_v58  ;;  %v5454_v58 = vmax.f32 %v4762_v3, 0.0 }
 0x63d   : > { %v1775_v22 = vpop.f32.mrf.mxu1 }
 0x63e   : > { %2990 = vmatmul.mubr.f32.gmra.mxu0 %v1774_v60  ;;  %v1611_v32 = vmul.f32 %v4940_v30, %v5454_v58 }
 0x63f   : > { %v1778_v10 = vpop.f32.mrf.mxu1 }
 0x640   : > { %v1779_v29 = vadd.f32 %v1778_v10, %v1600_v7  ;;  %v2102_v7 = vcombine.high %v5039_v53, %v5039_v53 }
 0x641   : > { %v1780_v62 = vpop.f32.mrf.mxu1 }
 0x642   : > { %2992 = vmatprep.mubr.f32.mxu0 %v1779_v29 }
 0x643   : > { %v1783_v0 = vpop.f32.mrf.mxu1 }
 0x644   : > { %v1784_v63 = vadd.f32 %v1783_v0, %v1601_v43 }
 0x645   : > { %v1785_v15 = vpop.f32.mrf.mxu1 }
 0x646   : > { %2993 = vmatmul.mubr.f32.gmra.mxu0 %v1784_v63 }
 0x647   : > { %v1788_v1 = vpop.f32.mrf.mxu1 }
 0x648   : > { %v1789_v54 = vadd.f32 %v1788_v1, %v1602_v45 }
 0x649   : > { %v1790_v49 = vpop.f32.mrf.mxu1 }
 0x64a   : > { %2995 = vmatprep.mubr.f32.mxu0 %v1789_v54 }
 0x64b   : > { %v1793_v35 = vpop.f32.mrf.mxu1 }
 0x64c   : > { %v1794_v34 = vadd.f32 %v1793_v35, %v1603_v44 }
 0x64d   : > { %v1795_v26 = vpop.f32.mrf.mxu1 }
 0x64e   : > { %2996 = vmatmul.mubr.f32.gmra.mxu0 %v1794_v34 }
 0x64f   : > { %v1798_v56 = vpop.f32.mrf.mxu1 }
 0x650   : > { %v1799_v33 = vadd.f32 %v1798_v56, %v1604_v39 }
 0x651   : > { %v1800_v48 = vpop.f32.mrf.mxu1 }
 0x652   : > { %2998 = vmatprep.mubr.f32.mxu0 %v1799_v33 }
 0x653   : > { %v1803_v11 = vpop.f32.mrf.mxu1 }
 0x654   : > { %v1804_v50 = vadd.f32 %v1803_v11, %v1605_v41 }
 0x655   : > { %v1805_v19 = vpop.f32.mrf.mxu1 }
 0x656   : > { %2999 = vmatmul.mubr.f32.gmra.mxu0 %v1804_v50  ;;  %v5071_v19 = vld [vmem:[#allocation12 + $0x2] ss:$0 sm:$0xff] }
 0x657   : > { %v1808_v16 = vpop.f32.mrf.mxu1 }
 0x658   : > { %v1809_v20 = vadd.f32 %v1808_v16, %v1606_v18 }
 0x659   : > { %v1810_v28 = vpop.f32.mrf.mxu1 }
 0x65a   : > { %3001 = vmatprep.mubr.f32.mxu0 %v1809_v20 }
 0x65b   : > { %v1813_v21 = vpop.f32.mrf.mxu1 }
 0x65c   : > { %v1814_v14 = vadd.f32 %v1813_v21, %v1607_v31 }
 0x65d   : > { %v1815_v17 = vpop.f32.mrf.mxu1 }
 0x65e   : > { %3002 = vmatmul.mubr.f32.gmra.mxu0 %v1814_v14 }
 0x65f   : > { %v1818_v9 = vpop.f32.mrf.mxu1 }
 0x660   : > { %v1819_v5 = vadd.f32 %v1818_v9, %v1608_v40 }
 0x661   : > { %v1820_v4 = vpop.f32.mrf.mxu1 }
 0x662   : > { %3004 = vmatprep.mubr.f32.mxu0 %v1819_v5 }
 0x663   : > { %v1823_v27 = vpop.f32.mrf.mxu1 }
 0x664   : > { %v1824_v6 = vadd.f32 %v1823_v27, %v1609_v47 }
 0x665   : > { %v1825_v25 = vpop.f32.mrf.mxu1 }
 0x666   : > { %3005 = vmatmul.mubr.f32.gmra.mxu0 %v1824_v6 }
 0x667   : > { %v1828_v12 = vpop.f32.mrf.mxu1 }
 0x668   : > { %v1829_v37 = vadd.f32 %v1828_v12, %v1610_v38 }
 0x669   : > { %v1830_v36 = vpop.f32.mrf.mxu1 }
 0x66a   : > { %3007 = vmatprep.mubr.f32.mxu0 %v1829_v37 }
 0x66b   : > { %v1833_v8 = vpop.f32.mrf.mxu1 }
 0x66c   : > { %v1834_v60 = vadd.f32 %v1833_v8, %v1611_v32 }
 0x66d   : > { %v1835_v22 = vpop.f32.mrf.mxu1 }
 0x66e   : > { %3008 = vmatmul.mubr.f32.gmra.mxu0 %v1834_v60 }
 0x66f   : > { %2168 = vmatprep.mubr.f32.mxu0 %v2102_v7 }
 0x6b6   : > { %v5043_v24 = vpop.f32.mrf.mxu0 }
 0x6b8   : > { %v5045_v10 = vpop.f32.mrf.mxu0 }
 0x6be   : > { %v5047_v29 = vpop.f32.mrf.mxu0 }
 0x6c0   : > { %v5049_v62 = vpop.f32.mrf.mxu0 }
 0x6c6   : > { %v5051_v3 = vpop.f32.mrf.mxu0 }
 0x6c8   : > { %v5053_v30 = vpop.f32.mrf.mxu0 }
 0x6ce   : > { %v5055_v42 = vpop.f32.mrf.mxu0 }
 0x6d0   : > { %v5057_v43 = vpop.f32.mrf.mxu0 }
 0x6d6   : > { %v2976_v0 = vpop.f32.mrf.mxu0 }
 0x6d7   : > { %v1955_v36 = vadd.f32 %v2976_v0, %v5071_v19 }
 0x6d8   : > { %v1949_v63 = vpop.f32.mrf.mxu0 }
 0x6d9   : > { %v1950_v60 = vadd.f32 %v5071_v19, %v1949_v63 }
 0x6de   : > { %v2979_v15 = vpop.f32.mrf.mxu0 }
 0x6df   : > { %v1965_v47 = vadd.f32 %v2979_v15, %v5071_v19 }
 0x6e0   : > { %v1959_v59 = vpop.f32.mrf.mxu0 }
 0x6e1   : > { %v1960_v55 = vadd.f32 %v5071_v19, %v1959_v59  ;;  %v2079_v58 = vmax.f32 %v1965_v47, 0.0  ;;  %v1945_v59 = vadd.f32 %v5055_v42, %v5071_v19  ;;  %v2176_v47 = vld [vmem:[#allocation10 + $0x68] sm:$0xff] }
 0x6e3   : > { %v2078_v22 = vmax.f32 %v1960_v55, 0.0  ;;  %v2075_v42 = vmax.f32 %v1945_v59, 0.0  ;;  %v2282_v55 = vld [vmem:[#allocation10 + $0x250] sm:$0xff] }
 0x6e4   : > { %v2270_v59 = vld [vmem:[#allocation10 + $0x70] sm:$0xff] }
 0x6e6   : > { %v2982_v45 = vpop.f32.mrf.mxu0 }
 0x6e7   : > { %v1975_v14 = vadd.f32 %v2982_v45, %v5071_v19  ;;  %v2077_v45 = vmax.f32 %v1955_v36, 0.0  ;;  %v2278_v36 = vld [vmem:[#allocation10 + $0x1b0] sm:$0xff] }
 0x6e8   : > { %v1969_v1 = vpop.f32.mrf.mxu0 }
 0x6e9   : > { %v1970_v9 = vadd.f32 %v5071_v19, %v1969_v1  ;;  %v2081_v27 = vmax.f32 %v1975_v14, 0.0  ;;  %v2185_v14 = vld [vmem:[#allocation10 + $0x1d0] sm:$0xff] }
 0x6eb   : > { %v2080_v38 = vmax.f32 %v1970_v9, 0.0  ;;  %v2180_v9 = vld [vmem:[#allocation10 + $0x108] sm:$0xff] }
 0x6ee   : > { %v2985_v54 = vpop.f32.mrf.mxu0 }
 0x6ef   : > { %v1985_v13 = vadd.f32 %v2985_v54, %v5071_v19  ;;  %v1940_v54 = vadd.f32 %v5071_v19, %v5057_v43  ;;  %v1930_v43 = vadd.f32 %v5071_v19, %v5053_v30  ;;  %v1920_v30 = vadd.f32 %v5071_v19, %v5049_v62 }
 0x6f0   : > { %v1979_v49 = vpop.f32.mrf.mxu0  ;;  %v1910_v62 = vadd.f32 %v5071_v19, %v5045_v10  ;;  %v2187_v10 = vld [vmem:[#allocation10 + $0x220] sm:$0xff] }
 0x6f1   : > { %v1980_v20 = vadd.f32 %v5071_v19, %v1979_v49  ;;  %v2083_v17 = vmax.f32 %v1985_v13, 0.0  ;;  %v2076_v49 = vmax.f32 %v1950_v60, 0.0  ;;  %v2072_v13 = vmax.f32 %v1930_v43, 0.0  ;;  %v2274_v60 = vld [vmem:[#allocation10 + $0x110] sm:$0xff] }
 0x6f3   : > { %v2082_v5 = vmax.f32 %v1980_v20, 0.0 }
 0x6f6   : > { %v5059_v61 = vpop.f32.mrf.mxu0 }
 0x6f8   : > { %v5061_v44 = vpop.f32.mrf.mxu0 }
 0x6fe   : > { %v5063_v35 = vpop.f32.mrf.mxu0 }
 0x700   : > { %v5065_v34 = vpop.f32.mrf.mxu0 }
 0x706   : > { %v5067_v26 = vpop.f32.mrf.mxu0 }
 0x707   : > { %v2015_v63 = vadd.f32 %v5067_v26, %v5071_v19  ;;  %v2005_v26 = vadd.f32 %v5063_v35, %v5071_v19  ;;  %v1995_v35 = vadd.f32 %v5059_v61, %v5071_v19 }
 0x708   : > { %v5069_v57 = vpop.f32.mrf.mxu0 }
 0x70e   : > { %v2997_v39 = vpop.f32.mrf.mxu0 }
 0x70f   : > { %v2025_v7 = vadd.f32 %v2997_v39, %v5071_v19 }
 0x710   : > { %v2019_v56 = vpop.f32.mrf.mxu0 }
 0x711   : > { %v2020_v0 = vadd.f32 %v5071_v19, %v2019_v56  ;;  %v2091_v39 = vmax.f32 %v2025_v7, 0.0  ;;  %v2010_v56 = vadd.f32 %v5071_v19, %v5069_v57  ;;  %v2000_v57 = vadd.f32 %v5071_v19, %v5065_v34  ;;  %v2272_v7 = vld [vmem:[#allocation10 + $0xc0] sm:$0xff] }
 0x712   : > { %v1990_v34 = vadd.f32 %v5071_v19, %v5061_v44  ;;  %v2188_v44 = vld [vmem:[#allocation10 + $0x248] sm:$0xff] }
 0x713   : > { %v2086_v20 = vmax.f32 %v2000_v57, 0.0 }
 0x716   : > { %v3000_v33 = vpop.f32.mrf.mxu0 }
 0x717   : > { %v2035_v12 = vadd.f32 %v3000_v33, %v5071_v19  ;;  %v1935_v33 = vadd.f32 %v5051_v3, %v5071_v19  ;;  %v1925_v3 = vadd.f32 %v5047_v29, %v5071_v19  ;;  %v1915_v29 = vadd.f32 %v5043_v24, %v5071_v19  ;;  %v2189_v24 = vld [vmem:[#allocation10 + $0x270] sm:$0xff] }
 0x718   : > { %v2029_v48 = vpop.f32.mrf.mxu0 }
 0x719   : > { %v2030_v32 = vadd.f32 %v5071_v19, %v2029_v48  ;;  %v2093_v15 = vmax.f32 %v2035_v12, 0.0  ;;  %v2090_v48 = vmax.f32 %v2020_v0, 0.0  ;;  %v2069_v61 = vmax.f32 %v1915_v29, 0.0  ;;  %v2280_v12 = vld [vmem:[#allocation10 + $0x200] sm:$0xff] }
 0x71b   : > { %v2092_v1 = vmax.f32 %v2030_v32, 0.0  ;;  %v2276_v32 = vld [vmem:[#allocation10 + $0x160] sm:$0xff] }
 0x71e   : > { %v3003_v23 = vpop.f32.mrf.mxu0 }
 0x71f   : > { %v2045_v4 = vadd.f32 %v3003_v23, %v5071_v19  ;;  %v2074_v23 = vmax.f32 %v1940_v54, 0.0 }
 0x720   : > { %v2039_v41 = vpop.f32.mrf.mxu0 }
 0x721   : > { %v2040_v6 = vadd.f32 %v5071_v19, %v2039_v41  ;;  %v2095_v37 = vmax.f32 %v2045_v4, 0.0  ;;  %v2089_v41 = vmax.f32 %v2015_v63, 0.0  ;;  %v2178_v4 = vld [vmem:[#allocation10 + $0xb8] sm:$0xff]  ;;  %v2548_v63 = vld [vmem:[#allocation12 + $0x3] ss:$0 sm:$0xff] }
 0x723   : > { %v2094_v8 = vmax.f32 %v2040_v6, 0.0  ;;  %v2174_v6 = vld [vmem:[#allocation10 + $0x18] sm:$0xff] }
 0x726   : > { %v3006_v11 = vpop.f32.mrf.mxu0 }
 0x727   : > { %v2055_v51 = vadd.f32 %v3006_v11, %v5071_v19  ;;  %v2073_v11 = vmax.f32 %v1935_v33, 0.0 }
 0x728   : > { %v2049_v50 = vpop.f32.mrf.mxu0 }
 0x729   : > { %v2050_v52 = vadd.f32 %v5071_v19, %v2049_v50  ;;  %v2097_v2 = vmax.f32 %v2055_v51, 0.0  ;;  %v2088_v50 = vmax.f32 %v2010_v56, 0.0  ;;  %v2085_v51 = vmax.f32 %v1995_v35, 0.0 }
 0x72b   : > { %v2096_v25 = vmax.f32 %v2050_v52, 0.0  ;;  %v2182_v52 = vld [vmem:[#allocation10 + $0x158] sm:$0xff] }
 0x72e   : > { %v3009_v18 = vpop.f32.mrf.mxu0 }
 0x72f   : > { %v2065_v16 = vadd.f32 %v3009_v18, %v5071_v19  ;;  %v2087_v18 = vmax.f32 %v2005_v26, 0.0 }
 0x730   : > { %v2059_v28 = vpop.f32.mrf.mxu0 }
 0x731   : > { %v2099_v31 = vmax.f32 %v2065_v16, 0.0  ;;  %v2060_v21 = vadd.f32 %v5071_v19, %v2059_v28  ;;  %v2071_v16 = vmax.f32 %v1925_v3, 0.0  ;;  %v2070_v28 = vmax.f32 %v1920_v30, 0.0  ;;  %v2186_v19 = vld [vmem:[#allocation10 + $0x1f8] sm:$0xff] }
 0x733   : > { %v2098_v40 = vmax.f32 %v2060_v21, 0.0  ;;  %2701 = vmatprep.subr.mxu0 %v2099_v31  ;;  %v2084_v31 = vmax.f32 %v1990_v34, 0.0  ;;  %v2068_v21 = vmax.f32 %v1910_v62, 0.0 }
 0x734   : > { %2702 = vmatpush3.msra.mxu0 %v2083_v17  ;;  %v2184_v17 = vld [vmem:[#allocation10 + $0x1a8] sm:$0xff] }
 0x735   : > { %2703 = vmatprep.subr.mxu0 %v2098_v40  ;;  %v2181_v40 = vld [vmem:[#allocation10 + $0x130] sm:$0xff] }
 0x736   : > { %2704 = vmatpush3.msra.mxu0 %v2082_v5  ;;  %v2179_v5 = vld [vmem:[#allocation10 + $0xe0] sm:$0xff] }
 0x737   : > { %2705 = vmatprep.subr.mxu0 %v2097_v2  ;;  %v2177_v2 = vld [vmem:[#allocation10 + $0x90] sm:$0xff] }
 0x738   : > { %2706 = vmatpush3.msra.mxu0 %v2081_v27  ;;  %v2175_v27 = vld [vmem:[#allocation10 + $0x40] sm:$0xff] }
 0x739   : > { %2707 = vmatprep.subr.mxu0 %v2096_v25  ;;  %v2283_v25 = vld [vmem:[#allocation10 + $0x278] sm:$0xff] }
 0x73a   : > { %2708 = vmatpush3.msra.mxu0 %v2080_v38  ;;  %3046 = vmatpush3.msra.mxu1 %v2283_v25  ;;  %v2281_v38 = vld [vmem:[#allocation10 + $0x228] sm:$0xff] }
 0x73b   : > { %2709 = vmatprep.subr.mxu0 %v2095_v37  ;;  %3047 = vmatprep.subr.mxu1 %v5346_v46  ;;  %v2279_v37 = vld [vmem:[#allocation10 + $0x1d8] sm:$0xff] }
 0x73c   : > { %2710 = vmatpush3.msra.mxu0 %v2079_v58  ;;  %3048 = vmatpush3.msra.mxu1 %v2282_v55  ;;  %v2277_v58 = vld [vmem:[#allocation10 + $0x188] sm:$0xff] }
 0x73d   : > { %2711 = vmatprep.subr.mxu0 %v2094_v8  ;;  %3049 = vmatprep.subr.mxu1 %v5346_v46  ;;  %v2275_v8 = vld [vmem:[#allocation10 + $0x138] sm:$0xff] }
 0x73e   : > { %2712 = vmatpush3.msra.mxu0 %v2078_v22  ;;  %3050 = vmatpush3.msra.mxu1 %v2281_v38  ;;  %v2273_v22 = vld [vmem:[#allocation10 + $0xe8] sm:$0xff] }
 0x73f   : > { %2713 = vmatprep.subr.mxu0 %v2093_v15  ;;  %3051 = vmatprep.subr.mxu1 %v5346_v46  ;;  %v2271_v15 = vld [vmem:[#allocation10 + $0x98] sm:$0xff] }
 0x740   : > { %2714 = vmatpush3.msra.mxu0 %v2077_v45  ;;  %3052 = vmatpush3.msra.mxu1 %v2280_v12  ;;  %v2269_v45 = vld [vmem:[#allocation10 + $0x48] sm:$0xff] }
 0x741   : > { %2715 = vmatprep.subr.mxu0 %v2092_v1  ;;  %3053 = vmatprep.subr.mxu1 %v5346_v46 }
 0x742   : > { %2716 = vmatpush3.msra.mxu0 %v2076_v49  ;;  %3054 = vmatpush3.msra.mxu1 %v2279_v37  ;;  %v2268_v49 = vld [vmem:[#allocation10 + $0x20] sm:$0xff] }
 0x743   : > { %2717 = vmatprep.subr.mxu0 %v2091_v39  ;;  %3055 = vmatprep.subr.mxu1 %v5346_v46 }
 0x744   : > { %2718 = vmatpush3.msra.mxu0 %v2075_v42  ;;  %3056 = vmatpush3.msra.mxu1 %v2278_v36 }
 0x745   : > { %2719 = vmatprep.subr.mxu0 %v2090_v48  ;;  %3057 = vmatprep.subr.mxu1 %v5346_v46  ;;  %v2549_v48 = vld [vmem:[#allocation12 + $0x4] ss:$0 sm:$0xff] }
 0x746   : > { %2720 = vmatpush3.msra.mxu0 %v2074_v23  ;;  %3058 = vmatpush3.msra.mxu1 %v2277_v58 }
 0x747   : > { %2721 = vmatprep.subr.mxu0 %v2089_v41  ;;  %3059 = vmatprep.subr.mxu1 %v5346_v46 }
 0x748   : > { %2722 = vmatpush3.msra.mxu0 %v2073_v11  ;;  %3060 = vmatpush3.msra.mxu1 %v2276_v32 }
 0x749   : > { %2723 = vmatprep.subr.mxu0 %v2088_v50  ;;  %3061 = vmatprep.subr.mxu1 %v5346_v46 }
 0x74a   : > { %2724 = vmatpush3.msra.mxu0 %v2072_v13  ;;  %3062 = vmatpush3.msra.mxu1 %v2275_v8 }
 0x74b   : > { %2725 = vmatprep.subr.mxu0 %v2087_v18  ;;  %3063 = vmatprep.subr.mxu1 %v5346_v46 }
 0x74c   : > { %2726 = vmatpush3.msra.mxu0 %v2071_v16  ;;  %3064 = vmatpush3.msra.mxu1 %v2274_v60 }
 0x74d   : > { %2727 = vmatprep.subr.mxu0 %v2086_v20  ;;  %3065 = vmatprep.subr.mxu1 %v5346_v46 }
 0x74e   : > { %2728 = vmatpush3.msra.mxu0 %v2070_v28  ;;  %3066 = vmatpush3.msra.mxu1 %v2273_v22 }
 0x74f   : > { %2729 = vmatprep.subr.mxu0 %v2085_v51  ;;  %3067 = vmatprep.subr.mxu1 %v5346_v46 }
 0x750   : > { %2730 = vmatpush3.msra.mxu0 %v2069_v61  ;;  %3068 = vmatpush3.msra.mxu1 %v2272_v7 }
 0x751   : > { %2731 = vmatprep.subr.mxu0 %v2084_v31  ;;  %3069 = vmatprep.subr.mxu1 %v5346_v46 }
 0x752   : > { %2732 = vmatpush3.msra.mxu0 %v2068_v21  ;;  %3070 = vmatpush3.msra.mxu1 %v2271_v15 }
 0x753   : > { %2169 = vmatmul.mubr.f32.vlgmr.msra.gmra.mxu0 %v5039_v53  ;;  %3010 = vmatprep.subr.mxu0 %v5346_v46  ;;  %v2183_v53 = vld [vmem:[#allocation10 + $0x180] sm:$0xff] }
 0x754   : > { %3011 = vmatpush3.msra.mxu0 %v2189_v24  ;;  %3042 = vmatprep.mubr.msk.f32.mxu0 %vm3478_vm0, %v5346_v46 }
 0x755   : > { %3012 = vmatprep.subr.mxu0 %v5346_v46  ;;  %3071 = vmatprep.subr.mxu1 %v5346_v46 }
 0x756   : > { %3013 = vmatpush3.msra.mxu0 %v2188_v44  ;;  %3072 = vmatpush3.msra.mxu1 %v2270_v59 }
 0x757   : > { %3014 = vmatprep.subr.mxu0 %v5346_v46  ;;  %3073 = vmatprep.subr.mxu1 %v5346_v46 }
 0x758   : > { %3015 = vmatpush3.msra.mxu0 %v2187_v10  ;;  %3074 = vmatpush3.msra.mxu1 %v2269_v45 }
 0x759   : > { %3016 = vmatprep.subr.mxu0 %v5346_v46  ;;  %3075 = vmatprep.subr.mxu1 %v5346_v46 }
 0x75a   : > { %3017 = vmatpush3.msra.mxu0 %v2186_v19  ;;  %3076 = vmatpush3.msra.mxu1 %v2268_v49 }
 0x75b   : > { %3018 = vmatprep.subr.mxu0 %v5346_v46 }
 0x75c   : > { %3019 = vmatpush3.msra.mxu0 %v2185_v14 }
 0x75d   : > { %3020 = vmatprep.subr.mxu0 %v5346_v46 }
 0x75e   : > { %3021 = vmatpush3.msra.mxu0 %v2184_v17 }
 0x75f   : > { %3022 = vmatprep.subr.mxu0 %v5346_v46 }
 0x760   : > { %3023 = vmatpush3.msra.mxu0 %v2183_v53 }
 0x761   : > { %3024 = vmatprep.subr.mxu0 %v5346_v46 }
 0x762   : > { %3025 = vmatpush3.msra.mxu0 %v2182_v52 }
 0x763   : > { %3026 = vmatprep.subr.mxu0 %v5346_v46 }
 0x764   : > { %3027 = vmatpush3.msra.mxu0 %v2181_v40 }
 0x765   : > { %3028 = vmatprep.subr.mxu0 %v5346_v46 }
 0x766   : > { %3029 = vmatpush3.msra.mxu0 %v2180_v9 }
 0x767   : > { %3030 = vmatprep.subr.mxu0 %v5346_v46 }
 0x768   : > { %3031 = vmatpush3.msra.mxu0 %v2179_v5 }
 0x769   : > { %3032 = vmatprep.subr.mxu0 %v5346_v46 }
 0x76a   : > { %3033 = vmatpush3.msra.mxu0 %v2178_v4 }
 0x76b   : > { %3034 = vmatprep.subr.mxu0 %v5346_v46 }
 0x76c   : > { %3035 = vmatpush3.msra.mxu0 %v2177_v2 }
 0x76d   : > { %3036 = vmatprep.subr.mxu0 %v5346_v46 }
 0x76e   : > { %3037 = vmatpush3.msra.mxu0 %v2176_v47 }
 0x76f   : > { %3038 = vmatprep.subr.mxu0 %v5346_v46 }
 0x770   : > { %3039 = vmatpush3.msra.mxu0 %v2175_v27 }
 0x771   : > { %3040 = vmatprep.subr.mxu0 %v5346_v46 }
 0x772   : > { %3041 = vmatpush3.msra.mxu0 %v2174_v6 }
 0x813   : > { %v2733_v0 = vpop.f32.mrf.mxu0 }
 0x815   : > { %v2734_v1 = vpop.f32.mrf.mxu0 }
 0x816   : > { %v2735_v54 = vadd.f32 %v2734_v1, %v2733_v0 }
 0x818   : > { %3043 = vmatmul.mubr.f32.vlgmr.msra.gmra.mxu0 %v2735_v54 }
 0x8d8   : > { %v2263_v39 = vpop.f32.mrf.mxu0 }
 0x8d9   : > { %v2264_v33 = vadd.f32 %v2548_v63, %v2263_v39 }
 0x8da   : > { %v3044_v42 = vpop.f32.mrf.mxu0 }
 0x8db   : > { %v2267_v56 = vmax.f32 %v2264_v33, 0.0 }
 0x8dd   : > { %3078 = vmatmul.mubr.f32.vlgmr.msra.gmra.mxu1 %v2267_v56 }
 0x99d   : > { %v2357_v46 = vpop.f32.mrf.mxu1 }
 0x99e   : > { %v2358_v43 = vadd.f32 %v2549_v48, %v2357_v46 }
 0x99f   : > { %v3079_v23 = vpop.f32.mrf.mxu1 }
 0x9a0   : > { %2361 = vst [vmem:[%s383_s26] sm:$0xf] %v2358_v43 }
 0x9a1   : > { %3400 = shalt.err (!%p3397_p3)
}
 0x9a2   : > { %s3401_s28 = scalar_lea.hbm %s5158_s14, 64  ;;  %s3405_s18 = scalar_lea.hbm %s5200_s6, 512 }
 0x9a3   : > { %p3402_p6 = scmp.ne.s32.totalorder %s5158_s14, %s3401_s28  ;;  %p3406_p7 = scmp.lt.s32.totalorder %s5158_s14, %s5200_s6 }
 0x9a4   : > { %p3407_p13 = scmp.lt.s32.totalorder %s3405_s18, %s3401_s28 }
 0x9a5   : > { %p3403_p11 = pnand %p3402_p6, %p5455_p8 }
 0x9a6   : > { %p3408_p2 = por %p3407_p13, %p3406_p7 }
 0x9a7   : > { %p3404_p5 = pneg %p3403_p11 }
 0x9a9   : > { %p3409_p0 = pnand %p3408_p2, %p3404_p5 }
 0x9ab   : > { %3412 = shalt.err (!%p3409_p0)
}
 0x9ac   : > { %3098 = dma.vmem_to_hbm [thread:$0]  (%p5455_p8), %s2377_s15, 64, %s5158_s14, %s2363_s1  }
 0x9ad PF: > { %p3131_p9 = scmp.ge.s32.totalorder %s3463_s24, 2  ;;  %s2388_s8 = sand.u32 1, %s3451_s21  }
 0x9ae   : > { %p5456_p10 = scmp.ne.s32.totalorder %s5307_s10, 0  ;;  %s2389_s17 = scalar_lea.sflag [#allocation4], %s2388_s8 }
 0x9b0   : > { %p3121_p1 = pnand %p3131_p9, %p5456_p10 }
 0x9b2   : > { %p3122_p4 = pneg %p3121_p1 }
 0x9b4   : > { %3446 = dma.done.wait (%p3122_p4), %s2389_s17, 64  }
 0x9b5   : > { %3448 = vsyncadd (%p3122_p4), %s2389_s17, 4294967232  ;;  %s5457_s24 = sld [smem:[#allocation20_spill]]  ;;  %s5460_s21 = smov %s3455_s22 }
 0x9b6   : > { %s5458_s23 = sld [smem:[#allocation19_spill]] }
 0x9b7   : > { %s5459_s20 = sld [smem:[#allocation21_spill]] }
 0x9bb   : > { %p24_p12 = scmp.ge.s32.totalorder %s5457_s24, 10  }
 0x9bc   : > { %s5461_s22 = smov %s5458_s23 }
 0x9bd   : > { %s5462_s23 = smov %s5459_s20  ;;  %26 = sbr.rel (!%p24_p12) target bundleno = 15 (0xf), region = 126 }
 0x9c2   :  { %2394 = vsyncpa [#allocation3], 1 }
 0x9c3   :  { %2396 = vsyncpa [#allocation3 + $0x1], 1 }
 0x9c4   :  { %2397 = vsyncpa [#allocation8], 1 }
 0x9c5   :  { %2399 = vsyncpa [#allocation8 + $0x1], 1 }
 0x9c6   :  { %2400 = vsyncpa [#allocation11], 1 }
 0x9c7   :  { %2401 = vsyncpa [#allocation4], 1 }
 0x9c8   :  { %2403 = vsyncpa [#allocation4 + $0x1], 1 }
 0x9c9   :  { %2404 = vsyncpa [#allocation5], 1 }
 0x9ca   :  { %2406 = vsyncpa [#allocation5 + $0x1], 1 }

</bundles_post_ra>
